<compile_context>
chip_gen: v7x
topology: tpu7x:2x2x1
jax: 0.10.0
libtpu: 0.0.40
codegen_flags: <defaults>
</compile_context>

<pallas_src>
import functools

import jax
import jax.numpy as jnp
from jax import lax
from jax.experimental import pallas as pl
from jax.experimental.pallas import tpu as pltpu

LANE = 128


def _round_up(x, m):
    return (x + m - 1) // m * m


def _fold_bn(gamma, beta, mean, var, eps=1e-5):
    scale = gamma / jnp.sqrt(var + eps)
    shift = beta - mean * scale
    return scale, shift


def _auto_batch_tile(N, H, W, target_rows=256):
    """Pick nb | N with nb*H*W >= target_rows while keeping >= 2 grid steps."""
    divisors = [d for d in range(1, N + 1) if N % d == 0]
    nb = divisors[-1]
    for d in divisors:
        if d * H * W >= target_rows:
            nb = d
            break
    if N // nb < 2:  # keep at least 2 steps for megacore sharding / pipelining
        smaller = [d for d in divisors if N // d >= 2]
        if smaller:
            nb = smaller[-1]
    return nb


# ------------------------------ fused kernel --------------------------------

def _bottleneck_kernel(x_ref, w1_ref, b1_ref, w2_ref, b2_ref, w3_ref, b3_ref,
                       o_ref, h1p_ref, *, nb, H, W, Cout):
    Cmid = w1_ref.shape[-1]          # lane-padded mid channels (multiple of 128)
    M = nb * H * W
    zb = h1p_ref.dtype

    x2d = x_ref[...]                 # (M, Cin) bf16, TRUE (unpadded) channels

    # ---- conv1 (1x1) + bn1 (scale folded into w1) + relu --------------------
    h1 = jnp.dot(x2d, w1_ref[...], preferred_element_type=jnp.float32)
    h1 = jnp.maximum(h1 + b1_ref[...], 0.0)

    # ---- stage conv1 output into the 1-pixel-halo VMEM scratch --------------
    # Zero only the halo ring (interior is fully overwritten).  Done every step
    # (not @pl.when(program_id==0)): with dimension_semantics=("parallel",)
    # each TensorCore owns its own scratch and a disjoint program_id range, so
    # "first iteration" is not program_id 0 on every core.
    h1p_ref[:, 0:1, :, :] = jnp.zeros((nb, 1) + h1p_ref.shape[2:], zb)
    h1p_ref[:, H + 1:H + 2, :, :] = jnp.zeros((nb, 1) + h1p_ref.shape[2:], zb)
    h1p_ref[:, 1:H + 1, 0:1, :] = jnp.zeros((nb, H, 1, Cmid), zb)
    h1p_ref[:, 1:H + 1, W + 1:W + 2, :] = jnp.zeros((nb, H, 1, Cmid), zb)
    h1p_ref[:, 1:H + 1, 1:W + 1, :] = h1.reshape(nb, H, W, Cmid).astype(zb)

    # ---- conv2 (3x3, stride 1, pad 1) + bn2 + relu ---------------------------
    # K-stacked: concatenate the 9 shifted windows along K and do ONE deep
    # matmul (K = 9*Cmid) instead of 9 shallow K=128 matmuls.
    wins = [h1p_ref[:, kh:kh + H, kw:kw + W, :].reshape(M, Cmid)
            for kh in range(3) for kw in range(3)]
    slab = jnp.concatenate(wins, axis=-1)                     # (M, 9*Cmid) bf16
    h2 = jnp.dot(slab, w2_ref[...], preferred_element_type=jnp.float32)
    h2 = jnp.maximum(h2 + b2_ref[...], 0.0).astype(jnp.bfloat16)

    # ---- conv3 (1x1) + bn3 + residual add + relu -----------------------------
    y = jnp.dot(h2, w3_ref[...], preferred_element_type=jnp.float32)
    y = (y + b3_ref[...])[:, :Cout] + x2d.astype(jnp.float32)  # Cin == Cout
    o_ref[...] = jnp.maximum(y, 0.0).astype(o_ref.dtype)


# ----------------------------- wrapper / glue --------------------------------

def bottleneck_forward(x_nchw, params, stride=1, batch_tile=None):
    """Bottleneck forward (eval-mode BN, downsample=None => stride must be 1)."""
    if stride != 1:
        # TODO(synk): strided conv2 needs the external `downsample` module for
        # the residual; with downsample=None (this config) stride must be 1.
        raise NotImplementedError("stride != 1 requires a downsample module")

    N, Cin, H, W = x_nchw.shape
    w1 = params["w1"].reshape(params["w1"].shape[0], Cin)
    planes = w1.shape[0]
    Cout = 4 * planes
    assert Cin == Cout, "downsample=None requires inplanes == 4*planes"

    nb = batch_tile if batch_tile is not None else _auto_batch_tile(N, H, W)
    assert N % nb == 0, (N, nb)
    M = nb * H * W
    assert M % 8 == 0, "per-step row count must be sublane-aligned"

    Cmid_p = _round_up(planes, LANE)
    Cout_p = _round_up(Cout, LANE)
    Wp2 = _round_up(W + 2, 8)         # sublane-aligned padded scratch width

    f32, bf16 = jnp.float32, jnp.bfloat16

    # Fold BN scale into weight output-columns; keep shifts as f32 biases.
    s1, b1 = _fold_bn(params["g1"], params["be1"], params["m1"], params["v1"])
    s2, b2 = _fold_bn(params["g2"], params["be2"], params["m2"], params["v2"])
    s3, b3 = _fold_bn(params["g3"], params["be3"], params["m3"], params["v3"])

    w1f = w1.astype(f32).T * s1[None, :]                      # (Cin, planes)
    w1p = jnp.zeros((Cin, Cmid_p), f32).at[:, :planes].set(w1f)

    w2 = params["w2"].astype(f32)                             # (out, in, 3, 3)
    w2taps = jnp.transpose(w2, (2, 3, 1, 0)).reshape(9, planes, planes)
    w2taps = w2taps * s2[None, None, :]
    w2p = (jnp.zeros((9, Cmid_p, Cmid_p), f32)
           .at[:, :planes, :planes].set(w2taps)
           .reshape(9 * Cmid_p, Cmid_p))                      # K-stacked taps

    w3 = params["w3"].reshape(Cout, planes).astype(f32)
    w3f = w3.T * s3[None, :]                                  # (planes, Cout)
    w3p = jnp.zeros((Cmid_p, Cout_p), f32).at[:planes, :Cout].set(w3f)

    b1p = jnp.zeros((1, Cmid_p), f32).at[0, :planes].set(b1)
    b2p = jnp.zeros((1, Cmid_p), f32).at[0, :planes].set(b2)
    b3p = jnp.zeros((1, Cout_p), f32).at[0, :Cout].set(b3)

    w1p, w2p, w3p = w1p.astype(bf16), w2p.astype(bf16), w3p.astype(bf16)

    # NCHW -> NHWC (interface only), flatten spatial into rows, keep the TRUE
    # channel count (no 128-lane pre-padding round-tripped through HBM).
    # TODO(synk): residual uses the bf16-rounded x; pass x in f32 if a strict
    # f32 skip connection is required.
    x2d = (jnp.transpose(x_nchw, (0, 2, 3, 1))
           .reshape(N * H * W, Cin).astype(bf16))

    grid = (N // nb,)
    kernel = functools.partial(_bottleneck_kernel, nb=nb, H=H, W=W, Cout=Cout)

    flops = 2 * N * H * W * (Cin * Cmid_p + 9 * Cmid_p * Cmid_p
                             + Cmid_p * Cout_p)
    bytes_accessed = (x2d.size * 2 + N * H * W * Cout * 4
                      + (w1p.size + w2p.size + w3p.size) * 2
                      + (b1p.size + b2p.size + b3p.size) * 4)
    vmem_bytes = (
        2 * M * Cin * 2 + 2 * M * Cout * 4                 # double-buffered I/O
        + 2 * (w1p.size + w2p.size + w3p.size) * 2
        + 2 * (b1p.size + b2p.size + b3p.size) * 4
        + nb * (H + 2) * Wp2 * Cmid_p * 2                  # halo scratch
        + M * 9 * Cmid_p * 2                               # conv2 K-slab
        + 6 * M * Cmid_p * 4)                              # f32 intermediates
    vmem_limit = int(min(64 * 1024 * 1024,
                         max(32 * 1024 * 1024, 2 * vmem_bytes)))

    out2d = pl.pallas_call(
        kernel,
        out_shape=jax.ShapeDtypeStruct((N * H * W, Cout), f32),
        grid=grid,
        in_specs=[
            pl.BlockSpec((M, Cin), lambda i: (i, 0)),
            pl.BlockSpec((Cin, Cmid_p), lambda i: (0, 0)),
            pl.BlockSpec((1, Cmid_p), lambda i: (0, 0)),
            pl.BlockSpec((9 * Cmid_p, Cmid_p), lambda i: (0, 0)),
            pl.BlockSpec((1, Cmid_p), lambda i: (0, 0)),
            pl.BlockSpec((Cmid_p, Cout_p), lambda i: (0, 0)),
            pl.BlockSpec((1, Cout_p), lambda i: (0, 0)),
        ],
        out_specs=pl.BlockSpec((M, Cout), lambda i: (i, 0)),
        scratch_shapes=[pltpu.VMEM((nb, H + 2, Wp2, Cmid_p), bf16)],
        compiler_params=pltpu.CompilerParams(
            dimension_semantics=("parallel",),
            vmem_limit_bytes=vmem_limit),
        cost_estimate=pl.CostEstimate(
            flops=flops, transcendentals=0, bytes_accessed=bytes_accessed),
    )(x2d, w1p, b1p, w2p, b2p, w3p, b3p)

    out = out2d.reshape(N, H, W, Cout)
    return jnp.transpose(out, (0, 3, 1, 2))               # NHWC -> NCHW interface


# ----------------------------- pure-JAX reference ----------------------------

def _ref_bn(y, g, b, m, v, eps=1e-5):
    return (y - m) / jnp.sqrt(v + eps) * g + b


def bottleneck_reference(x_nchw, params, stride=1):
    x = jnp.transpose(x_nchw, (0, 2, 3, 1)).astype(jnp.float32)
    dn = ("NHWC", "HWIO", "NHWC")

    w1 = jnp.transpose(params["w1"][:, :, None, None], (2, 3, 1, 0))
    y = lax.conv_general_dilated(x, w1, (1, 1), "VALID", dimension_numbers=dn)
    y = jax.nn.relu(_ref_bn(y, params["g1"], params["be1"], params["m1"], params["v1"]))

    w2 = jnp.transpose(params["w2"], (2, 3, 1, 0))
    y = lax.conv_general_dilated(y, w2, (stride, stride), ((1, 1), (1, 1)),
                                 dimension_numbers=dn)
    y = jax.nn.relu(_ref_bn(y, params["g2"], params["be2"], params["m2"], params["v2"]))

    w3 = jnp.transpose(params["w3"][:, :, None, None], (2, 3, 1, 0))
    y = lax.conv_general_dilated(y, w3, (1, 1), "VALID", dimension_numbers=dn)
    y = _ref_bn(y, params["g3"], params["be3"], params["m3"], params["v3"])

    y = jax.nn.relu(y + x)
    return jnp.transpose(y, (0, 3, 1, 2))


# ---------------------------------- main --------------------------------------

if __name__ == "__main__":
    # Bottleneck(inplanes=16, planes=4, stride=1, downsample=None)
    inplanes, planes = 16, 4
    N, H, W = 8, 8, 8            # batch raised so each grid step has M=256 rows

    key = jax.random.PRNGKey(0)
    ks = jax.random.split(key, 16)

    params = {
        # conv weights, PyTorch layout (out, in, [kh, kw])
        "w1": 0.1 * jax.random.normal(ks[0], (planes, inplanes), jnp.float32),
        "w2": 0.1 * jax.random.normal(ks[1], (planes, planes, 3, 3), jnp.float32),
        "w3": 0.1 * jax.random.normal(ks[2], (4 * planes, planes), jnp.float32),
        # bn1
        "g1": 1.0 + 0.1 * jax.random.normal(ks[3], (planes,), jnp.float32),
        "be1": 0.1 * jax.random.normal(ks[4], (planes,), jnp.float32),
        "m1": 0.05 * jax.random.normal(ks[5], (planes,), jnp.float32),
        "v1": 1.0 + 0.1 * jax.random.uniform(ks[6], (planes,), jnp.float32),
        # bn2
        "g2": 1.0 + 0.1 * jax.random.normal(ks[7], (planes,), jnp.float32),
        "be2": 0.1 * jax.random.normal(ks[8], (planes,), jnp.float32),
        "m2": 0.05 * jax.random.normal(ks[9], (planes,), jnp.float32),
        "v2": 1.0 + 0.1 * jax.random.uniform(ks[10], (planes,), jnp.float32),
        # bn3
        "g3": 1.0 + 0.1 * jax.random.normal(ks[11], (4 * planes,), jnp.float32),
        "be3": 0.1 * jax.random.normal(ks[12], (4 * planes,), jnp.float32),
        "m3": 0.05 * jax.random.normal(ks[13], (4 * planes,), jnp.float32),
        "v3": 1.0 + 0.1 * jax.random.uniform(ks[14], (4 * planes,), jnp.float32),
    }

    x = jax.random.normal(ks[15], (N, inplanes, H, W), jnp.float32)

    out = jax.block_until_ready(bottleneck_forward(x, params, stride=1))
    ref = jax.block_until_ready(bottleneck_reference(x, params, stride=1))

    assert out.shape == (N, 4 * planes, H, W), out.shape
    # bf16 matmul operands / bf16 residual -> relaxed tolerance vs f32 reference.
    assert jnp.allclose(out, ref, atol=5e-2, rtol=5e-2), \
        float(jnp.max(jnp.abs(out - ref)))

    print("KERNEL_OK")
</pallas_src>

<mosaic_0001>
module attributes {stable_mosaic.version = 11 : i64} {
  func.func @_bottleneck_kernel(%arg0: i32, %arg1: memref<256x16xbf16, #tpu.memory_space<vmem>>, %arg2: memref<16x128xbf16, #tpu.memory_space<vmem>>, %arg3: memref<1x128xf32, #tpu.memory_space<vmem>>, %arg4: memref<1152x128xbf16, #tpu.memory_space<vmem>>, %arg5: memref<1x128xf32, #tpu.memory_space<vmem>>, %arg6: memref<128x128xbf16, #tpu.memory_space<vmem>>, %arg7: memref<1x128xf32, #tpu.memory_space<vmem>>, %arg8: memref<256x16xf32, #tpu.memory_space<vmem>>, %arg9: memref<4x10x16x128xbf16, #tpu.memory_space<vmem>>) attributes {dimension_semantics = [#tpu.dimension_semantics<parallel>], iteration_bounds = array<i64: 2>, scalar_prefetch = 0 : i64, scratch_operands = 1 : i64, tpu.core_type = #tpu.core_type<tc>, window_params = [{transform_indices = @transform_0, window_bounds = array<i64: 256, 16>}, {pipeline_mode = #tpu.pipeline_mode<synchronous>, transform_indices = @transform_1, window_bounds = array<i64: 16, 128>}, {pipeline_mode = #tpu.pipeline_mode<synchronous>, transform_indices = @transform_2, window_bounds = array<i64: 1, 128>}, {pipeline_mode = #tpu.pipeline_mode<synchronous>, transform_indices = @transform_3, window_bounds = array<i64: 1152, 128>}, {pipeline_mode = #tpu.pipeline_mode<synchronous>, transform_indices = @transform_4, window_bounds = array<i64: 1, 128>}, {pipeline_mode = #tpu.pipeline_mode<synchronous>, transform_indices = @transform_5, window_bounds = array<i64: 128, 128>}, {pipeline_mode = #tpu.pipeline_mode<synchronous>, transform_indices = @transform_6, window_bounds = array<i64: 1, 128>}, {transform_indices = @transform_7, window_bounds = array<i64: 256, 16>}]} {
    %c0 = arith.constant 0 : index
    %c0_0 = arith.constant 0 : index
    %0 = vector.load %arg1[%c0, %c0_0] : memref<256x16xbf16, #tpu.memory_space<vmem>>, vector<256x16xbf16>
    %c0_1 = arith.constant 0 : index
    %c0_2 = arith.constant 0 : index
    %1 = vector.load %arg2[%c0_1, %c0_2] : memref<16x128xbf16, #tpu.memory_space<vmem>>, vector<16x128xbf16>
    %cst = arith.constant dense<0.000000e+00> : vector<256x128xf32>
    %2 = tpu.matmul %0, %1, %cst {dimension_numbers = #tpu.dot_dimension_numbers<[1], [0], [0], [1], [0, 0, 1, 1], [], []>} : vector<256x16xbf16>, vector<16x128xbf16>, vector<256x128xf32> -> vector<256x128xf32>
    %c0_3 = arith.constant 0 : index
    %c0_4 = arith.constant 0 : index
    %3 = vector.load %arg3[%c0_3, %c0_4] : memref<1x128xf32, #tpu.memory_space<vmem>>, vector<1x128xf32>
    %4 = vector.broadcast %3 : vector<1x128xf32> to vector<256x128xf32>
    %5 = arith.addf %2, %4 : vector<256x128xf32>
    %cst_5 = arith.constant 0.000000e+00 : f32
    %6 = vector.broadcast %cst_5 : f32 to vector<256x128xf32>
    %7 = arith.maximumf %5, %6 : vector<256x128xf32>
    %cst_6 = arith.constant 0.000000e+00 : bf16
    %8 = vector.broadcast %cst_6 : bf16 to vector<4x1x16x128xbf16>
    %c0_7 = arith.constant 0 : index
    %c0_8 = arith.constant 0 : index
    %c0_9 = arith.constant 0 : index
    %c0_10 = arith.constant 0 : index
    %9 = vector.load %arg9[%c0_7, %c0_8, %c0_9, %c0_10] : memref<4x10x16x128xbf16, #tpu.memory_space<vmem>>, vector<4x1x16x128xbf16>
    tpu.vector_store %arg9[%c0_7, %c0_8, %c0_9, %c0_10], %8 {strides = array<i32>} : memref<4x10x16x128xbf16, #tpu.memory_space<vmem>>, vector<4x1x16x128xbf16>,
    %cst_11 = arith.constant 0.000000e+00 : bf16
    %10 = vector.broadcast %cst_11 : bf16 to vector<4x1x16x128xbf16>
    %c0_12 = arith.constant 0 : index
    %c9 = arith.constant 9 : index
    %c0_13 = arith.constant 0 : index
    %c0_14 = arith.constant 0 : index
    %11 = vector.load %arg9[%c0_12, %c9, %c0_13, %c0_14] : memref<4x10x16x128xbf16, #tpu.memory_space<vmem>>, vector<4x1x16x128xbf16>
    tpu.vector_store %arg9[%c0_12, %c9, %c0_13, %c0_14], %10 {strides = array<i32>} : memref<4x10x16x128xbf16, #tpu.memory_space<vmem>>, vector<4x1x16x128xbf16>,
    %cst_15 = arith.constant 0.000000e+00 : bf16
    %12 = vector.broadcast %cst_15 : bf16 to vector<4x8x1x128xbf16>
    %c0_16 = arith.constant 0 : index
    %c1 = arith.constant 1 : index
    %c0_17 = arith.constant 0 : index
    %c0_18 = arith.constant 0 : index
    %13 = vector.load %arg9[%c0_16, %c1, %c0_17, %c0_18] : memref<4x10x16x128xbf16, #tpu.memory_space<vmem>>, vector<4x8x1x128xbf16>
    tpu.vector_store %arg9[%c0_16, %c1, %c0_17, %c0_18], %12 {strides = array<i32>} : memref<4x10x16x128xbf16, #tpu.memory_space<vmem>>, vector<4x8x1x128xbf16>,
    %cst_19 = arith.constant 0.000000e+00 : bf16
    %14 = vector.broadcast %cst_19 : bf16 to vector<4x8x1x128xbf16>
    %c0_20 = arith.constant 0 : index
    %c1_21 = arith.constant 1 : index
    %c9_22 = arith.constant 9 : index
    %c0_23 = arith.constant 0 : index
    %15 = vector.load %arg9[%c0_20, %c1_21, %c9_22, %c0_23] : memref<4x10x16x128xbf16, #tpu.memory_space<vmem>>, vector<4x8x1x128xbf16>
    tpu.vector_store %arg9[%c0_20, %c1_21, %c9_22, %c0_23], %14 {strides = array<i32>} : memref<4x10x16x128xbf16, #tpu.memory_space<vmem>>, vector<4x8x1x128xbf16>,
    %16 = vector.shape_cast %7 : vector<256x128xf32> to vector<4x8x8x128xf32>
    %17 = arith.truncf %16 : vector<4x8x8x128xf32> to vector<4x8x8x128xbf16>
    %c0_24 = arith.constant 0 : index
    %c1_25 = arith.constant 1 : index
    %c1_26 = arith.constant 1 : index
    %c0_27 = arith.constant 0 : index
    %18 = vector.load %arg9[%c0_24, %c1_25, %c1_26, %c0_27] : memref<4x10x16x128xbf16, #tpu.memory_space<vmem>>, vector<4x8x8x128xbf16>
    tpu.vector_store %arg9[%c0_24, %c1_25, %c1_26, %c0_27], %17 {strides = array<i32>} : memref<4x10x16x128xbf16, #tpu.memory_space<vmem>>, vector<4x8x8x128xbf16>,
    %c0_28 = arith.constant 0 : index
    %c0_29 = arith.constant 0 : index
    %c0_30 = arith.constant 0 : index
    %c0_31 = arith.constant 0 : index
    %19 = vector.load %arg9[%c0_28, %c0_29, %c0_30, %c0_31] : memref<4x10x16x128xbf16, #tpu.memory_space<vmem>>, vector<4x8x8x128xbf16>
    %20 = vector.shape_cast %19 : vector<4x8x8x128xbf16> to vector<256x128xbf16>
    %c0_32 = arith.constant 0 : index
    %c0_33 = arith.constant 0 : index
    %c1_34 = arith.constant 1 : index
    %c0_35 = arith.constant 0 : index
    %21 = vector.load %arg9[%c0_32, %c0_33, %c1_34, %c0_35] : memref<4x10x16x128xbf16, #tpu.memory_space<vmem>>, vector<4x8x8x128xbf16>
    %22 = vector.shape_cast %21 : vector<4x8x8x128xbf16> to vector<256x128xbf16>
    %c0_36 = arith.constant 0 : index
    %c0_37 = arith.constant 0 : index
    %c2 = arith.constant 2 : index
    %c0_38 = arith.constant 0 : index
    %23 = vector.load %arg9[%c0_36, %c0_37, %c2, %c0_38] : memref<4x10x16x128xbf16, #tpu.memory_space<vmem>>, vector<4x8x8x128xbf16>
    %24 = vector.shape_cast %23 : vector<4x8x8x128xbf16> to vector<256x128xbf16>
    %c0_39 = arith.constant 0 : index
    %c1_40 = arith.constant 1 : index
    %c0_41 = arith.constant 0 : index
    %c0_42 = arith.constant 0 : index
    %25 = vector.load %arg9[%c0_39, %c1_40, %c0_41, %c0_42] : memref<4x10x16x128xbf16, #tpu.memory_space<vmem>>, vector<4x8x8x128xbf16>
    %26 = vector.shape_cast %25 : vector<4x8x8x128xbf16> to vector<256x128xbf16>
    %c0_43 = arith.constant 0 : index
    %c1_44 = arith.constant 1 : index
    %c1_45 = arith.constant 1 : index
    %c0_46 = arith.constant 0 : index
    %27 = vector.load %arg9[%c0_43, %c1_44, %c1_45, %c0_46] : memref<4x10x16x128xbf16, #tpu.memory_space<vmem>>, vector<4x8x8x128xbf16>
    %28 = vector.shape_cast %27 : vector<4x8x8x128xbf16> to vector<256x128xbf16>
    %c0_47 = arith.constant 0 : index
    %c1_48 = arith.constant 1 : index
    %c2_49 = arith.constant 2 : index
    %c0_50 = arith.constant 0 : index
    %29 = vector.load %arg9[%c0_47, %c1_48, %c2_49, %c0_50] : memref<4x10x16x128xbf16, #tpu.memory_space<vmem>>, vector<4x8x8x128xbf16>
    %30 = vector.shape_cast %29 : vector<4x8x8x128xbf16> to vector<256x128xbf16>
    %c0_51 = arith.constant 0 : index
    %c2_52 = arith.constant 2 : index
    %c0_53 = arith.constant 0 : index
    %c0_54 = arith.constant 0 : index
    %31 = vector.load %arg9[%c0_51, %c2_52, %c0_53, %c0_54] : memref<4x10x16x128xbf16, #tpu.memory_space<vmem>>, vector<4x8x8x128xbf16>
    %32 = vector.shape_cast %31 : vector<4x8x8x128xbf16> to vector<256x128xbf16>
    %c0_55 = arith.constant 0 : index
    %c2_56 = arith.constant 2 : index
    %c1_57 = arith.constant 1 : index
    %c0_58 = arith.constant 0 : index
    %33 = vector.load %arg9[%c0_55, %c2_56, %c1_57, %c0_58] : memref<4x10x16x128xbf16, #tpu.memory_space<vmem>>, vector<4x8x8x128xbf16>
    %34 = vector.shape_cast %33 : vector<4x8x8x128xbf16> to vector<256x128xbf16>
    %c0_59 = arith.constant 0 : index
    %c2_60 = arith.constant 2 : index
    %c2_61 = arith.constant 2 : index
    %c0_62 = arith.constant 0 : index
    %35 = vector.load %arg9[%c0_59, %c2_60, %c2_61, %c0_62] : memref<4x10x16x128xbf16, #tpu.memory_space<vmem>>, vector<4x8x8x128xbf16>
    %36 = vector.shape_cast %35 : vector<4x8x8x128xbf16> to vector<256x128xbf16>
    %37 = tpu.concatenate %20, %22, %24, %26, %28, %30, %32, %34, %36 in 1 : vector<256x128xbf16>, vector<256x128xbf16>, vector<256x128xbf16>, vector<256x128xbf16>, vector<256x128xbf16>, vector<256x128xbf16>, vector<256x128xbf16>, vector<256x128xbf16>, vector<256x128xbf16> -> vector<256x1152xbf16>
    %c0_63 = arith.constant 0 : index
    %c0_64 = arith.constant 0 : index
    %38 = vector.load %arg4[%c0_63, %c0_64] : memref<1152x128xbf16, #tpu.memory_space<vmem>>, vector<1152x128xbf16>
    %cst_65 = arith.constant dense<0.000000e+00> : vector<256x128xf32>
    %39 = tpu.matmul %37, %38, %cst_65 {dimension_numbers = #tpu.dot_dimension_numbers<[1], [0], [0], [1], [0, 0, 1, 1], [], []>} : vector<256x1152xbf16>, vector<1152x128xbf16>, vector<256x128xf32> -> vector<256x128xf32>
    %c0_66 = arith.constant 0 : index
    %c0_67 = arith.constant 0 : index
    %40 = vector.load %arg5[%c0_66, %c0_67] : memref<1x128xf32, #tpu.memory_space<vmem>>, vector<1x128xf32>
    %41 = vector.broadcast %40 : vector<1x128xf32> to vector<256x128xf32>
    %42 = arith.addf %39, %41 : vector<256x128xf32>
    %cst_68 = arith.constant 0.000000e+00 : f32
    %43 = vector.broadcast %cst_68 : f32 to vector<256x128xf32>
    %44 = arith.maximumf %42, %43 : vector<256x128xf32>
    %45 = arith.truncf %44 : vector<256x128xf32> to vector<256x128xbf16>
    %c0_69 = arith.constant 0 : index
    %c0_70 = arith.constant 0 : index
    %46 = vector.load %arg6[%c0_69, %c0_70] : memref<128x128xbf16, #tpu.memory_space<vmem>>, vector<128x128xbf16>
    %cst_71 = arith.constant dense<0.000000e+00> : vector<256x128xf32>
    %47 = tpu.matmul %45, %46, %cst_71 {dimension_numbers = #tpu.dot_dimension_numbers<[1], [0], [0], [1], [0, 0, 1, 1], [], []>} : vector<256x128xbf16>, vector<128x128xbf16>, vector<256x128xf32> -> vector<256x128xf32>
    %c0_72 = arith.constant 0 : index
    %c0_73 = arith.constant 0 : index
    %48 = vector.load %arg7[%c0_72, %c0_73] : memref<1x128xf32, #tpu.memory_space<vmem>>, vector<1x128xf32>
    %49 = vector.broadcast %48 : vector<1x128xf32> to vector<256x128xf32>
    %50 = arith.addf %47, %49 : vector<256x128xf32>
    %51 = vector.extract_strided_slice %50 {offsets = [0, 0], sizes = [256, 16], strides = [1, 1]} : vector<256x128xf32> to vector<256x16xf32>
    %52 = arith.extf %0 : vector<256x16xbf16> to vector<256x16xf32>
    %53 = arith.addf %51, %52 : vector<256x16xf32>
    %cst_74 = arith.constant 0.000000e+00 : f32
    %54 = vector.broadcast %cst_74 : f32 to vector<256x16xf32>
    %55 = arith.maximumf %53, %54 : vector<256x16xf32>
    %c0_75 = arith.constant 0 : index
    %c0_76 = arith.constant 0 : index
    %56 = vector.load %arg8[%c0_75, %c0_76] : memref<256x16xf32, #tpu.memory_space<vmem>>, vector<256x16xf32>
    tpu.vector_store %arg8[%c0_75, %c0_76], %55 {strides = array<i32>} : memref<256x16xf32, #tpu.memory_space<vmem>>, vector<256x16xf32>,
    return
  }
  func.func @transform_0(%arg0: i32) -> (i32, i32) {
    %c0_i32 = arith.constant 0 : i32
    %c0_i32_0 = arith.constant 0 : i32
    return %arg0, %c0_i32 : i32, i32
  }
  func.func @transform_1(%arg0: i32) -> (i32, i32) {
    %c0_i32 = arith.constant 0 : i32
    %c0_i32_0 = arith.constant 0 : i32
    %c0_i32_1 = arith.constant 0 : i32
    return %c0_i32, %c0_i32_0 : i32, i32
  }
  func.func @transform_2(%arg0: i32) -> (i32, i32) {
    %c0_i32 = arith.constant 0 : i32
    %c0_i32_0 = arith.constant 0 : i32
    %c0_i32_1 = arith.constant 0 : i32
    return %c0_i32, %c0_i32_0 : i32, i32
  }
  func.func @transform_3(%arg0: i32) -> (i32, i32) {
    %c0_i32 = arith.constant 0 : i32
    %c0_i32_0 = arith.constant 0 : i32
    %c0_i32_1 = arith.constant 0 : i32
    return %c0_i32, %c0_i32_0 : i32, i32
  }
  func.func @transform_4(%arg0: i32) -> (i32, i32) {
    %c0_i32 = arith.constant 0 : i32
    %c0_i32_0 = arith.constant 0 : i32
    %c0_i32_1 = arith.constant 0 : i32
    return %c0_i32, %c0_i32_0 : i32, i32
  }
  func.func @transform_5(%arg0: i32) -> (i32, i32) {
    %c0_i32 = arith.constant 0 : i32
    %c0_i32_0 = arith.constant 0 : i32
    %c0_i32_1 = arith.constant 0 : i32
    return %c0_i32, %c0_i32_0 : i32, i32
  }
  func.func @transform_6(%arg0: i32) -> (i32, i32) {
    %c0_i32 = arith.constant 0 : i32
    %c0_i32_0 = arith.constant 0 : i32
    %c0_i32_1 = arith.constant 0 : i32
    return %c0_i32, %c0_i32_0 : i32, i32
  }
  func.func @transform_7(%arg0: i32) -> (i32, i32) {
    %c0_i32 = arith.constant 0 : i32
    %c0_i32_0 = arith.constant 0 : i32
    return %arg0, %c0_i32 : i32, i32
  }
}

</mosaic_0001>

<bundles_post_ra>
// kernel: tpu_custom_call.1
= control target key start
LH: loop header
LB: loop body
LE: loop exit
PB: predicated region body
PF: predicated region fallthrough
CT: control target
= control target key end

     0   :  { %12 = vsyncpa [#allocation4], 0  ;;  %s8849_s24 = smov 0   ;;  %s10835_s0 = inlined_call_operand.vmem [shape: bf16[512,16], index: 0, kind: input, shape index: {}]   ;;  %s10836_s1 = inlined_call_operand.vmem [shape: bf16[16,128], index: 1, kind: input, shape index: {}]   ;;  %s10837_s2 = inlined_call_operand.vmem [shape: f32[1,128], index: 2, kind: input, shape index: {}]   ;;  %s10838_s3 = inlined_call_operand.hbm [shape: bf16[1152,128], index: 3, kind: input, shape index: {}]   ;;  %s10839_s4 = inlined_call_operand.vmem [shape: f32[1,128], index: 4, kind: input, shape index: {}]   ;;  %s10840_s5 = inlined_call_operand.vmem [shape: bf16[128,128], index: 5, kind: input, shape index: {}]   ;;  %s10841_s6 = inlined_call_operand.vmem [shape: f32[1,128], index: 6, kind: input, shape index: {}]   ;;  %s10842_s7 = inlined_call_operand.vmem [shape: f32[512,16], index: 7, kind: output, shape index: {}]  }
   0x1 LB: > { %s6781_s25 = sadd.s32 4294967295, %s8803_s24   ;;  %p6783_p0 = scmp.ge.s32.totalorder %s8803_s24, 1  ;;  %s8803_s24 = sphi %s8849_s24, %s18_s24  }
   0x2   : > { %p201_p1 = scmp.lt.s32.totalorder %s8803_s24, 3  ;;  %s8805_s26 = smov [#allocation3]  }
   0x3   : > { %s219_s27 = sshll.u32 %s8805_s26, 4  ;;  %p8863_p3 = scmp.eq.s32.totalorder %s6781_s25, 0  ;;  %s220_s27 = int_to_ptr.vmem [resolvable:$true] %s219_s27 }
   0x4   : > { %p8857_p2 = pnand %p6783_p0, %p201_p1  ;;  %s8765_s10 = scalar_lea.hbm %s10838_s3, 9216 }
   0x5   : > { %s10847_s29 = scalar_select %p8863_p3, 1, 0 }
   0x6   : > { %s10846_s28 = scalar_select %p8857_p2, 1, 0 }
   0x7   : > { %p8183_p4 = pneg %p8857_p2  ;;  %p8766_p6 = scmp.ne.s32.totalorder %s10838_s3, %s8765_s10 }
   0x8   : > { %p8772_p10 = scmp.lt.u32.totalorder %s8765_s10, %s10838_s3 }
   0x9   : > { %p8871_p5 = pnand %p8863_p3, %p8183_p4 }
   0xb   : > { %p8767_p7 = pneg %p8871_p5 }
   0xd   : > { %p8768_p8 = pnand %p8767_p7, %p8766_p6 }
   0xf   : > { %p8769_p9 = pneg %p8768_p8 }
  0x11   : > { %p8774_p11 = pnand %p8772_p10, %p8769_p9 }
  0x13   : > { %8777 = shalt.err (!%p8774_p11)
}
  0x14   : > { %s8778_s15 = scalar_lea.vmem %s220_s27, 9216  ;;  %p8786_p1 = scmp.lt.s32.totalorder %s220_s27, %s220_s27 }
  0x15   : > { %p8779_p12 = scmp.ne.s32.totalorder %s220_s27, %s8778_s15  ;;  %p8787_p4 = scmp.lt.s32.totalorder %s8778_s15, %s8778_s15 }
  0x17   : > { %p8781_p13 = pnand %p8779_p12, %p8767_p7  ;;  %p8788_p3 = por %p8787_p4, %p8786_p1 }
  0x19   : > { %p8782_p0 = pneg %p8781_p13 }
  0x1b   : > { %p8789_p2 = pnand %p8788_p3, %p8782_p0 }
  0x1d   : > { %8792 = shalt.err (!%p8789_p2)
}
  0x1e   : > { %s8806_s16 = smov 64   ;;  %s8807_s17 = smov 4  }
  0x1f   : > { %8186 = dma.hbm_to_vmem [thread:$0]  (!%p8871_p5), %s10838_s3, 9216, %s220_s27, [#allocation4], %s8806_s16, %s8806_s16, %s8807_s17  }
  0x20   : > { %p10849_p6 = scmp.ne.s32.totalorder %s10846_s28, 0 }
  0x22   : > { %253 = sbr.rel (%p10849_p6) target bundleno = 1211 (0x4bb), region = 48 }
  0x29   : > { %p10850_p8 = scmp.ne.s32.totalorder %s10847_s29, 0 }
  0x2b   : > { %8798 = dma.done.wait (%p10850_p8), [#allocation4], 9216  }
  0x2c   : > { %8800 = vsyncadd (%p10850_p8), [#allocation4], 4294958080  ;;  %s6788_s20 = sshll.u32 %s6781_s25, 5  ;;  %v8201_v0 = vld [vmem:[%s10836_s1] sm:$0xff]   ;;  %vm425_vm0 = vcmask 130048   ;;  %v8220_v19 = vld [vmem:[#allocation3 + $0xc8] sm:$0xff]  }
  0x2d   : > { %p286_p2 = scmp.lt.s32.totalorder %s6788_s20, 63  ;;  %8047 = vmatprep.subr.bf16.mxu0 %v8201_v0  ;;  %8177 = vmatprep.subr.bf16.mxu1 %v8201_v0  ;;  %v8218_v11 = vld [vmem:[#allocation3 + $0xc0] sm:$0xff]   ;;  %v8221_v20 = vld [vmem:[#allocation3 + $0x88] sm:$0xff]   ;;  %vm677_vm1 = vcmask 1040384   ;;  %vm678_vm2 = vsmask.f32 256 }
  0x2e   : > { %8048 = vmatpush3.bf16.msra.mxu0 %v8201_v0  ;;  %8178 = vmatpush3.bf16.msra.mxu1 %v8201_v0  ;;  %v8219_v12 = vld [vmem:[#allocation3 + $0x80] sm:$0xff]   ;;  %vm776_vm3 = vcmask 1044484   ;;  %vm777_vm4 = vsmask.f32 7954  ;;  %vm8942_vm5 = vmand %vm677_vm1, %vm678_vm2  ;;  %v686_v22 = vld [vmem:[#allocation2 + $0x18] sm:$0x1] }
  0x2f   : > { %s11135_s20 = smov (!%p286_p2, %s6788_s20), 63  ;;  %7663 = vmatprep.subr.bf16.mxu0 %v8218_v11  ;;  %v785_v23 = vld [vmem:[#allocation2 + $0x18] sm:$0x10]  ;;  %v687_v24 = vsel %vm8942_vm5, 0, %v686_v22  ;;  %vm8948_vm6 = vmand %vm776_vm3, %vm777_vm4  ;;  %v680_v26 = vld [vmem:[#allocation2 + $0x8] sm:$0x1] }
  0x30   : > { %s6789_s21 = sshll.u32 %s11135_s20, 2  ;;  %v779_v27 = vld [vmem:[#allocation2 + $0x8] sm:$0x10]  ;;  %688 = vst [vmem:[#allocation2 + $0x18] sm:$0x1] %v687_v24  ;;  %v786_v28 = vsel %vm8948_vm6, 0, %v785_v23 }
  0x31   : > { %s8905_s26 = scalar_lea.vmem %s10835_s0, %s6789_s21  ;;  %v681_v29 = vsel %vm8942_vm5, 0, %v680_v26  ;;  %v780_v30 = vsel %vm8948_vm6, 0, %v779_v27  ;;  %v689_v31 = vld [vmem:[#allocation2 + $0x20] sm:$0x1]  ;;  %787 = vst [vmem:[#allocation2 + $0x18] sm:$0x10] %v786_v28 }
  0x32   : > { %v298_v1 = vld [vmem:[%s8905_s26] sm:$0xff]   ;;  %v300_v2 = vld [vmem:[%s8905_s26 + $0x8] sm:$0xff]   ;;  %v302_v3 = vld [vmem:[%s8905_s26 + $0x10] sm:$0xff]   ;;  %682 = vst [vmem:[#allocation2 + $0x8] sm:$0x1] %v681_v29  ;;  %v690_v33 = vsel %vm8942_vm5, 0, %v689_v31 }
  0x33   : > { %v314_v4 = vld [vmem:[%s8905_s26 + $0x40] sm:$0xff]   ;;  %8049 = vmatprep.mubr.msk.bf16.mxu0 %vm425_vm0, %v298_v1  ;;  %v316_v5 = vld [vmem:[%s8905_s26 + $0x48] sm:$0xff]   ;;  %v318_v6 = vld [vmem:[%s8905_s26 + $0x50] sm:$0xff]   ;;  %781 = vst [vmem:[#allocation2 + $0x8] sm:$0x10] %v780_v30  ;;  %vm2129_vm7 = vcmask 1042432  }
  0x34   : > { %v304_v7 = vld [vmem:[%s8905_s26 + $0x18] sm:$0xff]   ;;  %8050 = vmatmul.mubr.msk.bf16.vlgmr.msra.gmra.mrb[0].mxu0 %vm425_vm0, %v300_v2  ;;  %v306_v8 = vld [vmem:[%s8905_s26 + $0x20] sm:$0xff]   ;;  %8065 = vmatprep.mubr.msk.bf16.mxu1 %vm425_vm0, %v314_v4  ;;  %v308_v13 = vld [vmem:[%s8905_s26 + $0x28] sm:$0xff]   ;;  %691 = vst [vmem:[#allocation2 + $0x20] sm:$0x1] %v690_v33  ;;  %vm2130_vm8 = vcmask 1046532  }
  0x35   : > { %v320_v9 = vld [vmem:[%s8905_s26 + $0x58] sm:$0xff]   ;;  %8053 = vmatprep.mubr.msk.bf16.mxu0 %vm425_vm0, %v302_v3  ;;  %8066 = vmatmul.mubr.msk.bf16.vlgmr.msra.gmra.mrb[0].mxu1 %vm425_vm0, %v316_v5  ;;  %v322_v10 = vld [vmem:[%s8905_s26 + $0x60] sm:$0xff]   ;;  %v310_v14 = vld [vmem:[%s8905_s26 + $0x30] sm:$0xff]   ;;  %vm1486_vm9 = vsmask.f32 3328  ;;  %vm1163_vm13 = vcmask 1044480  }
  0x36   : > { %8069 = vmatprep.mubr.msk.bf16.mxu1 %vm425_vm0, %v318_v6  ;;  %7664 = vmatpush3.bf16.msra.mxu0 %v8219_v12  ;;  %v324_v15 = vld [vmem:[%s8905_s26 + $0x68] sm:$0xff]   ;;  %v326_v16 = vld [vmem:[%s8905_s26 + $0x70] sm:$0xff]   ;;  %v312_v17 = vld [vmem:[%s8905_s26 + $0x38] sm:$0xff]   ;;  %vm1487_vm10 = vsmask.f32 7440  ;;  %s6791_s11 = sshll.u32 %s11135_s20, 3 }
  0x37   : > { %v328_v18 = vld [vmem:[%s8905_s26 + $0x78] sm:$0xff]   ;;  %7665 = vmatprep.subr.bf16.mxu0 %v8220_v19  ;;  %v8222_v32 = vld [vmem:[#allocation3 + $0x40] sm:$0xff]   ;;  %v683_v35 = vld [vmem:[#allocation2 + $0x10] sm:$0x1]  ;;  %vm1164_vm14 = vsmask.f32 4354  ;;  %s10723_s14 = scalar_lea.vmem %s10842_s7, %s6791_s11 }
  0x38   : > { %v788_v34 = vld [vmem:[#allocation2 + $0x20] sm:$0x10]  ;;  %v684_v38 = vsel %vm8942_vm5, 0, %v683_v35  ;;  %v782_v39 = vld [vmem:[#allocation2 + $0x10] sm:$0x10]  ;;  %7551 = vmatprep.subr.bf16.mxu1 %v8222_v32  ;;  %v8226_v43 = vld [vmem:[#allocation3 + $0x48] sm:$0xff]  }
  0x39   : > { %v8223_v36 = vld [vmem:[#allocation3] sm:$0xff]   ;;  %v789_v37 = vsel %vm8948_vm6, 0, %v788_v34  ;;  %v8224_v40 = vld [vmem:[#allocation3 + $0xd0] sm:$0xff]   ;;  %685 = vst [vmem:[#allocation2 + $0x10] sm:$0x1] %v684_v38  ;;  %v783_v42 = vsel %vm8948_vm6, 0, %v782_v39  ;;  %vm9062_vm11 = vmor %vm2129_vm7, %vm2130_vm8 }
  0x3a   : > { %7666 = vmatpush3.bf16.msra.mxu0 %v8221_v20  ;;  %v8225_v41 = vld [vmem:[#allocation3 + $0x90] sm:$0xff]   ;;  %790 = vst [vmem:[#allocation2 + $0x20] sm:$0x10] %v789_v37  ;;  %7552 = vmatpush3.bf16.msra.mxu1 %v8223_v36  ;;  %v8227_v44 = vld [vmem:[#allocation3 + $0x8] sm:$0xff]   ;;  %v8228_v45 = vld [vmem:[#allocation3 + $0xd8] sm:$0xff]  }
  0x3b   : > { %784 = vst [vmem:[#allocation2 + $0x10] sm:$0x10] %v783_v42  ;;  %7667 = vmatprep.subr.bf16.mxu0 %v8224_v40  ;;  %7553 = vmatprep.subr.bf16.mxu1 %v8226_v43  ;;  %v8229_v46 = vld [vmem:[#allocation3 + $0x98] sm:$0xff]   ;;  %v8230_v47 = vld [vmem:[#allocation3 + $0x50] sm:$0xff]   ;;  %v692_v48 = vld [vmem:[#allocation2 + $0x28] sm:$0x1] }
  0x3c   : > { %8054 = vmatmul.mubr.msk.bf16.gmra.mrb[4].mxu0 %vm425_vm0, %v304_v7  ;;  %v791_v49 = vld [vmem:[#allocation2 + $0x28] sm:$0x10]  ;;  %v698_v50 = vld [vmem:[#allocation2 + $0x38] sm:$0x1]  ;;  %v797_v52 = vld [vmem:[#allocation2 + $0x38] sm:$0x10] }
  0x3d   : > { %8057 = vmatprep.mubr.msk.bf16.mxu0 %vm425_vm0, %v306_v8  ;;  %8070 = vmatmul.mubr.msk.bf16.gmra.mrb[4].mxu1 %vm425_vm0, %v320_v9  ;;  %v699_v51 = vsel %vm8942_vm5, 0, %v698_v50  ;;  %v693_v53 = vsel %vm8942_vm5, 0, %v692_v48  ;;  %v792_v54 = vsel %vm8948_vm6, 0, %v791_v49  ;;  %v8231_v55 = vld [vmem:[#allocation3 + $0x10] sm:$0xff]   ;;  %v798_v56 = vsel %vm8948_vm6, 0, %v797_v52  ;;  %v8232_v58 = vld [vmem:[#allocation3 + $0xe0] sm:$0xff]   ;;  %vm9070_vm12 = vmor %vm1486_vm9, %vm1487_vm10 }
  0x3e   : > { %8073 = vmatprep.mubr.msk.bf16.mxu1 %vm425_vm0, %v322_v10  ;;  %7668 = vmatpush3.bf16.msra.mxu0 %v8225_v41  ;;  %700 = vst [vmem:[#allocation2 + $0x38] sm:$0x1] %v699_v51  ;;  %694 = vst [vmem:[#allocation2 + $0x28] sm:$0x1] %v693_v53  ;;  %v701_v57 = vld [vmem:[#allocation2 + $0x40] sm:$0x1] }
  0x3f   : > { %7669 = vmatprep.subr.bf16.mxu0 %v8228_v45  ;;  %7554 = vmatpush3.bf16.msra.mxu1 %v8227_v44  ;;  %793 = vst [vmem:[#allocation2 + $0x28] sm:$0x10] %v792_v54  ;;  %799 = vst [vmem:[#allocation2 + $0x38] sm:$0x10] %v798_v56  ;;  %v702_v59 = vsel %vm8942_vm5, 0, %v701_v57  ;;  %v8233_v61 = vld [vmem:[#allocation3 + $0xa0] sm:$0xff]  }
  0x40   : > { %7555 = vmatprep.subr.bf16.mxu1 %v8230_v47  ;;  %v800_v60 = vld [vmem:[#allocation2 + $0x40] sm:$0x10]  ;;  %703 = vst [vmem:[#allocation2 + $0x40] sm:$0x1] %v702_v59  ;;  %v695_v63 = vld [vmem:[#allocation2 + $0x30] sm:$0x1]  ;;  %vm9140_vm15 = vmand %vm1163_vm13, %vm1164_vm14 }
  0x41   : > { %v801_v62 = vsel %vm8948_vm6, 0, %v800_v60  ;;  %v794_v0 = vld [vmem:[#allocation2 + $0x30] sm:$0x10]  ;;  %v8234_v1 = vld [vmem:[#allocation3 + $0x58] sm:$0xff]   ;;  %v696_v2 = vsel %vm8942_vm5, 0, %v695_v63  ;;  %v8236_v5 = vld [vmem:[#allocation3 + $0xe8] sm:$0xff]  }
  0x42   : > { %7670 = vmatpush3.bf16.msra.mxu0 %v8229_v46  ;;  %802 = vst [vmem:[#allocation2 + $0x40] sm:$0x10] %v801_v62  ;;  %v795_v3 = vsel %vm8948_vm6, 0, %v794_v0  ;;  %v8235_v4 = vld [vmem:[#allocation3 + $0x18] sm:$0xff]   ;;  %v8237_v6 = vld [vmem:[#allocation3 + $0xa8] sm:$0xff]   ;;  %v8238_v7 = vld [vmem:[#allocation3 + $0x60] sm:$0xff]  }
  0x43   : > { %7556 = vmatpush3.bf16.msra.mxu1 %v8231_v55  ;;  %7671 = vmatprep.subr.bf16.mxu0 %v8232_v58  ;;  %697 = vst [vmem:[#allocation2 + $0x30] sm:$0x1] %v696_v2  ;;  %796 = vst [vmem:[#allocation2 + $0x30] sm:$0x10] %v795_v3  ;;  %v8808_v8 = vmov 0   ;;  %v8239_v9 = vld [vmem:[#allocation3 + $0x20] sm:$0xff]  }
  0x44   : > { %8058 = vmatmul.mubr.msk.bf16.gmra.mrb[8].mxu0 %vm425_vm0, %v308_v13  ;;  %7557 = vmatprep.subr.bf16.mxu1 %v8234_v1  ;;  %667 = vst [vmem:[#allocation2] sm:$0xff] %v8808_v8  ;;  %668 = vst [vmem:[#allocation2 + $0x50] sm:$0xff] %v8808_v8  ;;  %v8240_v10 = vld [vmem:[#allocation3 + $0xf0] sm:$0xff]   ;;  %v8242_v12 = vld [vmem:[#allocation3 + $0x68] sm:$0xff]  }
  0x45   : > { %8061 = vmatprep.mubr.msk.bf16.mxu0 %vm425_vm0, %v310_v14  ;;  %8074 = vmatmul.mubr.msk.bf16.gmra.mrb[8].mxu1 %vm425_vm0, %v324_v15  ;;  %669 = vst [vmem:[#allocation2 + $0xa0] sm:$0xff] %v8808_v8  ;;  %670 = vst [vmem:[#allocation2 + $0xf0] sm:$0xff] %v8808_v8  ;;  %v8241_v11 = vld [vmem:[#allocation3 + $0xb0] sm:$0xff]   ;;  %v8243_v13 = vld [vmem:[#allocation3 + $0x28] sm:$0xff]  }
  0x46   : > { %8077 = vmatprep.mubr.msk.bf16.mxu1 %vm425_vm0, %v326_v16  ;;  %7672 = vmatpush3.bf16.msra.mxu0 %v8233_v61  ;;  %672 = vst [vmem:[#allocation2 + $0x48] sm:$0xff] %v8808_v8  ;;  %673 = vst [vmem:[#allocation2 + $0x98] sm:$0xff] %v8808_v8  ;;  %v8244_v14 = vld [vmem:[#allocation3 + $0xf8] sm:$0xff]   ;;  %v710_v15 = vld [vmem:[#allocation2 + $0x68] sm:$0x1] }
  0x47   : > { %674 = vst [vmem:[#allocation2 + $0xe8] sm:$0xff] %v8808_v8  ;;  %675 = vst [vmem:[#allocation2 + $0x138] sm:$0xff] %v8808_v8  ;;  %7558 = vmatpush3.bf16.msra.mxu1 %v8235_v4  ;;  %7673 = vmatprep.subr.bf16.mxu0 %v8236_v5  ;;  %v809_v16 = vld [vmem:[#allocation2 + $0x68] sm:$0x10]  ;;  %v8245_v19 = vld [vmem:[#allocation3 + $0xb8] sm:$0xff]  }
  0x48   : > { %7559 = vmatprep.subr.bf16.mxu1 %v8238_v7  ;;  %v8247_v20 = vld [vmem:[#allocation3 + $0x70] sm:$0xff]   ;;  %v704_v22 = vld [vmem:[#allocation2 + $0x58] sm:$0x1]  ;;  %v803_v23 = vld [vmem:[#allocation2 + $0x58] sm:$0x10] }
  0x49   : > { %v713_v24 = vld [vmem:[#allocation2 + $0x70] sm:$0x1]  ;;  %v705_v26 = vsel %vm8942_vm5, 0, %v704_v22  ;;  %v804_v27 = vsel %vm8948_vm6, 0, %v803_v23  ;;  %v812_v29 = vld [vmem:[#allocation2 + $0x70] sm:$0x10] }
  0x4a   : > { %7674 = vmatpush3.bf16.msra.mxu0 %v8237_v6  ;;  %v714_v28 = vsel %vm8942_vm5, 0, %v713_v24  ;;  %v8248_v30 = vld [vmem:[#allocation3 + $0x30] sm:$0xff]   ;;  %706 = vst [vmem:[#allocation2 + $0x58] sm:$0x1] %v705_v26  ;;  %805 = vst [vmem:[#allocation2 + $0x58] sm:$0x10] %v804_v27 }
  0x4b   : > { %7675 = vmatprep.subr.bf16.mxu0 %v8240_v10  ;;  %7560 = vmatpush3.bf16.msra.mxu1 %v8239_v9  ;;  %715 = vst [vmem:[#allocation2 + $0x70] sm:$0x1] %v714_v28  ;;  %v813_v31 = vsel %vm8948_vm6, 0, %v812_v29  ;;  %v707_v32 = vld [vmem:[#allocation2 + $0x60] sm:$0x1]  ;;  %v8254_v44 = vld [vmem:[#allocation3 + $0x78] sm:$0xff]  }
  0x4c   : > { %8062 = vmatmul.mubr.msk.bf16.gmra.mrb[12].mxu0 %vm425_vm0, %v312_v17  ;;  %7561 = vmatprep.subr.bf16.mxu1 %v8242_v12  ;;  %v711_v17 = vsel %vm8942_vm5, 0, %v710_v15  ;;  %v806_v33 = vld [vmem:[#allocation2 + $0x60] sm:$0x10]  ;;  %814 = vst [vmem:[#allocation2 + $0x70] sm:$0x10] %v813_v31  ;;  %v708_v34 = vsel %vm8942_vm5, 0, %v707_v32 }
  0x4d   : > { %8078 = vmatmul.mubr.msk.bf16.gmra.mrb[12].mxu1 %vm425_vm0, %v328_v18  ;;  %v810_v18 = vsel %vm8948_vm6, 0, %v809_v16  ;;  %712 = vst [vmem:[#allocation2 + $0x68] sm:$0x1] %v711_v17  ;;  %v807_v35 = vsel %vm8948_vm6, 0, %v806_v33  ;;  %v716_v36 = vld [vmem:[#allocation2 + $0x78] sm:$0x1] }
  0x4e   : > { %7676 = vmatpush3.bf16.msra.mxu0 %v8241_v11  ;;  %811 = vst [vmem:[#allocation2 + $0x68] sm:$0x10] %v810_v18  ;;  %v815_v37 = vld [vmem:[#allocation2 + $0x78] sm:$0x10]  ;;  %709 = vst [vmem:[#allocation2 + $0x60] sm:$0x1] %v708_v34 }
  0x4f   : > { %7677 = vmatprep.subr.bf16.mxu0 %v8244_v14  ;;  %7562 = vmatpush3.bf16.msra.mxu1 %v8243_v13  ;;  %808 = vst [vmem:[#allocation2 + $0x60] sm:$0x10] %v807_v35  ;;  %v722_v38 = vld [vmem:[#allocation2 + $0x88] sm:$0x1]  ;;  %v821_v39 = vld [vmem:[#allocation2 + $0x88] sm:$0x10] }
  0x50   : > { %7563 = vmatprep.subr.bf16.mxu1 %v8247_v20  ;;  %v717_v40 = vsel %vm8942_vm5, 0, %v716_v36  ;;  %v816_v41 = vsel %vm8948_vm6, 0, %v815_v37  ;;  %v723_v42 = vsel %vm8942_vm5, 0, %v722_v38  ;;  %v822_v43 = vsel %vm8948_vm6, 0, %v821_v39  ;;  %v8255_v45 = vld [vmem:[#allocation3 + $0x38] sm:$0xff]   ;;  %v8260_v46 = vld [vmem:[#allocation3 + $0x140] sm:$0xff]  }
  0x51   : > { %718 = vst [vmem:[#allocation2 + $0x78] sm:$0x1] %v717_v40  ;;  %817 = vst [vmem:[#allocation2 + $0x78] sm:$0x10] %v816_v41  ;;  %v725_v47 = vld [vmem:[#allocation2 + $0x90] sm:$0x1] }
  0x52   : > { %7678 = vmatpush3.bf16.msra.mxu0 %v8245_v19  ;;  %724 = vst [vmem:[#allocation2 + $0x88] sm:$0x1] %v723_v42  ;;  %823 = vst [vmem:[#allocation2 + $0x88] sm:$0x10] %v822_v43  ;;  %v824_v48 = vld [vmem:[#allocation2 + $0x90] sm:$0x10] }
  0x53   : > { %7564 = vmatpush3.bf16.msra.mxu1 %v8248_v30  ;;  %v726_v49 = vsel %vm8942_vm5, 0, %v725_v47  ;;  %v825_v50 = vsel %vm8948_vm6, 0, %v824_v48  ;;  %v719_v51 = vld [vmem:[#allocation2 + $0x80] sm:$0x1]  ;;  %v818_v52 = vld [vmem:[#allocation2 + $0x80] sm:$0x10] }
  0x54   : > { %7565 = vmatprep.subr.bf16.mxu1 %v8254_v44  ;;  %727 = vst [vmem:[#allocation2 + $0x90] sm:$0x1] %v726_v49  ;;  %826 = vst [vmem:[#allocation2 + $0x90] sm:$0x10] %v825_v50  ;;  %v720_v53 = vsel %vm8942_vm5, 0, %v719_v51  ;;  %v819_v54 = vsel %vm8948_vm6, 0, %v818_v52 }
  0x55   : > { %721 = vst [vmem:[#allocation2 + $0x80] sm:$0x1] %v720_v53  ;;  %820 = vst [vmem:[#allocation2 + $0x80] sm:$0x10] %v819_v54  ;;  %v734_v55 = vld [vmem:[#allocation2 + $0xb8] sm:$0x1] }
  0x56   : > { %v833_v56 = vld [vmem:[#allocation2 + $0xb8] sm:$0x10]  ;;  %v735_v57 = vsel %vm8942_vm5, 0, %v734_v55  ;;  %v728_v59 = vld [vmem:[#allocation2 + $0xa8] sm:$0x1] }
  0x57   : > { %7566 = vmatpush3.bf16.msra.mxu1 %v8255_v45  ;;  %v834_v58 = vsel %vm8948_vm6, 0, %v833_v56  ;;  %736 = vst [vmem:[#allocation2 + $0xb8] sm:$0x1] %v735_v57  ;;  %v729_v60 = vsel %vm8942_vm5, 0, %v728_v59  ;;  %v827_v61 = vld [vmem:[#allocation2 + $0xa8] sm:$0x10] }
  0x58   : > { %7775 = vmatprep.subr.bf16.mxu1 %v8260_v46  ;;  %835 = vst [vmem:[#allocation2 + $0xb8] sm:$0x10] %v834_v58  ;;  %730 = vst [vmem:[#allocation2 + $0xa8] sm:$0x1] %v729_v60  ;;  %v828_v62 = vsel %vm8948_vm6, 0, %v827_v61 }
  0x59   : > { %829 = vst [vmem:[#allocation2 + $0xa8] sm:$0x10] %v828_v62  ;;  %v737_v63 = vld [vmem:[#allocation2 + $0xc0] sm:$0x1]  ;;  %v836_v0 = vld [vmem:[#allocation2 + $0xc0] sm:$0x10] }
  0x5a   : > { %v738_v1 = vsel %vm8942_vm5, 0, %v737_v63  ;;  %v837_v2 = vsel %vm8948_vm6, 0, %v836_v0  ;;  %v731_v3 = vld [vmem:[#allocation2 + $0xb0] sm:$0x1]  ;;  %v830_v4 = vld [vmem:[#allocation2 + $0xb0] sm:$0x10] }
  0x5b   : > { %739 = vst [vmem:[#allocation2 + $0xc0] sm:$0x1] %v738_v1  ;;  %838 = vst [vmem:[#allocation2 + $0xc0] sm:$0x10] %v837_v2  ;;  %v732_v5 = vsel %vm8942_vm5, 0, %v731_v3  ;;  %v831_v6 = vsel %vm8948_vm6, 0, %v830_v4 }
  0x5c   : > { %733 = vst [vmem:[#allocation2 + $0xb0] sm:$0x1] %v732_v5  ;;  %832 = vst [vmem:[#allocation2 + $0xb0] sm:$0x10] %v831_v6  ;;  %v746_v7 = vld [vmem:[#allocation2 + $0xd8] sm:$0x1] }
  0x5d   : > { %v845_v8 = vld [vmem:[#allocation2 + $0xd8] sm:$0x10]  ;;  %v747_v9 = vsel %vm8942_vm5, 0, %v746_v7  ;;  %v740_v11 = vld [vmem:[#allocation2 + $0xc8] sm:$0x1] }
  0x5e   : > { %v846_v10 = vsel %vm8948_vm6, 0, %v845_v8  ;;  %748 = vst [vmem:[#allocation2 + $0xd8] sm:$0x1] %v747_v9  ;;  %v839_v12 = vld [vmem:[#allocation2 + $0xc8] sm:$0x10]  ;;  %v741_v13 = vsel %vm8942_vm5, 0, %v740_v11 }
  0x5f   : > { %847 = vst [vmem:[#allocation2 + $0xd8] sm:$0x10] %v846_v10  ;;  %v840_v14 = vsel %vm8948_vm6, 0, %v839_v12  ;;  %742 = vst [vmem:[#allocation2 + $0xc8] sm:$0x1] %v741_v13 }
  0x60   : > { %841 = vst [vmem:[#allocation2 + $0xc8] sm:$0x10] %v840_v14  ;;  %v749_v15 = vld [vmem:[#allocation2 + $0xe0] sm:$0x1]  ;;  %v848_v16 = vld [vmem:[#allocation2 + $0xe0] sm:$0x10] }
  0x61   : > { %v750_v17 = vsel %vm8942_vm5, 0, %v749_v15  ;;  %v849_v18 = vsel %vm8948_vm6, 0, %v848_v16  ;;  %v743_v19 = vld [vmem:[#allocation2 + $0xd0] sm:$0x1]  ;;  %v842_v20 = vld [vmem:[#allocation2 + $0xd0] sm:$0x10] }
  0x62   : > { %751 = vst [vmem:[#allocation2 + $0xe0] sm:$0x1] %v750_v17  ;;  %850 = vst [vmem:[#allocation2 + $0xe0] sm:$0x10] %v849_v18  ;;  %v744_v22 = vsel %vm8942_vm5, 0, %v743_v19  ;;  %v843_v23 = vsel %vm8948_vm6, 0, %v842_v20 }
  0x63   : > { %745 = vst [vmem:[#allocation2 + $0xd0] sm:$0x1] %v744_v22  ;;  %844 = vst [vmem:[#allocation2 + $0xd0] sm:$0x10] %v843_v23  ;;  %v1294_v24 = vld [vmem:[#allocation2] sm:$0x1f] }
  0x64   : > { %v1302_v26 = vld [vmem:[#allocation2 + $0x50] sm:$0x1f]  ;;  %v758_v27 = vld [vmem:[#allocation2 + $0x108] sm:$0x1]  ;;  %v857_v28 = vld [vmem:[#allocation2 + $0x108] sm:$0x10]  ;;  %v6826_v29 = vcombine.low %v1294_v24, %v1294_v24  ;;  %v6827_v42 = vcombine.high %v1294_v24, %v1294_v24 }
  0x65   : > { %v759_v30 = vsel %vm8942_vm5, 0, %v758_v27  ;;  %v858_v31 = vsel %vm8948_vm6, 0, %v857_v28  ;;  %v6842_v32 = vcombine.low %v1302_v26, %v1302_v26  ;;  %v752_v37 = vld [vmem:[#allocation2 + $0xf8] sm:$0x1]  ;;  %v851_v38 = vld [vmem:[#allocation2 + $0xf8] sm:$0x10]  ;;  %v6843_v45 = vcombine.high %v1302_v26, %v1302_v26 }
  0x66   : > { %760 = vst [vmem:[#allocation2 + $0x108] sm:$0x1] %v759_v30  ;;  %859 = vst [vmem:[#allocation2 + $0x108] sm:$0x10] %v858_v31  ;;  %v1490_v33 = vshrl.u32 %v6826_v29, 16  ;;  %v1493_v34 = vshll.u32 %v6826_v29, 16 }
  0x67   : > { %v1602_v35 = vshrl.u32 %v6842_v32, 16  ;;  %v1605_v36 = vshll.u32 %v6842_v32, 16  ;;  %v753_v39 = vsel %vm8942_vm5, 0, %v752_v37  ;;  %v852_v40 = vsel %vm8948_vm6, 0, %v851_v38  ;;  %v1937_v41 = vld [vmem:[#allocation2] sm:$0x1e] }
  0x68   : > { %v1492_v43 = vrot.slane %v1490_v33, 4  ;;  %v1495_v44 = vrot.slane %v1493_v34, 5  ;;  %754 = vst [vmem:[#allocation2 + $0xf8] sm:$0x1] %v753_v39  ;;  %853 = vst [vmem:[#allocation2 + $0xf8] sm:$0x10] %v852_v40  ;;  %v6890_v51 = vcombine.low %v1937_v41, %v1937_v41  ;;  %v6891_v52 = vcombine.high %v1937_v41, %v1937_v41 }
  0x69   : > { %v1604_v46 = vrot.slane %v1602_v35, 4  ;;  %v1607_v47 = vrot.slane %v1605_v36, 5  ;;  %v1945_v48 = vld [vmem:[#allocation2 + $0x50] sm:$0x1e]  ;;  %v761_v49 = vld [vmem:[#allocation2 + $0x110] sm:$0x1] }
  0x6a   : > { %v860_v50 = vld [vmem:[#allocation2 + $0x110] sm:$0x10]  ;;  %v762_v53 = vsel %vm8942_vm5, 0, %v761_v49  ;;  %v1496_v55 = vor.u32 %v1495_v44, %v1492_v43  ;;  %v1499_v56 = vshll.u32 %v6827_v42, 16  ;;  %v6906_v57 = vcombine.low %v1945_v48, %v1945_v48  ;;  %v9074_v7 = vld [vmem:[#allocation2 + $0xa0] sm:$0x1f] }
  0x6b   : > { %v861_v54 = vsel %vm8948_vm6, 0, %v860_v50  ;;  %v6907_v58 = vcombine.high %v1945_v48, %v1945_v48  ;;  %763 = vst [vmem:[#allocation2 + $0x110] sm:$0x1] %v762_v53  ;;  %v1608_v59 = vor.u32 %v1607_v47, %v1604_v46  ;;  %v1611_v60 = vshll.u32 %v6843_v45, 16  ;;  %v9079_v8 = vld [vmem:[%s10837_s2] ss:$0 sm:$0xff] }
  0x6c   : > { %862 = vst [vmem:[#allocation2 + $0x110] sm:$0x10] %v861_v54  ;;  %v9058_v61 = vrot.slane %v6890_v51, 9  ;;  %v9060_v62 = vrot.slane %v6891_v52, 5  ;;  %v1497_v0 = vrot.slane %v1496_v55, 4  ;;  %v1501_v1 = vrot.slane %v1499_v56, 5 }
  0x6d   : > { %v9066_v2 = vrot.slane %v6906_v57, 9  ;;  %v9068_v3 = vrot.slane %v6907_v58, 5  ;;  %v1609_v5 = vrot.slane %v1608_v59, 4  ;;  %v1613_v6 = vrot.slane %v1611_v60, 5  ;;  %v755_v10 = vld [vmem:[#allocation2 + $0x100] sm:$0x1] }
  0x6e   : > { %v2135_v9 = vsel %vm9062_vm11, %v9058_v61, %v9060_v62  ;;  %v854_v11 = vld [vmem:[#allocation2 + $0x100] sm:$0x10]  ;;  %v6858_v12 = vcombine.low %v9074_v7, %v9074_v7  ;;  %v9089_v13 = vsel %vm9070_vm12, %v1497_v0, %v1501_v1  ;;  %v756_v15 = vsel %vm8942_vm5, 0, %v755_v10  ;;  %v770_v17 = vld [vmem:[#allocation2 + $0x128] sm:$0x1] }
  0x6f   : > { %v2167_v14 = vsel %vm9062_vm11, %v9066_v2, %v9068_v3  ;;  %v855_v16 = vsel %vm8948_vm6, 0, %v854_v11  ;;  %v869_v18 = vld [vmem:[#allocation2 + $0x128] sm:$0x10]  ;;  %v9101_v20 = vsel %vm9070_vm12, %v1609_v5, %v1613_v6  ;;  %757 = vst [vmem:[#allocation2 + $0x100] sm:$0x1] %v756_v15  ;;  %v771_v22 = vsel %vm8942_vm5, 0, %v770_v17 }
  0x70   : > { %856 = vst [vmem:[#allocation2 + $0x100] sm:$0x10] %v855_v16  ;;  %v870_v23 = vsel %vm8948_vm6, 0, %v869_v18  ;;  %v764_v24 = vld [vmem:[#allocation2 + $0x118] sm:$0x1]  ;;  %v1714_v26 = vshrl.u32 %v6858_v12, 16 }
  0x71   : > { %772 = vst [vmem:[#allocation2 + $0x128] sm:$0x1] %v771_v22  ;;  %871 = vst [vmem:[#allocation2 + $0x128] sm:$0x10] %v870_v23  ;;  %v765_v30 = vsel %vm8942_vm5, 0, %v764_v24  ;;  %v1717_v33 = vshll.u32 %v6858_v12, 16 }
  0x72   : > { %v863_v31 = vld [vmem:[#allocation2 + $0x118] sm:$0x10]  ;;  %766 = vst [vmem:[#allocation2 + $0x118] sm:$0x1] %v765_v30  ;;  %v9116_v39 = vrot.slane %v1714_v26, 4  ;;  %v8348_v5 = vld [vmem:[#allocation3 + $0x1c0] sm:$0xff]  }
  0x73   : > { %v864_v38 = vsel %vm8948_vm6, 0, %v863_v31  ;;  %v9120_v45 = vrot.slane %v1717_v33, 5  ;;  %v1172_v6 = vld [vmem:[#allocation2 + $0x18] sm:$0x1f]  ;;  %7887 = vmatprep.subr.bf16.mxu0 %v8348_v5 }
  0x74   : > { %865 = vst [vmem:[#allocation2 + $0x118] sm:$0x10] %v864_v38 }
 0x107   : > { %v8051_v19 = vpop.f32.mrb[0].mxu0 }
 0x108   : > { %v517_v27 = vadd.f32 %v8051_v19, %v9079_v8  ;;  %v508_v28 = vpop.f32.mrb[1].mxu0  ;;  %v8067_v29 = vpop.f32.mrb[0].mxu1 }
 0x109   : > { %v509_v34 = vadd.f32 %v9079_v8, %v508_v28  ;;  %v8052_v35 = vpop.f32.mrb[2].mxu0  ;;  %v581_v36 = vadd.f32 %v8067_v29, %v9079_v8  ;;  %v572_v37 = vpop.f32.mrb[1].mxu1 }
 0x10a   : > { %v637_v40 = vmax.f32 %v517_v27, 0.0  ;;  %v520_v41 = vadd.f32 %v8052_v35, %v9079_v8  ;;  %v511_v42 = vpop.f32.mrb[3].mxu0  ;;  %v573_v43 = vadd.f32 %v9079_v8, %v572_v37  ;;  %v8068_v44 = vpop.f32.mrb[2].mxu1  ;;  %v1166_v35 = vld [vmem:[#allocation2 + $0x8] sm:$0x1f] }
 0x10b   : > { %v635_v46 = vmax.f32 %v509_v34, 0.0  ;;  %v512_v47 = vadd.f32 %v9079_v8, %v511_v42  ;;  %v653_v48 = vmax.f32 %v581_v36, 0.0  ;;  %v9124_v49 = vadd.f32 %v8068_v44, %v9079_v8  ;;  %v575_v50 = vpop.f32.mrb[3].mxu1 }
 0x10c   : > { %v877_v51 = vpack.c.bf16 %v637_v40, %v637_v40  ;;  %v638_v52 = vmax.f32 %v520_v41, 0.0  ;;  %v651_v53 = vmax.f32 %v573_v43, 0.0  ;;  %v9127_v54 = vadd.f32 %v9079_v8, %v575_v50  ;;  %v1175_v43 = vld [vmem:[#allocation2 + $0x20] sm:$0x1f] }
 0x10d   : > { %v875_v55 = vpack.c.bf16 %v635_v46, %v635_v46  ;;  %v636_v56 = vmax.f32 %v512_v47, 0.0  ;;  %v9129_v57 = vpack.c.bf16 %v653_v48, %v653_v48  ;;  %v654_v58 = vmax.f32 %v9124_v49, 0.0  ;;  %v8424_v49 = vld [vmem:[#allocation3 + $0x1e8] sm:$0xff]  }
 0x10e   : > { %v922_v59 = vshrl.u32 %v877_v51, 16  ;;  %v925_v60 = vshll.u32 %v877_v51, 16  ;;  %v878_v0 = vpack.c.bf16 %v638_v52, %v638_v52  ;;  %v9132_v1 = vpack.c.bf16 %v651_v53, %v651_v53  ;;  %v1169_v52 = vld [vmem:[#allocation2 + $0x10] sm:$0x1f] }
 0x10f   : > { %v908_v10 = vshrl.u32 %v875_v55, 16  ;;  %v911_v11 = vshll.u32 %v875_v55, 16  ;;  %v876_v12 = vpack.c.bf16 %v636_v56, %v636_v56  ;;  %v8055_v15 = vpop.f32.mrb[4].mxu0  ;;  %v1034_v16 = vshrl.u32 %v9129_v57, 16 }
 0x110   : > { %v924_v17 = vrot.slane %v922_v59, 7  ;;  %v929_v18 = vshrl.u32 %v878_v0, 16  ;;  %v932_v19 = vshll.u32 %v878_v0, 16  ;;  %v533_v22 = vadd.f32 %v8055_v15, %v9079_v8  ;;  %v524_v23 = vpop.f32.mrb[5].mxu0  ;;  %v9136_v24 = vpop.f32.mrb[4].mxu1 }
 0x111   : > { %v910_v27 = vrot.slane %v908_v10, 7  ;;  %v915_v28 = vshrl.u32 %v876_v12, 16  ;;  %v918_v29 = vshll.u32 %v876_v12, 16  ;;  %v525_v30 = vadd.f32 %v9079_v8, %v524_v23  ;;  %v8056_v31 = vpop.f32.mrb[6].mxu0  ;;  %v9145_v33 = vpop.f32.mrb[5].mxu1 }
 0x112   : > { %v927_v34 = vor.u32 %v925_v60, %v924_v17  ;;  %v931_v36 = vrot.slane %v929_v18, 7  ;;  %v641_v37 = vmax.f32 %v533_v22, 0.0  ;;  %v536_v38 = vadd.f32 %v8056_v31, %v9079_v8  ;;  %v527_v40 = vpop.f32.mrb[7].mxu0  ;;  %v9148_v41 = vpop.f32.mrb[6].mxu1  ;;  %v1184_v15 = vld [vmem:[#allocation2 + $0x38] sm:$0x1f] }
 0x113   : > { %v913_v42 = vor.u32 %v911_v11, %v910_v27  ;;  %v917_v44 = vrot.slane %v915_v28, 7  ;;  %v639_v46 = vmax.f32 %v525_v30, 0.0  ;;  %v528_v47 = vadd.f32 %v9079_v8, %v527_v40  ;;  %v9151_v48 = vpop.f32.mrb[7].mxu1 }
 0x114   : > { %v1173_v50 = vsel %vm9140_vm15, %v927_v34, %v1172_v6  ;;  %v934_v51 = vor.u32 %v932_v19, %v931_v36  ;;  %v881_v53 = vpack.c.bf16 %v641_v37, %v641_v37  ;;  %v642_v55 = vmax.f32 %v536_v38, 0.0 }
 0x115   : > { %1174 = vst [vmem:[#allocation2 + $0x18] sm:$0x1f] %v1173_v50  ;;  %v1167_v56 = vsel %vm9140_vm15, %v913_v42, %v1166_v35  ;;  %v920_v59 = vor.u32 %v918_v29, %v917_v44  ;;  %v879_v60 = vpack.c.bf16 %v639_v46, %v639_v46  ;;  %v640_v0 = vmax.f32 %v528_v47, 0.0 }
 0x116   : > { %1168 = vst [vmem:[#allocation2 + $0x8] sm:$0x1f] %v1167_v56  ;;  %v1176_v5 = vsel %vm9140_vm15, %v934_v51, %v1175_v43  ;;  %v950_v10 = vshrl.u32 %v881_v53, 16  ;;  %v953_v11 = vshll.u32 %v881_v53, 16  ;;  %v882_v12 = vpack.c.bf16 %v642_v55, %v642_v55  ;;  %v1178_v43 = vld [vmem:[#allocation2 + $0x28] sm:$0x1f] }
 0x117   : > { %1177 = vst [vmem:[#allocation2 + $0x20] sm:$0x1f] %v1176_v5  ;;  %v1170_v6 = vsel %vm9140_vm15, %v920_v59, %v1169_v52  ;;  %v936_v17 = vshrl.u32 %v879_v60, 16  ;;  %v939_v18 = vshll.u32 %v879_v60, 16  ;;  %v880_v19 = vpack.c.bf16 %v640_v0, %v640_v0  ;;  %v8059_v22 = vpop.f32.mrb[8].mxu0 }
 0x118   : > { %1171 = vst [vmem:[#allocation2 + $0x10] sm:$0x1f] %v1170_v6  ;;  %v952_v23 = vrot.slane %v950_v10, 7  ;;  %v957_v27 = vshrl.u32 %v882_v12, 16  ;;  %v960_v28 = vshll.u32 %v882_v12, 16  ;;  %v549_v29 = vadd.f32 %v8059_v22, %v9079_v8  ;;  %v540_v30 = vpop.f32.mrb[9].mxu0 }
 0x119   : > { %v9162_v31 = vpop.f32.mrb[8].mxu1  ;;  %v938_v34 = vrot.slane %v936_v17, 7  ;;  %v943_v35 = vshrl.u32 %v880_v19, 16  ;;  %v946_v36 = vshll.u32 %v880_v19, 16  ;;  %v541_v37 = vadd.f32 %v9079_v8, %v540_v30  ;;  %v8060_v38 = vpop.f32.mrb[10].mxu0 }
 0x11a   : > { %v9165_v40 = vpop.f32.mrb[9].mxu1  ;;  %v955_v42 = vor.u32 %v953_v11, %v952_v23  ;;  %v959_v44 = vrot.slane %v957_v27, 7  ;;  %v645_v46 = vmax.f32 %v549_v29, 0.0  ;;  %v552_v47 = vadd.f32 %v8060_v38, %v9079_v8  ;;  %v543_v50 = vpop.f32.mrb[11].mxu0  ;;  %v1187_v53 = vld [vmem:[#allocation2 + $0x40] sm:$0x1f] }
 0x11b   : > { %v9168_v51 = vpop.f32.mrb[10].mxu1  ;;  %v941_v52 = vor.u32 %v939_v18, %v938_v34  ;;  %v945_v55 = vrot.slane %v943_v35, 7  ;;  %v643_v56 = vmax.f32 %v541_v37, 0.0  ;;  %v544_v59 = vadd.f32 %v9079_v8, %v543_v50  ;;  %v1181_v10 = vld [vmem:[#allocation2 + $0x30] sm:$0x1f] }
 0x11c   : > { %v9171_v60 = vpop.f32.mrb[11].mxu1  ;;  %v1185_v0 = vsel %vm9140_vm15, %v955_v42, %v1184_v15  ;;  %v962_v5 = vor.u32 %v960_v28, %v959_v44  ;;  %v885_v11 = vpack.c.bf16 %v645_v46, %v645_v46  ;;  %v646_v12 = vmax.f32 %v552_v47, 0.0  ;;  %v1196_v47 = vld [vmem:[#allocation2 + $0x68] sm:$0x1f] }
 0x11d   : > { %1186 = vst [vmem:[#allocation2 + $0x38] sm:$0x1f] %v1185_v0  ;;  %v1179_v6 = vsel %vm9140_vm15, %v941_v52, %v1178_v43  ;;  %v948_v17 = vor.u32 %v946_v36, %v945_v55  ;;  %v883_v18 = vpack.c.bf16 %v643_v56, %v643_v56  ;;  %v644_v19 = vmax.f32 %v544_v59, 0.0  ;;  %v1938_v30 = vld [vmem:[#allocation2 + $0x8] sm:$0x1e] }
 0x11e   : > { %1180 = vst [vmem:[#allocation2 + $0x28] sm:$0x1f] %v1179_v6  ;;  %v1188_v22 = vsel %vm9140_vm15, %v962_v5, %v1187_v53  ;;  %v978_v23 = vshrl.u32 %v885_v11, 16  ;;  %v981_v27 = vshll.u32 %v885_v11, 16  ;;  %v886_v29 = vpack.c.bf16 %v646_v12, %v646_v12  ;;  %v1190_v0 = vld [vmem:[#allocation2 + $0x58] sm:$0x1f] }
 0x11f   : > { %1189 = vst [vmem:[#allocation2 + $0x40] sm:$0x1f] %v1188_v22  ;;  %v1182_v15 = vsel %vm9140_vm15, %v948_v17, %v1181_v10  ;;  %v964_v28 = vshrl.u32 %v883_v18, 16  ;;  %v967_v34 = vshll.u32 %v883_v18, 16  ;;  %v884_v35 = vpack.c.bf16 %v644_v19, %v644_v19  ;;  %v8063_v37 = vpop.f32.mrb[12].mxu0 }
 0x120   : > { %1183 = vst [vmem:[#allocation2 + $0x30] sm:$0x1f] %v1182_v15  ;;  %v980_v36 = vrot.slane %v978_v23, 7  ;;  %v985_v38 = vshrl.u32 %v886_v29, 16  ;;  %v988_v42 = vshll.u32 %v886_v29, 16  ;;  %v565_v43 = vadd.f32 %v8063_v37, %v9079_v8  ;;  %v556_v44 = vpop.f32.mrb[13].mxu0 }
 0x121   : > { %v8246_v46 = vld [vmem:[#allocation2 + $0x8] ss:$8 sps:$4 sm:$0xff]   ;;  %v966_v50 = vrot.slane %v964_v28, 7  ;;  %v971_v52 = vshrl.u32 %v884_v35, 16  ;;  %v974_v53 = vshll.u32 %v884_v35, 16  ;;  %v557_v55 = vadd.f32 %v9079_v8, %v556_v44  ;;  %v9183_v56 = vpop.f32.mrb[14].mxu0 }
 0x122   : > { %v983_v59 = vor.u32 %v981_v27, %v980_v36  ;;  %v987_v5 = vrot.slane %v985_v38, 7  ;;  %v649_v10 = vmax.f32 %v565_v43, 0.0  ;;  %5693 = vmatprep.mubr.bf16.mxu0 %v8246_v46  ;;  %v6892_v11 = vcombine.low %v1938_v30, %v1938_v30  ;;  %v1199_v6 = vld [vmem:[#allocation2 + $0x70] sm:$0x1f]  ;;  %v1295_v22 = vld [vmem:[#allocation2 + $0x8] sm:$0x1f] }
 0x123   : > { %v969_v12 = vor.u32 %v967_v34, %v966_v50  ;;  %v973_v17 = vrot.slane %v971_v52, 7  ;;  %v647_v18 = vmax.f32 %v557_v55, 0.0  ;;  %v6893_v19 = vcombine.high %v1938_v30, %v1938_v30  ;;  %v1193_v15 = vld [vmem:[#allocation2 + $0x60] sm:$0x1f]  ;;  %v9187_v37 = vpop.f32.mrb[15].mxu0  ;;  %v9191_v43 = vpop.f32.mrb[12].mxu1 }
 0x124   : > { %v1197_v23 = vsel %vm9140_vm15, %v983_v59, %v1196_v47  ;;  %v990_v29 = vor.u32 %v988_v42, %v987_v5  ;;  %v889_v28 = vpack.c.bf16 %v649_v10, %v649_v10  ;;  %v6955_v35 = vrot.slane %v6892_v11, 9  ;;  %v1296_v47 = vld [vmem:[#allocation2 + $0x10] sm:$0x1f]  ;;  %v8349_v50 = vld [vmem:[#allocation3 + $0x180] sm:$0xff]   ;;  %v1208_v10 = vld [vmem:[#allocation2 + $0x88] sm:$0x1f] }
 0x125   : > { %1198 = vst [vmem:[#allocation2 + $0x68] sm:$0x1f] %v1197_v23  ;;  %v1191_v27 = vsel %vm9140_vm15, %v969_v12, %v1190_v0  ;;  %v976_v36 = vor.u32 %v974_v53, %v973_v17  ;;  %v887_v34 = vpack.c.bf16 %v647_v18, %v647_v18  ;;  %v2138_v38 = vrot.slane %v6893_v19, 5  ;;  %v1297_v0 = vld [vmem:[#allocation2 + $0x18] sm:$0x1f] }
 0x126   : > { %1192 = vst [vmem:[#allocation2 + $0x58] sm:$0x1f] %v1191_v27  ;;  %v1200_v30 = vsel %vm9140_vm15, %v990_v29, %v1199_v6  ;;  %v1006_v44 = vshrl.u32 %v889_v28, 16  ;;  %v1009_v42 = vshll.u32 %v889_v28, 16  ;;  %v6828_v46 = vcombine.low %v1295_v22, %v1295_v22  ;;  %v8253_v18 = vld [vmem:[#allocation2 + $0x18] ss:$8 sps:$4 sm:$0xff]  }
 0x127   : > { %1201 = vst [vmem:[#allocation2 + $0x70] sm:$0x1f] %v1200_v30  ;;  %v1194_v52 = vsel %vm9140_vm15, %v976_v36, %v1193_v15  ;;  %v992_v55 = vshrl.u32 %v887_v34, 16  ;;  %v995_v59 = vshll.u32 %v887_v34, 16  ;;  %v2139_v53 = vsel %vm9062_vm11, %v6955_v35, %v2138_v38  ;;  %v1202_v28 = vld [vmem:[#allocation2 + $0x78] sm:$0x1f] }
 0x128   : > { %1195 = vst [vmem:[#allocation2 + $0x60] sm:$0x1f] %v1194_v52  ;;  %v1008_v5 = vrot.slane %v1006_v44, 7  ;;  %v7338_v11 = vcombine.low %v2135_v9, %v2139_v53  ;;  %v6829_v12 = vcombine.high %v1295_v22, %v1295_v22  ;;  %v1504_v6 = vshrl.u32 %v6828_v46, 16  ;;  %v1940_v53 = vld [vmem:[#allocation2 + $0x18] sm:$0x1e] }
 0x129   : > { %v994_v17 = vrot.slane %v992_v55, 7  ;;  %v1507_v19 = vshll.u32 %v6828_v46, 16  ;;  %v6830_v23 = vcombine.low %v1296_v47, %v1296_v47  ;;  %v6831_v29 = vcombine.high %v1296_v47, %v1296_v47  ;;  %v1939_v46 = vld [vmem:[#allocation2 + $0x10] sm:$0x1e]  ;;  %v9206_v47 = vpop.f32.mrb[13].mxu1 }
 0x12a   : > { %v1011_v15 = vor.u32 %v1009_v42, %v1008_v5  ;;  %5694 = vmatmul.mubr.bf16.vlgmr.msra.gmra.mrb[16].mxu0 %v7338_v11  ;;  %v1506_v35 = vrot.slane %v1504_v6, 4  ;;  %v1513_v27 = vshll.u32 %v6829_v12, 16  ;;  %v6832_v36 = vcombine.low %v1297_v0, %v1297_v0 }
 0x12b   : > { %v997_v34 = vor.u32 %v995_v59, %v994_v17  ;;  %5701 = vmatprep.mubr.bf16.mxu0 %v8253_v18  ;;  %v1509_v38 = vrot.slane %v1507_v19, 5  ;;  %v6833_v30 = vcombine.high %v1297_v0, %v1297_v0  ;;  %v1518_v44 = vshrl.u32 %v6830_v23, 16  ;;  %7888 = vmatpush3.bf16.msra.mxu0 %v8349_v50 }
 0x12c   : > { %v1209_v61 = vsel %vm9140_vm15, %v1011_v15, %v1208_v10  ;;  %v1515_v62 = vrot.slane %v1513_v27, 5  ;;  %v1521_v9 = vshll.u32 %v6830_v23, 16  ;;  %v1527_v22 = vshll.u32 %v6831_v29, 16  ;;  %v1298_v15 = vld [vmem:[#allocation2 + $0x20] sm:$0x1f] }
 0x12d   : > { %1210 = vst [vmem:[#allocation2 + $0x88] sm:$0x1f] %v1209_v61  ;;  %v1203_v42 = vsel %vm9140_vm15, %v997_v34, %v1202_v28  ;;  %v1510_v52 = vor.u32 %v1509_v38, %v1506_v35  ;;  %v1520_v55 = vrot.slane %v1518_v44, 4  ;;  %v1532_v59 = vshrl.u32 %v6832_v36, 16  ;;  %v8262_v44 = vld [vmem:[#allocation3 + $0x100] sm:$0xff]  }
 0x12e   : > { %1204 = vst [vmem:[#allocation2 + $0x78] sm:$0x1f] %v1203_v42  ;;  %v1523_v0 = vrot.slane %v1521_v9, 5  ;;  %v1529_v50 = vrot.slane %v1527_v22, 5  ;;  %v1535_v5 = vshll.u32 %v6832_v36, 16  ;;  %v1541_v11 = vshll.u32 %v6833_v30, 16 }
 0x12f   : > { %v1511_v10 = vrot.slane %v1510_v52, 4  ;;  %v1534_v12 = vrot.slane %v1532_v59, 4  ;;  %v6894_v6 = vcombine.low %v1939_v46, %v1939_v46  ;;  %v6895_v17 = vcombine.high %v1939_v46, %v1939_v46  ;;  %v1299_v9 = vld [vmem:[#allocation2 + $0x28] sm:$0x1f]  ;;  %v9219_v59 = vpop.f32.mrb[14].mxu1 }
 0x130   : > { %v1524_v18 = vor.u32 %v1523_v0, %v1520_v55  ;;  %v1537_v19 = vrot.slane %v1535_v5, 5  ;;  %v1543_v23 = vrot.slane %v1541_v11, 5  ;;  %v6896_v29 = vcombine.low %v1940_v53, %v1940_v53  ;;  %v8282_v22 = vld [vmem:[#allocation3 + $0x148] sm:$0xff]   ;;  %v9223_v11 = vpop.f32.mrb[15].mxu1 }
 0x131   : > { %v1516_v28 = vsel %vm9070_vm12, %v1511_v10, %v1515_v62  ;;  %v6897_v35 = vcombine.high %v1940_v53, %v1940_v53  ;;  %v6956_v27 = vrot.slane %v6894_v6, 9  ;;  %v2142_v34 = vrot.slane %v6895_v17, 5  ;;  %v8261_v46 = vld [vmem:[#allocation2] ss:$8 sps:$4 sm:$0xff]  }
 0x132   : > { %v7322_v38 = vcombine.low %v9089_v13, %v1516_v28  ;;  %v1525_v36 = vrot.slane %v1524_v18, 4  ;;  %v1538_v30 = vor.u32 %v1537_v19, %v1534_v12  ;;  %v6957_v61 = vrot.slane %v6896_v29, 9  ;;  %v8284_v17 = vld [vmem:[#allocation3 + $0x108] sm:$0xff]   ;;  %v8304_v28 = vld [vmem:[#allocation3 + $0x150] sm:$0xff]  }
 0x133   : > { %v2143_v42 = vsel %vm9062_vm11, %v6956_v27, %v2142_v34  ;;  %v2146_v52 = vrot.slane %v6897_v35, 5  ;;  %v568_v55 = vadd.f32 %v9183_v56, %v9079_v8  ;;  %v560_v62 = vadd.f32 %v9079_v8, %v9187_v37  ;;  %v8271_v19 = vld [vmem:[#allocation2 + $0x28] ss:$8 sps:$4 sm:$0xff]  }
 0x134   : > { %5532 = vmatprep.mubr.bf16.mxu1 %v7322_v38  ;;  %v1530_v13 = vsel %vm9070_vm12, %v1525_v36, %v1529_v50  ;;  %v1539_v53 = vrot.slane %v1538_v30, 4  ;;  %v6834_v0 = vcombine.low %v1298_v15, %v1298_v15  ;;  %v6835_v5 = vcombine.high %v1298_v15, %v1298_v15  ;;  %v8372_v15 = vld [vmem:[#allocation3 + $0x1c8] sm:$0xff]   ;;  %v1941_v36 = vld [vmem:[#allocation2 + $0x20] sm:$0x1e] }
 0x135   : > { %5533 = vmatmul.mubr.bf16.vlgmr.msra.gmra.mrb[16].mxu1 %v8261_v46  ;;  %v2147_v10 = vsel %vm9062_vm11, %v6957_v61, %v2146_v52  ;;  %v650_v12 = vmax.f32 %v568_v55, 0.0  ;;  %v648_v56 = vmax.f32 %v560_v62, 0.0  ;;  %v6836_v6 = vcombine.low %v1299_v9, %v1299_v9  ;;  %v1942_v30 = vld [vmem:[#allocation2 + $0x28] sm:$0x1e]  ;;  %7889 = vmatprep.subr.bf16.mxu0 %v8372_v15  ;;  %v1205_v15 = vld [vmem:[#allocation2 + $0x80] sm:$0x1f] }
 0x136   : > { %7776 = vmatpush3.bf16.msra.mxu1 %v8262_v44  ;;  %v1544_v37 = vsel %vm9070_vm12, %v1539_v53, %v1543_v23  ;;  %v7339_v18 = vcombine.low %v2143_v42, %v2147_v10  ;;  %v6837_v50 = vcombine.high %v1299_v9, %v1299_v9  ;;  %v1546_v29 = vshrl.u32 %v6834_v0, 16  ;;  %v8373_v61 = vld [vmem:[#allocation3 + $0x188] sm:$0xff]   ;;  %v8306_v23 = vld [vmem:[#allocation3 + $0x110] sm:$0xff]  }
 0x137   : > { %v7323_v35 = vcombine.low %v1530_v13, %v1544_v37  ;;  %v890_v27 = vpack.c.bf16 %v650_v12, %v650_v12  ;;  %v888_v34 = vpack.c.bf16 %v648_v56, %v648_v56  ;;  %v1549_v38 = vshll.u32 %v6834_v0, 16  ;;  %7777 = vmatprep.subr.bf16.mxu1 %v8282_v22  ;;  %7890 = vmatpush3.bf16.msra.mxu0 %v8373_v61  ;;  %v8272_v37 = vld [vmem:[#allocation2 + $0x10] ss:$8 sps:$4 sm:$0xff]   ;;  %v8350_v61 = vld [vmem:[#allocation3 + $0x160] sm:$0xff]  }
 0x138   : > { %5702 = vmatmul.mubr.bf16.gmra.mrb[20].mxu0 %v7339_v18  ;;  %v1548_v46 = vrot.slane %v1546_v29, 4  ;;  %v1555_v44 = vshll.u32 %v6835_v5, 16  ;;  %v1560_v52 = vshrl.u32 %v6836_v6, 16  ;;  %v1563_v55 = vshll.u32 %v6836_v6, 16  ;;  %v8326_v6 = vld [vmem:[#allocation3 + $0x158] sm:$0xff]  }
 0x139   : > { %5540 = vmatprep.mubr.bf16.mxu1 %v7323_v35  ;;  %5709 = vmatprep.mubr.bf16.mxu0 %v8271_v19  ;;  %v1013_v9 = vshrl.u32 %v890_v27, 16  ;;  %v1016_v42 = vshll.u32 %v890_v27, 16  ;;  %v999_v62 = vshrl.u32 %v888_v34, 16  ;;  %v1002_v13 = vshll.u32 %v888_v34, 16  ;;  %v1211_v29 = vld [vmem:[#allocation2 + $0x90] sm:$0x1f] }
 0x13a   : > { %v1551_v53 = vrot.slane %v1549_v38, 5  ;;  %v1557_v10 = vrot.slane %v1555_v44, 5  ;;  %v1562_v0 = vrot.slane %v1560_v52, 4  ;;  %v1565_v12 = vrot.slane %v1563_v55, 5  ;;  %7778 = vmatpush3.bf16.msra.mxu1 %v8284_v17  ;;  %v8328_v17 = vld [vmem:[#allocation3 + $0x118] sm:$0xff]  }
 0x13b   : > { %v1015_v22 = vrot.slane %v1013_v9, 7  ;;  %v1001_v56 = vrot.slane %v999_v62, 7  ;;  %v1569_v5 = vshll.u32 %v6837_v50, 16  ;;  %v6898_v18 = vcombine.low %v1941_v36, %v1941_v36  ;;  %7779 = vmatprep.subr.bf16.mxu1 %v8304_v28 }
 0x13c   : > { %v1552_v19 = vor.u32 %v1551_v53, %v1548_v46  ;;  %v1566_v35 = vor.u32 %v1565_v12, %v1562_v0  ;;  %v6899_v27 = vcombine.high %v1941_v36, %v1941_v36  ;;  %v6900_v32 = vcombine.low %v1942_v30, %v1942_v30  ;;  %v1220_v12 = vld [vmem:[#allocation2 + $0xb8] sm:$0x1f] }
 0x13d   : > { %v1018_v34 = vor.u32 %v1016_v42, %v1015_v22  ;;  %v1004_v38 = vor.u32 %v1002_v13, %v1001_v56  ;;  %5541 = vmatmul.mubr.bf16.gmra.mrb[20].mxu1 %v8272_v37  ;;  %v1571_v44 = vrot.slane %v1569_v5, 5  ;;  %v6901_v52 = vcombine.high %v1942_v30, %v1942_v30  ;;  %v1300_v42 = vld [vmem:[#allocation2 + $0x30] sm:$0x1f]  ;;  %v1301_v22 = vld [vmem:[#allocation2 + $0x38] sm:$0x1f] }
 0x13e   : > { %v1553_v55 = vrot.slane %v1552_v19, 4  ;;  %v1567_v9 = vrot.slane %v1566_v35, 4  ;;  %v6958_v62 = vrot.slane %v6898_v18, 9  ;;  %v2150_v50 = vrot.slane %v6899_v27, 5  ;;  %7780 = vmatpush3.bf16.msra.mxu1 %v8306_v23  ;;  %v1943_v18 = vld [vmem:[#allocation2 + $0x30] sm:$0x1e] }
 0x13f   : > { %v1212_v28 = vsel %vm9140_vm15, %v1018_v34, %v1211_v29  ;;  %v1206_v46 = vsel %vm9140_vm15, %v1004_v38, %v1205_v15  ;;  %v6959_v36 = vrot.slane %v6900_v32, 9  ;;  %v2154_v53 = vrot.slane %v6901_v52, 5  ;;  %7781 = vmatprep.subr.bf16.mxu1 %v8326_v6  ;;  %v8396_v32 = vld [vmem:[#allocation3 + $0x1d0] sm:$0xff]   ;;  %v8281_v29 = vld [vmem:[#allocation2 + $0x38] ss:$8 sps:$4 sm:$0xff]  }
 0x140   : > { %1213 = vst [vmem:[#allocation2 + $0x90] sm:$0x1f] %v1212_v28  ;;  %1207 = vst [vmem:[#allocation2 + $0x80] sm:$0x1f] %v1206_v46  ;;  %v1558_v30 = vsel %vm9070_vm12, %v1553_v55, %v1557_v10  ;;  %v1572_v13 = vsel %vm9070_vm12, %v1567_v9, %v1571_v44  ;;  %v2151_v23 = vsel %vm9062_vm11, %v6958_v62, %v2150_v50  ;;  %v1036_v0 = vrot.slane %v1034_v16, 7  ;;  %v8352_v16 = vld [vmem:[#allocation3 + $0x120] sm:$0xff]  }
 0x141   : > { %v7324_v56 = vcombine.low %v1558_v30, %v1572_v13  ;;  %v2155_v37 = vsel %vm9062_vm11, %v6959_v36, %v2154_v53  ;;  %v1037_v5 = vshll.u32 %v9129_v57, 16  ;;  %v1020_v10 = vshrl.u32 %v9132_v1, 16  ;;  %7891 = vmatprep.subr.bf16.mxu0 %v8396_v32  ;;  %v8397_v27 = vld [vmem:[#allocation3 + $0x190] sm:$0xff]   ;;  %v8283_v38 = vld [vmem:[#allocation2 + $0x20] ss:$8 sps:$4 sm:$0xff]   ;;  %v8410_v9 = vld [vmem:[#allocation3 + $0x1d8] sm:$0xff]  }
 0x142   : > { %v7340_v6 = vcombine.low %v2151_v23, %v2155_v37  ;;  %v1023_v15 = vshll.u32 %v9132_v1, 16  ;;  %v6838_v19 = vcombine.low %v1300_v42, %v1300_v42  ;;  %v6839_v35 = vcombine.high %v1300_v42, %v1300_v42  ;;  %7782 = vmatpush3.bf16.msra.mxu1 %v8328_v17  ;;  %v8374_v57 = vld [vmem:[#allocation3 + $0x168] sm:$0xff]   ;;  %v1944_v30 = vld [vmem:[#allocation2 + $0x38] sm:$0x1e]  ;;  %7892 = vmatpush3.bf16.msra.mxu0 %v8397_v27 }
 0x143   : > { %5548 = vmatprep.mubr.bf16.mxu1 %v7324_v56  ;;  %v1039_v34 = vor.u32 %v1037_v5, %v1036_v0  ;;  %v1022_v44 = vrot.slane %v1020_v10, 7  ;;  %v6840_v52 = vcombine.low %v1301_v22, %v1301_v22  ;;  %v6841_v55 = vcombine.high %v1301_v22, %v1301_v22  ;;  %7783 = vmatprep.subr.bf16.mxu1 %v8350_v61  ;;  %v1214_v62 = vld [vmem:[#allocation2 + $0xa8] sm:$0x1f]  ;;  %v8411_v32 = vld [vmem:[#allocation3 + $0x198] sm:$0xff]   ;;  %v8398_v10 = vld [vmem:[#allocation3 + $0x170] sm:$0xff]  }
 0x144   : > { %5710 = vmatmul.mubr.bf16.gmra.mrb[24].mxu0 %v7340_v6  ;;  %v1574_v50 = vshrl.u32 %v6838_v19, 16  ;;  %v1577_v28 = vshll.u32 %v6838_v19, 16  ;;  %v1583_v1 = vshll.u32 %v6839_v35, 16  ;;  %v6902_v46 = vcombine.low %v1943_v18, %v1943_v18  ;;  %v8376_v22 = vld [vmem:[#allocation3 + $0x128] sm:$0xff]   ;;  %7893 = vmatprep.subr.bf16.mxu0 %v8410_v9  ;;  %v8421_v6 = vld [vmem:[#allocation3 + $0x1e0] sm:$0xff]  }
 0x145   : > { %5717 = vmatprep.mubr.bf16.mxu0 %v8281_v29  ;;  %v1221_v17 = vsel %vm9140_vm15, %v1039_v34, %v1220_v12  ;;  %5549 = vmatmul.mubr.bf16.gmra.mrb[24].mxu1 %v8283_v38  ;;  %v1025_v36 = vor.u32 %v1023_v15, %v1022_v44  ;;  %v1588_v53 = vshrl.u32 %v6840_v52, 16  ;;  %v1591_v42 = vshll.u32 %v6840_v52, 16  ;;  %v8400_v44 = vld [vmem:[#allocation3 + $0x130] sm:$0xff]   ;;  %v8423_v52 = vld [vmem:[#allocation3 + $0x1a0] sm:$0xff]  }
 0x146   : > { %1222 = vst [vmem:[#allocation2 + $0xb8] sm:$0x1f] %v1221_v17  ;;  %v1576_v13 = vrot.slane %v1574_v50, 4  ;;  %v1579_v61 = vrot.slane %v1577_v28, 5  ;;  %v1585_v23 = vrot.slane %v1583_v1, 5  ;;  %v1597_v0 = vshll.u32 %v6841_v55, 16  ;;  %7784 = vmatpush3.bf16.msra.mxu1 %v8352_v16  ;;  %7894 = vmatpush3.bf16.msra.mxu0 %v8411_v32 }
 0x147   : > { %v1215_v56 = vsel %vm9140_vm15, %v1025_v36, %v1214_v62  ;;  %v1590_v37 = vrot.slane %v1588_v53, 4  ;;  %v1593_v5 = vrot.slane %v1591_v42, 5  ;;  %v6903_v12 = vcombine.high %v1943_v18, %v1943_v18  ;;  %7785 = vmatprep.subr.bf16.mxu1 %v8374_v57  ;;  %7895 = vmatprep.subr.bf16.mxu0 %v8421_v6  ;;  %v1223_v17 = vld [vmem:[#allocation2 + $0xc0] sm:$0x1f]  ;;  %v1303_v42 = vld [vmem:[#allocation2 + $0x58] sm:$0x1f] }
 0x148   : > { %1216 = vst [vmem:[#allocation2 + $0xa8] sm:$0x1f] %v1215_v56  ;;  %v1580_v29 = vor.u32 %v1579_v61, %v1576_v13  ;;  %v1599_v15 = vrot.slane %v1597_v0, 5  ;;  %v6904_v19 = vcombine.low %v1944_v30, %v1944_v30  ;;  %v6905_v35 = vcombine.high %v1944_v30, %v1944_v30  ;;  %v8293_v36 = vld [vmem:[#allocation2 + $0x58] ss:$8 sps:$4 sm:$0xff]  }
 0x149   : > { %v1594_v34 = vor.u32 %v1593_v5, %v1590_v37  ;;  %v6960_v16 = vrot.slane %v6902_v46, 9  ;;  %v2158_v38 = vrot.slane %v6903_v12, 5  ;;  %v894_v27 = vpack.c.bf16 %v654_v58, %v654_v58  ;;  %v8425_v12 = vld [vmem:[#allocation3 + $0x1a8] sm:$0xff]   ;;  %v1217_v6 = vld [vmem:[#allocation2 + $0xb0] sm:$0x1f] }
 0x14a   : > { %v1581_v55 = vrot.slane %v1580_v29, 4  ;;  %v6961_v18 = vrot.slane %v6904_v19, 9  ;;  %v2162_v57 = vrot.slane %v6905_v35, 5  ;;  %v652_v9 = vmax.f32 %v9127_v54, 0.0  ;;  %7786 = vmatpush3.bf16.msra.mxu1 %v8376_v22  ;;  %v1946_v22 = vld [vmem:[#allocation2 + $0x58] sm:$0x1e]  ;;  %7896 = vmatpush3.bf16.msra.mxu0 %v8423_v52 }
 0x14b   : > { %v1595_v62 = vrot.slane %v1594_v34, 4  ;;  %v2159_v50 = vsel %vm9062_vm11, %v6960_v16, %v2158_v38  ;;  %v1041_v28 = vshrl.u32 %v894_v27, 16  ;;  %v1044_v1 = vshll.u32 %v894_v27, 16  ;;  %7787 = vmatprep.subr.bf16.mxu1 %v8398_v10  ;;  %v8428_v10 = vld [vmem:[#allocation3 + $0x138] sm:$0xff]   ;;  %7897 = vmatprep.subr.bf16.mxu0 %v8424_v49  ;;  %v8437_v34 = vld [vmem:[#allocation3 + $0x1f0] sm:$0xff]  }
 0x14c   : > { %v1586_v58 = vsel %vm9070_vm12, %v1581_v55, %v1585_v23  ;;  %v2163_v46 = vsel %vm9062_vm11, %v6961_v18, %v2162_v57  ;;  %v892_v54 = vpack.c.bf16 %v652_v9, %v652_v9  ;;  %v597_v53 = vadd.f32 %v9136_v24, %v9079_v8  ;;  %v8426_v23 = vld [vmem:[#allocation3 + $0x178] sm:$0xff]   ;;  %v1304_v27 = vld [vmem:[#allocation2 + $0x60] sm:$0x1f]  ;;  %v1305_v57 = vld [vmem:[#allocation2 + $0x68] sm:$0x1f] }
 0x14d   : > { %v1600_v30 = vsel %vm9070_vm12, %v1595_v62, %v1599_v15  ;;  %v7341_v13 = vcombine.low %v2159_v50, %v2163_v46  ;;  %v1043_v61 = vrot.slane %v1041_v28, 7  ;;  %v589_v0 = vadd.f32 %v9079_v8, %v9145_v33  ;;  %v8294_v15 = vld [vmem:[#allocation2 + $0x30] ss:$8 sps:$4 sm:$0xff]  }
 0x14e   : > { %v7325_v32 = vcombine.low %v1586_v58, %v1600_v30  ;;  %v1027_v56 = vshrl.u32 %v892_v54, 16  ;;  %v1030_v37 = vshll.u32 %v892_v54, 16  ;;  %v657_v5 = vmax.f32 %v597_v53, 0.0  ;;  %7788 = vmatpush3.bf16.msra.mxu1 %v8400_v44  ;;  %7898 = vmatpush3.bf16.msra.mxu0 %v8425_v12  ;;  %v1232_v30 = vld [vmem:[#allocation2 + $0xd8] sm:$0x1f] }
 0x14f   : > { %5718 = vmatmul.mubr.bf16.gmra.mrb[28].mxu0 %v7341_v13  ;;  %v1046_v24 = vor.u32 %v1044_v1, %v1043_v61  ;;  %v655_v29 = vmax.f32 %v589_v0, 0.0  ;;  %v6844_v19 = vcombine.low %v1303_v42, %v1303_v42  ;;  %v6845_v35 = vcombine.high %v1303_v42, %v1303_v42  ;;  %7789 = vmatprep.subr.bf16.mxu1 %v8426_v23  ;;  %v8438_v1 = vld [vmem:[#allocation3 + $0x1b0] sm:$0xff]   ;;  %v8443_v12 = vld [vmem:[#allocation3 + $0x1f8] sm:$0xff]  }
 0x150   : > { %5556 = vmatprep.mubr.bf16.mxu1 %v7325_v32  ;;  %5725 = vmatprep.mubr.bf16.mxu0 %v8293_v36  ;;  %v1029_v8 = vrot.slane %v1027_v56, 7  ;;  %v897_v33 = vpack.c.bf16 %v657_v5, %v657_v5  ;;  %v6908_v16 = vcombine.low %v1946_v22, %v1946_v22  ;;  %v6909_v38 = vcombine.high %v1946_v22, %v1946_v22  ;;  %v1226_v32 = vld [vmem:[#allocation2 + $0xc8] sm:$0x1f] }
 0x151   : > { %v1224_v44 = vsel %vm9140_vm15, %v1046_v24, %v1223_v17  ;;  %v895_v52 = vpack.c.bf16 %v655_v29, %v655_v29  ;;  %5557 = vmatmul.mubr.bf16.gmra.mrb[28].mxu1 %v8294_v15  ;;  %v1616_v55 = vshrl.u32 %v6844_v19, 16  ;;  %v1619_v18 = vshll.u32 %v6844_v19, 16  ;;  %7899 = vmatprep.subr.bf16.mxu0 %v8437_v34  ;;  %v8303_v29 = vld [vmem:[#allocation2 + $0x68] ss:$8 sps:$4 sm:$0xff]   ;;  %v8444_v19 = vld [vmem:[#allocation3 + $0x1b8] sm:$0xff]  }
 0x152   : > { %1225 = vst [vmem:[#allocation2 + $0xc0] sm:$0x1f] %v1224_v44  ;;  %v1032_v9 = vor.u32 %v1030_v37, %v1029_v8  ;;  %v1062_v62 = vshrl.u32 %v897_v33, 16  ;;  %v1065_v50 = vshll.u32 %v897_v33, 16  ;;  %v1625_v28 = vshll.u32 %v6845_v35, 16  ;;  %7790 = vmatpush3.bf16.msra.mxu1 %v8428_v10  ;;  %7900 = vmatpush3.bf16.msra.mxu0 %v8438_v1 }
 0x153   : > { %v1048_v49 = vshrl.u32 %v895_v52, 16  ;;  %v1051_v58 = vshll.u32 %v895_v52, 16  ;;  %v1618_v46 = vrot.slane %v1616_v55, 4  ;;  %v1621_v36 = vrot.slane %v1619_v18, 5  ;;  %7901 = vmatprep.subr.bf16.mxu0 %v8443_v12  ;;  %v1948_v55 = vld [vmem:[#allocation2 + $0x68] sm:$0x1e] }
 0x154   : > { %v1218_v17 = vsel %vm9140_vm15, %v1032_v9, %v1217_v6  ;;  %v1064_v54 = vrot.slane %v1062_v62, 7  ;;  %v1627_v53 = vrot.slane %v1625_v28, 5  ;;  %v6963_v42 = vrot.slane %v6908_v16, 9  ;;  %v1947_v16 = vld [vmem:[#allocation2 + $0x60] sm:$0x1e] }
 0x155   : > { %1219 = vst [vmem:[#allocation2 + $0xb0] sm:$0x1f] %v1218_v17  ;;  %v1050_v13 = vrot.slane %v1048_v49, 7  ;;  %v1622_v61 = vor.u32 %v1621_v36, %v1618_v46  ;;  %v2170_v0 = vrot.slane %v6909_v38, 5  ;;  %v6846_v22 = vcombine.low %v1304_v27, %v1304_v27  ;;  %v1306_v36 = vld [vmem:[#allocation2 + $0x70] sm:$0x1f] }
 0x156   : > { %v1067_v23 = vor.u32 %v1065_v50, %v1064_v54  ;;  %v6847_v56 = vcombine.high %v1304_v27, %v1304_v27  ;;  %v6848_v37 = vcombine.low %v1305_v57, %v1305_v57  ;;  %v6849_v5 = vcombine.high %v1305_v57, %v1305_v57  ;;  %v8305_v57 = vld [vmem:[#allocation2 + $0x50] ss:$8 sps:$4 sm:$0xff]   ;;  %7902 = vmatpush3.bf16.msra.mxu0 %v8444_v19 }
 0x157   : > { %v1053_v10 = vor.u32 %v1051_v58, %v1050_v13  ;;  %v1623_v24 = vrot.slane %v1622_v61, 4  ;;  %v2171_v6 = vsel %vm9062_vm11, %v6963_v42, %v2170_v0  ;;  %v1630_v15 = vshrl.u32 %v6846_v22, 16 }
 0x158   : > { %v1233_v35 = vsel %vm9140_vm15, %v1067_v23, %v1232_v30  ;;  %v7342_v34 = vcombine.low %v2167_v14, %v2171_v6  ;;  %v1633_v8 = vshll.u32 %v6846_v22, 16  ;;  %v1639_v33 = vshll.u32 %v6847_v56, 16  ;;  %v1307_v22 = vld [vmem:[#allocation2 + $0x78] sm:$0x1f]  ;;  %v8455_v23 = vld [vmem:[#allocation3 + $0x200] sm:$0xff]  }
 0x159   : > { %1234 = vst [vmem:[#allocation2 + $0xd8] sm:$0x1f] %v1233_v35  ;;  %v1227_v38 = vsel %vm9140_vm15, %v1053_v10, %v1226_v32  ;;  %v1628_v27 = vsel %vm9070_vm12, %v1623_v24, %v1627_v53  ;;  %v1632_v44 = vrot.slane %v1630_v15, 4  ;;  %v1644_v52 = vshrl.u32 %v6848_v37, 16  ;;  %v9287_v53 = vld [vmem:[%s10837_s2] ss:$0 sm:$0xff]  ;;  %8081 = vmatprep.subr.bf16.mxu1 %v8455_v23 }
 0x15a   : > { %1228 = vst [vmem:[#allocation2 + $0xc8] sm:$0x1f] %v1227_v38  ;;  %v7326_v18 = vcombine.low %v9101_v20, %v1628_v27  ;;  %5726 = vmatmul.mubr.bf16.gmra.mrb[32].mxu0 %v7342_v34  ;;  %v1635_v2 = vrot.slane %v1633_v8, 5  ;;  %v1641_v3 = vrot.slane %v1639_v33, 5  ;;  %v1647_v14 = vshll.u32 %v6848_v37, 16 }
 0x15b   : > { %5733 = vmatprep.mubr.bf16.mxu0 %v8303_v29  ;;  %v1646_v9 = vrot.slane %v1644_v52, 4  ;;  %v1653_v62 = vshll.u32 %v6849_v5, 16  ;;  %v6910_v50 = vcombine.low %v1947_v16, %v1947_v16  ;;  %v6911_v28 = vcombine.high %v1947_v16, %v1947_v16  ;;  %v8315_v34 = vld [vmem:[#allocation2 + $0x78] ss:$8 sps:$4 sm:$0xff]  }
 0x15c   : > { %5564 = vmatprep.mubr.bf16.mxu1 %v7326_v18  ;;  %v1636_v1 = vor.u32 %v1635_v2, %v1632_v44  ;;  %v1649_v49 = vrot.slane %v1647_v14, 5  ;;  %v6912_v58 = vcombine.low %v1948_v55, %v1948_v55  ;;  %v6913_v46 = vcombine.high %v1948_v55, %v1948_v55  ;;  %v8316_v8 = vld [vmem:[#allocation2 + $0x60] ss:$8 sps:$4 sm:$0xff]   ;;  %v1949_v55 = vld [vmem:[#allocation2 + $0x70] sm:$0x1e] }
 0x15d   : > { %5565 = vmatmul.mubr.bf16.gmra.mrb[32].mxu1 %v8305_v57  ;;  %v1655_v17 = vrot.slane %v1653_v62, 5  ;;  %v6964_v20 = vrot.slane %v6910_v50, 9  ;;  %v2174_v54 = vrot.slane %v6911_v28, 5  ;;  %v600_v42 = vadd.f32 %v9287_v53, %v9148_v41  ;;  %v1950_v18 = vld [vmem:[#allocation2 + $0x78] sm:$0x1e] }
 0x15e   : > { %v1637_v30 = vrot.slane %v1636_v1, 4  ;;  %v1650_v13 = vor.u32 %v1649_v49, %v1646_v9  ;;  %v6965_v61 = vrot.slane %v6912_v58, 9  ;;  %v2178_v0 = vrot.slane %v6913_v46, 5  ;;  %v1235_v1 = vld [vmem:[#allocation2 + $0xe0] sm:$0x1f] }
 0x15f   : > { %v2175_v32 = vsel %vm9062_vm11, %v6964_v20, %v2174_v54  ;;  %v658_v56 = vmax.f32 %v600_v42, 0.0  ;;  %v592_v37 = vadd.f32 %v9287_v53, %v9151_v48  ;;  %v6850_v5 = vcombine.low %v1306_v36, %v1306_v36  ;;  %v1229_v54 = vld [vmem:[#allocation2 + $0xd0] sm:$0x1f]  ;;  %v1308_v23 = vld [vmem:[#allocation2 + $0x80] sm:$0x1f] }
 0x160   : > { %v1642_v12 = vsel %vm9070_vm12, %v1637_v30, %v1641_v3  ;;  %v1651_v10 = vrot.slane %v1650_v13, 4  ;;  %v2179_v41 = vsel %vm9062_vm11, %v6965_v61, %v2178_v0  ;;  %v6851_v24 = vcombine.high %v1306_v36, %v1306_v36 }
 0x161   : > { %v7343_v6 = vcombine.low %v2175_v32, %v2179_v41  ;;  %v898_v29 = vpack.c.bf16 %v658_v56, %v658_v56  ;;  %v656_v15 = vmax.f32 %v592_v37, 0.0  ;;  %v6852_v19 = vcombine.low %v1307_v22, %v1307_v22  ;;  %v1309_v32 = vld [vmem:[#allocation2 + $0x88] sm:$0x1f] }
 0x162   : > { %v1656_v35 = vsel %vm9070_vm12, %v1651_v10, %v1655_v17  ;;  %v6853_v48 = vcombine.high %v1307_v22, %v1307_v22  ;;  %v1658_v33 = vshrl.u32 %v6850_v5, 16  ;;  %v1661_v16 = vshll.u32 %v6850_v5, 16 }
 0x163   : > { %v7327_v38 = vcombine.low %v1642_v12, %v1656_v35  ;;  %5734 = vmatmul.mubr.bf16.gmra.mrb[36].mxu0 %v7343_v6  ;;  %v1069_v27 = vshrl.u32 %v898_v29, 16  ;;  %v1072_v44 = vshll.u32 %v898_v29, 16  ;;  %v896_v52 = vpack.c.bf16 %v656_v15, %v656_v15 }
 0x164   : > { %5741 = vmatprep.mubr.bf16.mxu0 %v8315_v34  ;;  %v1660_v2 = vrot.slane %v1658_v33, 4  ;;  %v1663_v3 = vrot.slane %v1661_v16, 5  ;;  %v1667_v14 = vshll.u32 %v6851_v24, 16  ;;  %v1672_v57 = vshrl.u32 %v6852_v19, 16 }
 0x165   : > { %5572 = vmatprep.mubr.bf16.mxu1 %v7327_v38  ;;  %v1071_v9 = vrot.slane %v1069_v27, 7  ;;  %v1055_v62 = vshrl.u32 %v896_v52, 16  ;;  %v1058_v50 = vshll.u32 %v896_v52, 16  ;;  %v1675_v28 = vshll.u32 %v6852_v19, 16 }
 0x166   : > { %5573 = vmatmul.mubr.bf16.gmra.mrb[36].mxu1 %v8316_v8  ;;  %v1664_v49 = vor.u32 %v1663_v3, %v1660_v2  ;;  %v1669_v58 = vrot.slane %v1667_v14, 5  ;;  %v1674_v46 = vrot.slane %v1672_v57, 4  ;;  %v1681_v36 = vshll.u32 %v6853_v48, 16 }
 0x167   : > { %v1074_v17 = vor.u32 %v1072_v44, %v1071_v9  ;;  %v1057_v20 = vrot.slane %v1055_v62, 7  ;;  %v1677_v42 = vrot.slane %v1675_v28, 5  ;;  %v6914_v30 = vcombine.low %v1949_v55, %v1949_v55  ;;  %v8327_v44 = vld [vmem:[#allocation2 + $0x70] ss:$8 sps:$4 sm:$0xff]   ;;  %v1952_v62 = vld [vmem:[#allocation2 + $0x88] sm:$0x1e] }
 0x168   : > { %v1665_v13 = vrot.slane %v1664_v49, 4  ;;  %v1683_v61 = vrot.slane %v1681_v36, 5  ;;  %v6915_v0 = vcombine.high %v1949_v55, %v1949_v55  ;;  %v6916_v22 = vcombine.low %v1950_v18, %v1950_v18 }
 0x169   : > { %v1236_v56 = vsel %vm9140_vm15, %v1074_v17, %v1235_v1  ;;  %v1060_v37 = vor.u32 %v1058_v50, %v1057_v20  ;;  %v1678_v5 = vor.u32 %v1677_v42, %v1674_v46  ;;  %v6917_v12 = vcombine.high %v1950_v18, %v1950_v18  ;;  %v8325_v18 = vld [vmem:[#allocation2 + $0x88] ss:$8 sps:$4 sm:$0xff]  }
 0x16a   : > { %1237 = vst [vmem:[#allocation2 + $0xe0] sm:$0x1f] %v1236_v56  ;;  %v1670_v10 = vsel %vm9070_vm12, %v1665_v13, %v1669_v58  ;;  %v6966_v41 = vrot.slane %v6914_v30, 9  ;;  %v2182_v24 = vrot.slane %v6915_v0, 5  ;;  %v6967_v6 = vrot.slane %v6916_v22, 9 }
 0x16b   : > { %v1230_v29 = vsel %vm9140_vm15, %v1060_v37, %v1229_v54  ;;  %v1679_v15 = vrot.slane %v1678_v5, 4  ;;  %v2186_v19 = vrot.slane %v6917_v12, 5  ;;  %v613_v35 = vadd.f32 %v9287_v53, %v9162_v31  ;;  %v1951_v58 = vld [vmem:[#allocation2 + $0x80] sm:$0x1e] }
 0x16c   : > { %1231 = vst [vmem:[#allocation2 + $0xd0] sm:$0x1f] %v1230_v29  ;;  %v2183_v34 = vsel %vm9062_vm11, %v6966_v41, %v2182_v24  ;;  %v605_v8 = vadd.f32 %v9287_v53, %v9165_v40  ;;  %v6854_v48 = vcombine.low %v1308_v23, %v1308_v23  ;;  %v6855_v33 = vcombine.high %v1308_v23, %v1308_v23  ;;  %v1238_v41 = vld [vmem:[#allocation2 + $0xf8] sm:$0x1f] }
 0x16d   : > { %v1684_v16 = vsel %vm9070_vm12, %v1679_v15, %v1683_v61  ;;  %v2187_v38 = vsel %vm9062_vm11, %v6967_v6, %v2186_v19  ;;  %v661_v27 = vmax.f32 %v613_v35, 0.0  ;;  %v6856_v52 = vcombine.low %v1309_v32, %v1309_v32 }
 0x16e   : > { %v7328_v55 = vcombine.low %v1670_v10, %v1684_v16  ;;  %v7344_v31 = vcombine.low %v2183_v34, %v2187_v38  ;;  %v659_v2 = vmax.f32 %v605_v8, 0.0  ;;  %v6857_v3 = vcombine.high %v1309_v32, %v1309_v32  ;;  %v1244_v32 = vld [vmem:[#allocation2 + $0x108] sm:$0x1f] }
 0x16f   : > { %v901_v14 = vpack.c.bf16 %v661_v27, %v661_v27  ;;  %v1686_v57 = vshrl.u32 %v6854_v48, 16  ;;  %v1689_v9 = vshll.u32 %v6854_v48, 16  ;;  %v1695_v40 = vshll.u32 %v6855_v33, 16 }
 0x170   : > { %5580 = vmatprep.mubr.bf16.mxu1 %v7328_v55  ;;  %5742 = vmatmul.mubr.bf16.gmra.mrb[40].mxu0 %v7344_v31  ;;  %v899_v50 = vpack.c.bf16 %v659_v2, %v659_v2  ;;  %v1700_v28 = vshrl.u32 %v6856_v52, 16  ;;  %v1703_v1 = vshll.u32 %v6856_v52, 16  ;;  %v1709_v49 = vshll.u32 %v6857_v3, 16  ;;  %v1311_v55 = vld [vmem:[#allocation2 + $0xa8] sm:$0x1f] }
 0x171   : > { %5749 = vmatprep.mubr.bf16.mxu0 %v8325_v18  ;;  %v1090_v46 = vshrl.u32 %v901_v14, 16  ;;  %v1093_v36 = vshll.u32 %v901_v14, 16  ;;  %5581 = vmatmul.mubr.bf16.gmra.mrb[40].mxu1 %v8327_v44  ;;  %v1688_v17 = vrot.slane %v1686_v57, 4  ;;  %v1691_v20 = vrot.slane %v1689_v9, 5  ;;  %v8338_v14 = vld [vmem:[#allocation2 + $0x80] ss:$8 sps:$4 sm:$0xff]  }
 0x172   : > { %v1076_v54 = vshrl.u32 %v899_v50, 16  ;;  %v1079_v42 = vshll.u32 %v899_v50, 16  ;;  %v1697_v30 = vrot.slane %v1695_v40, 5  ;;  %v1702_v13 = vrot.slane %v1700_v28, 4 }
 0x173   : > { %v1092_v61 = vrot.slane %v1090_v46, 7  ;;  %v1692_v0 = vor.u32 %v1691_v20, %v1688_v17  ;;  %v1705_v22 = vrot.slane %v1703_v1, 5  ;;  %v1711_v23 = vrot.slane %v1709_v49, 5  ;;  %v1959_v26 = vld [vmem:[#allocation2 + $0xd0] sm:$0x1e] }
 0x174   : > { %v1078_v56 = vrot.slane %v1076_v54, 7  ;;  %v6918_v37 = vcombine.low %v1951_v58, %v1951_v58  ;;  %v6919_v5 = vcombine.high %v1951_v58, %v1951_v58  ;;  %v6920_v12 = vcombine.low %v1952_v62, %v1952_v62 }
 0x175   : > { %v1095_v10 = vor.u32 %v1093_v36, %v1092_v61  ;;  %v1693_v24 = vrot.slane %v1692_v0, 4  ;;  %v1706_v6 = vor.u32 %v1705_v22, %v1702_v13  ;;  %v6921_v29 = vcombine.high %v1952_v62, %v1952_v62  ;;  %v1953_v0 = vld [vmem:[#allocation2 + $0xa0] sm:$0x1e]  ;;  %v1247_v22 = vld [vmem:[#allocation2 + $0x110] sm:$0x1f] }
 0x176   : > { %v1081_v15 = vor.u32 %v1079_v42, %v1078_v56  ;;  %v6968_v19 = vrot.slane %v6918_v37, 9  ;;  %v2190_v35 = vrot.slane %v6919_v5, 5  ;;  %v6969_v34 = vrot.slane %v6920_v12, 9  ;;  %v1256_v5 = vld [vmem:[#allocation2 + $0x128] sm:$0x1f] }
 0x177   : > { %v1245_v8 = vsel %vm9140_vm15, %v1095_v10, %v1244_v32  ;;  %v1698_v48 = vsel %vm9070_vm12, %v1693_v24, %v1697_v30  ;;  %v1707_v33 = vrot.slane %v1706_v6, 4  ;;  %v2194_v16 = vrot.slane %v6921_v29, 5  ;;  %v1250_v6 = vld [vmem:[#allocation2 + $0x118] sm:$0x1f] }
 0x178   : > { %1246 = vst [vmem:[#allocation2 + $0x108] sm:$0x1f] %v1245_v8  ;;  %v1239_v38 = vsel %vm9140_vm15, %v1081_v15, %v1238_v41  ;;  %v2191_v27 = vsel %vm9062_vm11, %v6968_v19, %v2190_v35  ;;  %v616_v44 = vadd.f32 %v9287_v53, %v9168_v51  ;;  %v608_v52 = vadd.f32 %v9287_v53, %v9171_v60  ;;  %v8337_v60 = vld [vmem:[#allocation2 + $0xa8] ss:$8 sps:$4 sm:$0xff]  }
 0x179   : > { %1240 = vst [vmem:[#allocation2 + $0xf8] sm:$0x1f] %v1239_v38  ;;  %v1712_v31 = vsel %vm9070_vm12, %v1707_v33, %v1711_v23  ;;  %v2195_v18 = vsel %vm9062_vm11, %v6969_v34, %v2194_v16  ;;  %v629_v2 = vadd.f32 %v9287_v53, %v9191_v43  ;;  %v621_v3 = vadd.f32 %v9287_v53, %v9206_v47  ;;  %v1241_v23 = vld [vmem:[#allocation2 + $0x100] sm:$0x1f] }
 0x17a   : > { %v7329_v57 = vcombine.low %v1698_v48, %v1712_v31  ;;  %v7345_v51 = vcombine.low %v2191_v27, %v2195_v18  ;;  %v662_v9 = vmax.f32 %v616_v44, 0.0  ;;  %v660_v40 = vmax.f32 %v608_v52, 0.0  ;;  %v1954_v48 = vld [vmem:[#allocation2 + $0xa8] sm:$0x1e]  ;;  %v1312_v44 = vld [vmem:[#allocation2 + $0xb0] sm:$0x1f] }
 0x17b   : > { %v665_v62 = vmax.f32 %v629_v2, 0.0  ;;  %v663_v50 = vmax.f32 %v621_v3, 0.0  ;;  %v6860_v28 = vcombine.low %v1311_v55, %v1311_v55  ;;  %v6861_v1 = vcombine.high %v1311_v55, %v1311_v55  ;;  %v1313_v2 = vld [vmem:[#allocation2 + $0xb8] sm:$0x1f] }
 0x17c   : > { %5588 = vmatprep.mubr.bf16.mxu1 %v7329_v57  ;;  %5750 = vmatmul.mubr.bf16.gmra.mrb[44].mxu0 %v7345_v51  ;;  %v902_v49 = vpack.c.bf16 %v662_v9, %v662_v9  ;;  %v900_v58 = vpack.c.bf16 %v660_v40, %v660_v40  ;;  %v1720_v43 = vor.u32 %v9120_v45, %v9116_v39 }
 0x17d   : > { %v10861_v47 = vcombine.high %v9074_v7, %v9074_v7  ;;  %5757 = vmatprep.mubr.bf16.mxu0 %v8337_v60  ;;  %v905_v36 = vpack.c.bf16 %v665_v62, %v665_v62  ;;  %v903_v17 = vpack.c.bf16 %v663_v50, %v663_v50  ;;  %5589 = vmatmul.mubr.bf16.gmra.mrb[44].mxu1 %v8338_v14  ;;  %v1728_v20 = vshrl.u32 %v6860_v28, 16 }
 0x17e   : > { %v1731_v54 = vshll.u32 %v6860_v28, 16  ;;  %v1097_v42 = vshrl.u32 %v902_v49, 16  ;;  %v1100_v30 = vshll.u32 %v902_v49, 16  ;;  %v1083_v13 = vshrl.u32 %v900_v58, 16 }
 0x17f   : > { %v1723_v46 = vshll.u32 %v10861_v47, 16  ;;  %v1086_v61 = vshll.u32 %v900_v58, 16  ;;  %v1118_v32 = vshrl.u32 %v905_v36, 16  ;;  %v1121_v56 = vshll.u32 %v905_v36, 16  ;;  %v1955_v58 = vld [vmem:[#allocation2 + $0xb0] sm:$0x1e] }
 0x180   : > { %v1104_v39 = vshrl.u32 %v903_v17, 16  ;;  %v1107_v45 = vshll.u32 %v903_v17, 16  ;;  %v1099_v37 = vrot.slane %v1097_v42, 7  ;;  %v1085_v7 = vrot.slane %v1083_v13, 7  ;;  %v8351_v17 = vld [vmem:[#allocation2 + $0xa0] ss:$8 sps:$4 sm:$0xff]  }
 0x181   : > { %v1721_v12 = vrot.slane %v1720_v43, 4  ;;  %v1725_v10 = vrot.slane %v1723_v46, 5  ;;  %v1120_v41 = vrot.slane %v1118_v32, 7  ;;  %v1730_v29 = vrot.slane %v1728_v20, 4  ;;  %v773_v13 = vld [vmem:[#allocation2 + $0x130] sm:$0x1] }
 0x182   : > { %v1106_v24 = vrot.slane %v1104_v39, 7  ;;  %v1733_v15 = vrot.slane %v1731_v54, 5  ;;  %v1102_v19 = vor.u32 %v1100_v30, %v1099_v37  ;;  %v1088_v35 = vor.u32 %v1086_v61, %v1085_v7 }
 0x183   : > { %v1726_v34 = vsel %vm9070_vm12, %v1721_v12, %v1725_v10  ;;  %v1737_v8 = vshll.u32 %v6861_v1, 16  ;;  %v1123_v33 = vor.u32 %v1121_v56, %v1120_v41  ;;  %v6922_v27 = vcombine.low %v1953_v0, %v1953_v0  ;;  %v872_v56 = vld [vmem:[#allocation2 + $0x130] sm:$0x10] }
 0x184   : > { %v1109_v16 = vor.u32 %v1107_v45, %v1106_v24  ;;  %v1734_v38 = vor.u32 %v1733_v15, %v1730_v29  ;;  %v1248_v52 = vsel %vm9140_vm15, %v1102_v19, %v1247_v22  ;;  %v1242_v55 = vsel %vm9140_vm15, %v1088_v35, %v1241_v23  ;;  %v1956_v23 = vld [vmem:[#allocation2 + $0xb8] sm:$0x1e]  ;;  %v767_v35 = vld [vmem:[#allocation2 + $0x120] sm:$0x1] }
 0x185   : > { %v1739_v31 = vrot.slane %v1737_v8, 5  ;;  %v6923_v18 = vcombine.high %v1953_v0, %v1953_v0  ;;  %1249 = vst [vmem:[#allocation2 + $0x110] sm:$0x1f] %v1248_v52  ;;  %1243 = vst [vmem:[#allocation2 + $0x100] sm:$0x1f] %v1242_v55  ;;  %v1257_v3 = vsel %vm9140_vm15, %v1123_v33, %v1256_v5  ;;  %v6924_v51 = vcombine.low %v1954_v48, %v1954_v48 }
 0x186   : > { %v1251_v14 = vsel %vm9140_vm15, %v1109_v16, %v1250_v6  ;;  %v1735_v57 = vrot.slane %v1734_v38, 4  ;;  %1258 = vst [vmem:[#allocation2 + $0x128] sm:$0x1f] %v1257_v3  ;;  %v6925_v9 = vcombine.high %v1954_v48, %v1954_v48  ;;  %v6970_v40 = vrot.slane %v6922_v27, 9  ;;  %v8347_v45 = vld [vmem:[#allocation2 + $0xb8] ss:$8 sps:$4 sm:$0xff]  }
 0x187   : > { %1252 = vst [vmem:[#allocation2 + $0x118] sm:$0x1f] %v1251_v14  ;;  %v2198_v60 = vrot.slane %v6923_v18, 5  ;;  %v6862_v62 = vcombine.low %v1312_v44, %v1312_v44  ;;  %v6971_v28 = vrot.slane %v6924_v51, 9  ;;  %v6863_v1 = vcombine.high %v1312_v44, %v1312_v44  ;;  %v866_v16 = vld [vmem:[#allocation2 + $0x120] sm:$0x10] }
 0x188   : > { %v1740_v50 = vsel %vm9070_vm12, %v1735_v57, %v1739_v31  ;;  %v6864_v49 = vcombine.low %v1313_v2, %v1313_v2  ;;  %v2202_v46 = vrot.slane %v6925_v9, 5  ;;  %v6865_v36 = vcombine.high %v1313_v2, %v1313_v2  ;;  %v1314_v38 = vld [vmem:[#allocation2 + $0xc0] sm:$0x1f]  ;;  %v1315_v31 = vld [vmem:[#allocation2 + $0xc8] sm:$0x1f] }
 0x189   : > { %v7330_v43 = vcombine.low %v1726_v34, %v1740_v50  ;;  %v2199_v47 = vsel %vm9062_vm11, %v6970_v40, %v2198_v60  ;;  %v1742_v20 = vshrl.u32 %v6862_v62, 16  ;;  %v1745_v54 = vshll.u32 %v6862_v62, 16 }
 0x18a   : > { %v1751_v42 = vshll.u32 %v6863_v1, 16  ;;  %v1756_v30 = vshrl.u32 %v6864_v49, 16  ;;  %v2203_v61 = vsel %vm9062_vm11, %v6971_v28, %v2202_v46  ;;  %v1759_v0 = vshll.u32 %v6864_v49, 16 }
 0x18b   : > { %5596 = vmatprep.mubr.bf16.mxu1 %v7330_v43  ;;  %v1765_v22 = vshll.u32 %v6865_v36, 16  ;;  %v6926_v32 = vcombine.low %v1955_v58, %v1955_v58  ;;  %v7346_v39 = vcombine.low %v2199_v47, %v2203_v61  ;;  %v1744_v37 = vrot.slane %v1742_v20, 4 }
 0x18c   : > { %5597 = vmatmul.mubr.bf16.gmra.mrb[48].mxu1 %v8351_v17  ;;  %v1747_v7 = vrot.slane %v1745_v54, 5  ;;  %v1753_v5 = vrot.slane %v1751_v42, 5  ;;  %v1758_v12 = vrot.slane %v1756_v30, 4  ;;  %v1761_v10 = vrot.slane %v1759_v0, 5  ;;  %v1957_v54 = vld [vmem:[#allocation2 + $0xc0] sm:$0x1e] }
 0x18d   : > { %v1767_v41 = vrot.slane %v1765_v22, 5  ;;  %v6927_v24 = vcombine.high %v1955_v58, %v1955_v58  ;;  %5758 = vmatmul.mubr.bf16.gmra.mrb[48].mxu0 %v7346_v39  ;;  %v6928_v29 = vcombine.low %v1956_v23, %v1956_v23  ;;  %v6929_v15 = vcombine.high %v1956_v23, %v1956_v23  ;;  %v8361_v58 = vld [vmem:[#allocation2 + $0xc8] ss:$8 sps:$4 sm:$0xff]  }
 0x18e   : > { %v1748_v6 = vor.u32 %v1747_v7, %v1744_v37  ;;  %v6972_v19 = vrot.slane %v6926_v32, 9  ;;  %5765 = vmatprep.mubr.bf16.mxu0 %v8347_v45  ;;  %v1762_v34 = vor.u32 %v1761_v10, %v1758_v12  ;;  %v632_v48 = vadd.f32 %v9287_v53, %v9219_v59  ;;  %v1958_v0 = vld [vmem:[#allocation2 + $0xc8] sm:$0x1e] }
 0x18f   : > { %v2206_v8 = vrot.slane %v6927_v24, 5  ;;  %v774_v33 = vsel %vm8942_vm5, 0, %v773_v13  ;;  %v6973_v44 = vrot.slane %v6928_v29, 9  ;;  %v2210_v52 = vrot.slane %v6929_v15, 5  ;;  %v1316_v29 = vld [vmem:[#allocation2 + $0xd0] sm:$0x1f] }
 0x190   : > { %v1749_v27 = vrot.slane %v1748_v6, 4  ;;  %775 = vst [vmem:[#allocation2 + $0x130] sm:$0x1] %v774_v33  ;;  %v873_v55 = vsel %vm8948_vm6, 0, %v872_v56  ;;  %v1763_v18 = vrot.slane %v1762_v34, 4  ;;  %v666_v3 = vmax.f32 %v632_v48, 0.0 }
 0x191   : > { %v2207_v2 = vsel %vm9062_vm11, %v6972_v19, %v2206_v8  ;;  %874 = vst [vmem:[#allocation2 + $0x130] sm:$0x10] %v873_v55  ;;  %v624_v59 = vadd.f32 %v9287_v53, %v9223_v11  ;;  %v2211_v57 = vsel %vm9062_vm11, %v6973_v44, %v2210_v52  ;;  %v768_v51 = vsel %vm8942_vm5, 0, %v767_v35  ;;  %v8362_v53 = vld [vmem:[#allocation2 + $0xb0] ss:$8 sps:$4 sm:$0xff]  }
 0x192   : > { %v1754_v14 = vsel %vm9070_vm12, %v1749_v27, %v1753_v5  ;;  %v867_v9 = vsel %vm8948_vm6, 0, %v866_v16  ;;  %v1768_v40 = vsel %vm9070_vm12, %v1763_v18, %v1767_v41  ;;  %v7347_v60 = vcombine.low %v2207_v2, %v2211_v57  ;;  %769 = vst [vmem:[#allocation2 + $0x120] sm:$0x1] %v768_v51 }
 0x193   : > { %v906_v62 = vpack.c.bf16 %v666_v3, %v666_v3  ;;  %v664_v50 = vmax.f32 %v624_v59, 0.0  ;;  %868 = vst [vmem:[#allocation2 + $0x120] sm:$0x10] %v867_v9  ;;  %v7331_v11 = vcombine.low %v1754_v14, %v1768_v40  ;;  %v6866_v28 = vcombine.low %v1314_v38, %v1314_v38 }
 0x194   : > { %v6867_v1 = vcombine.high %v1314_v38, %v1314_v38  ;;  %v6868_v49 = vcombine.low %v1315_v31, %v1315_v31  ;;  %v6869_v46 = vcombine.high %v1315_v31, %v1315_v31  ;;  %v6930_v41 = vcombine.low %v1957_v54, %v1957_v54  ;;  %v1317_v38 = vld [vmem:[#allocation2 + $0xd8] sm:$0x1f] }
 0x195   : > { %v1125_v43 = vshrl.u32 %v906_v62, 16  ;;  %v1128_v21 = vshll.u32 %v906_v62, 16  ;;  %v904_v47 = vpack.c.bf16 %v664_v50, %v664_v50  ;;  %5604 = vmatprep.mubr.bf16.mxu1 %v7331_v11  ;;  %5766 = vmatmul.mubr.bf16.gmra.mrb[52].mxu0 %v7347_v60  ;;  %v1770_v25 = vshrl.u32 %v6866_v28, 16  ;;  %v8375_v60 = vld [vmem:[#allocation2 + $0xc0] ss:$8 sps:$4 sm:$0xff]  }
 0x196   : > { %v1773_v36 = vshll.u32 %v6866_v28, 16  ;;  %v1779_v17 = vshll.u32 %v6867_v1, 16  ;;  %v1784_v20 = vshrl.u32 %v6868_v49, 16  ;;  %5773 = vmatprep.mubr.bf16.mxu0 %v8361_v58  ;;  %5605 = vmatmul.mubr.bf16.gmra.mrb[52].mxu1 %v8362_v53  ;;  %v1787_v61 = vshll.u32 %v6868_v49, 16  ;;  %v1960_v11 = vld [vmem:[#allocation2 + $0xd8] sm:$0x1e] }
 0x197   : > { %v1127_v42 = vrot.slane %v1125_v43, 7  ;;  %v1111_v30 = vshrl.u32 %v904_v47, 16  ;;  %v1114_v13 = vshll.u32 %v904_v47, 16  ;;  %v1772_v23 = vrot.slane %v1770_v25, 4  ;;  %v1318_v53 = vld [vmem:[#allocation2 + $0xf0] sm:$0x1f] }
 0x198   : > { %v1259_v22 = vld [vmem:[#allocation2 + $0x130] sm:$0x1f]  ;;  %v1775_v32 = vrot.slane %v1773_v36, 5  ;;  %v1781_v56 = vrot.slane %v1779_v17, 5  ;;  %v1786_v39 = vrot.slane %v1784_v20, 4  ;;  %v1789_v7 = vrot.slane %v1787_v61, 5 }
 0x199   : > { %v1130_v45 = vor.u32 %v1128_v21, %v1127_v42  ;;  %v1113_v37 = vrot.slane %v1111_v30, 7  ;;  %v1793_v5 = vshll.u32 %v6869_v46, 16  ;;  %v6931_v24 = vcombine.high %v1957_v54, %v1957_v54  ;;  %v8371_v1 = vld [vmem:[#allocation2 + $0xd8] ss:$8 sps:$4 sm:$0xff]  }
 0x19a   : > { %v1253_v12 = vld [vmem:[#allocation2 + $0x120] sm:$0x1f]  ;;  %v1776_v10 = vor.u32 %v1775_v32, %v1772_v23  ;;  %v6932_v6 = vcombine.low %v1958_v0, %v1958_v0  ;;  %v1790_v35 = vor.u32 %v1789_v7, %v1786_v39  ;;  %v6933_v48 = vcombine.high %v1958_v0, %v1958_v0  ;;  %v1319_v42 = vld [vmem:[#allocation2 + $0xf8] sm:$0x1f] }
 0x19b   : > { %v1260_v15 = vsel %vm9140_vm15, %v1130_v45, %v1259_v22  ;;  %v1116_v19 = vor.u32 %v1114_v13, %v1113_v37  ;;  %v1795_v34 = vrot.slane %v1793_v5, 5  ;;  %v6974_v33 = vrot.slane %v6930_v41, 9  ;;  %v1961_v5 = vld [vmem:[#allocation2 + $0xf0] sm:$0x1e] }
 0x19c   : > { %1261 = vst [vmem:[#allocation2 + $0x130] sm:$0x1f] %v1260_v15  ;;  %v1777_v8 = vrot.slane %v1776_v10, 4  ;;  %v2214_v16 = vrot.slane %v6931_v24, 5  ;;  %v1791_v44 = vrot.slane %v1790_v35, 4  ;;  %v6975_v52 = vrot.slane %v6932_v6, 9 }
 0x19d   : > { %v1254_v27 = vsel %vm9140_vm15, %v1116_v19, %v1253_v12  ;;  %v6870_v55 = vcombine.low %v1316_v29, %v1316_v29  ;;  %v2218_v2 = vrot.slane %v6933_v48, 5  ;;  %v6871_v3 = vcombine.high %v1316_v29, %v1316_v29  ;;  %v1962_v6 = vld [vmem:[#allocation2 + $0xf8] sm:$0x1e] }
 0x19e   : > { %1255 = vst [vmem:[#allocation2 + $0x120] sm:$0x1f] %v1254_v27  ;;  %v1782_v31 = vsel %vm9070_vm12, %v1777_v8, %v1781_v56  ;;  %v2215_v18 = vsel %vm9062_vm11, %v6974_v33, %v2214_v16  ;;  %v1796_v59 = vsel %vm9070_vm12, %v1791_v44, %v1795_v34  ;;  %v6872_v14 = vcombine.low %v1317_v38, %v1317_v38  ;;  %v8385_v48 = vld [vmem:[#allocation2 + $0xf8] ss:$8 sps:$4 sm:$0xff]  }
 0x19f   : > { %v6873_v57 = vcombine.high %v1317_v38, %v1317_v38  ;;  %v1798_v51 = vshrl.u32 %v6870_v55, 16  ;;  %v7332_v9 = vcombine.low %v1782_v31, %v1796_v59  ;;  %v2219_v40 = vsel %vm9062_vm11, %v6975_v52, %v2218_v2  ;;  %v8386_v31 = vld [vmem:[#allocation2 + $0xd0] ss:$8 sps:$4 sm:$0xff]  }
 0x1a0   : > { %v1801_v62 = vshll.u32 %v6870_v55, 16  ;;  %v1807_v50 = vshll.u32 %v6871_v3, 16  ;;  %v7348_v28 = vcombine.low %v2215_v18, %v2219_v40  ;;  %v1812_v58 = vshrl.u32 %v6872_v14, 16  ;;  %v1320_v55 = vld [vmem:[#allocation2 + $0x100] sm:$0x1f] }
 0x1a1   : > { %v1800_v49 = vrot.slane %v1798_v51, 4  ;;  %v1815_v43 = vshll.u32 %v6872_v14, 16  ;;  %5612 = vmatprep.mubr.bf16.mxu1 %v7332_v9  ;;  %v1821_v46 = vshll.u32 %v6873_v57, 16  ;;  %v6934_v25 = vcombine.low %v1959_v26, %v1959_v26  ;;  %v1321_v9 = vld [vmem:[#allocation2 + $0x108] sm:$0x1f] }
 0x1a2   : > { %v1803_v21 = vrot.slane %v1801_v62, 5  ;;  %v1809_v47 = vrot.slane %v1807_v50, 5  ;;  %5774 = vmatmul.mubr.bf16.gmra.mrb[56].mxu0 %v7348_v28  ;;  %5613 = vmatmul.mubr.bf16.gmra.mrb[56].mxu1 %v8375_v60  ;;  %v1814_v36 = vrot.slane %v1812_v58, 4  ;;  %v6935_v20 = vcombine.high %v1959_v26, %v1959_v26 }
 0x1a3   : > { %v1817_v17 = vrot.slane %v1815_v43, 5  ;;  %v6936_v54 = vcombine.low %v1960_v11, %v1960_v11  ;;  %5781 = vmatprep.mubr.bf16.mxu0 %v8371_v1  ;;  %v1823_v13 = vrot.slane %v1821_v46, 5  ;;  %v6937_v61 = vcombine.high %v1960_v11, %v1960_v11 }
 0x1a4   : > { %v1804_v30 = vor.u32 %v1803_v21, %v1800_v49  ;;  %v6976_v0 = vrot.slane %v6934_v25, 9  ;;  %v2222_v23 = vrot.slane %v6935_v20, 5  ;;  %v6874_v56 = vcombine.low %v1318_v53, %v1318_v53  ;;  %v1964_v20 = vld [vmem:[#allocation2 + $0x108] sm:$0x1e] }
 0x1a5   : > { %v1818_v22 = vor.u32 %v1817_v17, %v1814_v36  ;;  %v6977_v32 = vrot.slane %v6936_v54, 9  ;;  %v2226_v45 = vrot.slane %v6937_v61, 5  ;;  %v6875_v37 = vcombine.high %v1318_v53, %v1318_v53  ;;  %v8395_v36 = vld [vmem:[#allocation2 + $0x108] ss:$8 sps:$4 sm:$0xff]   ;;  %v1963_v61 = vld [vmem:[#allocation2 + $0x100] sm:$0x1e] }
 0x1a6   : > { %v1805_v39 = vrot.slane %v1804_v30, 4  ;;  %v6876_v7 = vcombine.low %v1319_v42, %v1319_v42  ;;  %v2223_v10 = vsel %vm9062_vm11, %v6976_v0, %v2222_v23  ;;  %v6877_v41 = vcombine.high %v1319_v42, %v1319_v42 }
 0x1a7   : > { %v1819_v12 = vrot.slane %v1818_v22, 4  ;;  %v1826_v24 = vshrl.u32 %v6874_v56, 16  ;;  %v2227_v15 = vsel %vm9062_vm11, %v6977_v32, %v2226_v45  ;;  %v1829_v19 = vshll.u32 %v6874_v56, 16  ;;  %v1322_v56 = vld [vmem:[#allocation2 + $0x110] sm:$0x1f] }
 0x1a8   : > { %v1810_v29 = vsel %vm9070_vm12, %v1805_v39, %v1809_v47  ;;  %v1835_v35 = vshll.u32 %v6875_v37, 16  ;;  %v7349_v8 = vcombine.low %v2223_v10, %v2227_v15  ;;  %v1840_v16 = vshrl.u32 %v6876_v7, 16 }
 0x1a9   : > { %v1824_v34 = vsel %vm9070_vm12, %v1819_v12, %v1823_v13  ;;  %v1828_v33 = vrot.slane %v1826_v24, 4  ;;  %v1831_v27 = vrot.slane %v1829_v19, 5  ;;  %v1843_v52 = vshll.u32 %v6876_v7, 16 }
 0x1aa   : > { %v7333_v38 = vcombine.low %v1810_v29, %v1824_v34  ;;  %v1837_v44 = vrot.slane %v1835_v35, 5  ;;  %5782 = vmatmul.mubr.bf16.gmra.mrb[60].mxu0 %v7349_v8  ;;  %v1842_v18 = vrot.slane %v1840_v16, 4  ;;  %v1849_v2 = vshll.u32 %v6877_v41, 16 }
 0x1ab   : > { %v6938_v3 = vcombine.low %v1961_v5, %v1961_v5  ;;  %v6939_v59 = vcombine.high %v1961_v5, %v1961_v5  ;;  %5789 = vmatprep.mubr.bf16.mxu0 %v8385_v48  ;;  %v1832_v14 = vor.u32 %v1831_v27, %v1828_v33  ;;  %v1845_v57 = vrot.slane %v1843_v52, 5  ;;  %v8399_v5 = vld [vmem:[#allocation2 + $0xf0] ss:$8 sps:$4 sm:$0xff]  }
 0x1ac   : > { %5620 = vmatprep.mubr.bf16.mxu1 %v7333_v38  ;;  %v6940_v51 = vcombine.low %v1962_v6, %v1962_v6  ;;  %v6941_v26 = vcombine.high %v1962_v6, %v1962_v6  ;;  %v1851_v40 = vrot.slane %v1849_v2, 5  ;;  %v6878_v50 = vcombine.low %v1320_v55, %v1320_v55  ;;  %v1323_v6 = vld [vmem:[#allocation2 + $0x118] sm:$0x1f] }
 0x1ad   : > { %5621 = vmatmul.mubr.bf16.gmra.mrb[60].mxu1 %v8386_v31  ;;  %v6978_v60 = vrot.slane %v6938_v3, 9  ;;  %v2230_v62 = vrot.slane %v6939_v59, 5  ;;  %v1833_v11 = vrot.slane %v1832_v14, 4  ;;  %v1846_v53 = vor.u32 %v1845_v57, %v1842_v18  ;;  %v1965_v57 = vld [vmem:[#allocation2 + $0x110] sm:$0x1e] }
 0x1ae   : > { %v6979_v28 = vrot.slane %v6940_v51, 9  ;;  %v2234_v1 = vrot.slane %v6941_v26, 5  ;;  %v6879_v58 = vcombine.high %v1320_v55, %v1320_v55  ;;  %v6880_v43 = vcombine.low %v1321_v9, %v1321_v9 }
 0x1af   : > { %v2231_v49 = vsel %vm9062_vm11, %v6978_v60, %v2230_v62  ;;  %v6881_v21 = vcombine.high %v1321_v9, %v1321_v9  ;;  %v1838_v47 = vsel %vm9070_vm12, %v1833_v11, %v1837_v44  ;;  %v1847_v46 = vrot.slane %v1846_v53, 4  ;;  %v8409_v9 = vld [vmem:[#allocation2 + $0x118] ss:$8 sps:$4 sm:$0xff]  }
 0x1b0   : > { %v2235_v25 = vsel %vm9062_vm11, %v6979_v28, %v2234_v1  ;;  %v1854_v17 = vshrl.u32 %v6878_v50, 16  ;;  %v1857_v42 = vshll.u32 %v6878_v50, 16  ;;  %v1863_v30 = vshll.u32 %v6879_v58, 16  ;;  %v1966_v62 = vld [vmem:[#allocation2 + $0x118] sm:$0x1e] }
 0x1b1   : > { %v7350_v54 = vcombine.low %v2231_v49, %v2235_v25  ;;  %v1868_v13 = vshrl.u32 %v6880_v43, 16  ;;  %v1852_v0 = vsel %vm9070_vm12, %v1847_v46, %v1851_v40  ;;  %v1871_v23 = vshll.u32 %v6880_v43, 16  ;;  %v1324_v1 = vld [vmem:[#allocation2 + $0x120] sm:$0x1f] }
 0x1b2   : > { %v1856_v22 = vrot.slane %v1854_v17, 4  ;;  %v1877_v32 = vshll.u32 %v6881_v21, 16  ;;  %v7334_v39 = vcombine.low %v1838_v47, %v1852_v0  ;;  %v1859_v45 = vrot.slane %v1857_v42, 5  ;;  %v8412_v49 = vld [vmem:[#allocation2 + $0x100] ss:$8 sps:$4 sm:$0xff]  }
 0x1b3   : > { %5790 = vmatmul.mubr.bf16.gmra.mrb[64].mxu0 %v7350_v54  ;;  %v1865_v37 = vrot.slane %v1863_v30, 5  ;;  %v1870_v7 = vrot.slane %v1868_v13, 4  ;;  %v1873_v12 = vrot.slane %v1871_v23, 5  ;;  %v6942_v41 = vcombine.low %v1963_v61, %v1963_v61 }
 0x1b4   : > { %5797 = vmatprep.mubr.bf16.mxu0 %v8395_v36  ;;  %v1879_v10 = vrot.slane %v1877_v32, 5  ;;  %v6943_v24 = vcombine.high %v1963_v61, %v1963_v61  ;;  %5628 = vmatprep.mubr.bf16.mxu1 %v7334_v39  ;;  %v1860_v29 = vor.u32 %v1859_v45, %v1856_v22  ;;  %v6944_v15 = vcombine.low %v1964_v20, %v1964_v20 }
 0x1b5   : > { %v6945_v19 = vcombine.high %v1964_v20, %v1964_v20  ;;  %v6882_v35 = vcombine.low %v1322_v56, %v1322_v56  ;;  %5629 = vmatmul.mubr.bf16.gmra.mrb[64].mxu1 %v8399_v5  ;;  %v1874_v34 = vor.u32 %v1873_v12, %v1870_v7  ;;  %v6980_v8 = vrot.slane %v6942_v41, 9  ;;  %v1325_v20 = vld [vmem:[#allocation2 + $0x128] sm:$0x1f]  ;;  %v3285_v41 = vld [vmem:[#allocation2 + $0x10] sm:$0x1f] }
 0x1b6   : > { %v2238_v48 = vrot.slane %v6943_v24, 5  ;;  %v6883_v33 = vcombine.high %v1322_v56, %v1322_v56  ;;  %v1861_v16 = vrot.slane %v1860_v29, 4  ;;  %v6981_v38 = vrot.slane %v6944_v15, 9 }
 0x1b7   : > { %v2242_v27 = vrot.slane %v6945_v19, 5  ;;  %v6884_v44 = vcombine.low %v1323_v6, %v1323_v6  ;;  %v1875_v52 = vrot.slane %v1874_v34, 4  ;;  %v6885_v31 = vcombine.high %v1323_v6, %v1323_v6  ;;  %v1967_v19 = vld [vmem:[#allocation2 + $0x120] sm:$0x1e]  ;;  %v8422_v34 = vld [vmem:[#allocation2 + $0x128] ss:$8 sps:$4 sm:$0xff]  }
 0x1b8   : > { %v2239_v55 = vsel %vm9062_vm11, %v6980_v8, %v2238_v48  ;;  %v1882_v18 = vshrl.u32 %v6882_v35, 16  ;;  %v1866_v2 = vsel %vm9070_vm12, %v1861_v16, %v1865_v37  ;;  %v1885_v59 = vshll.u32 %v6882_v35, 16 }
 0x1b9   : > { %v2243_v3 = vsel %vm9062_vm11, %v6981_v38, %v2242_v27  ;;  %v1891_v14 = vshll.u32 %v6883_v33, 16  ;;  %v1880_v51 = vsel %vm9070_vm12, %v1875_v52, %v1879_v10  ;;  %v1896_v60 = vshrl.u32 %v6884_v44, 16  ;;  %v1968_v10 = vld [vmem:[#allocation2 + $0x128] sm:$0x1e]  ;;  %v8427_v52 = vld [vmem:[#allocation2 + $0x110] ss:$8 sps:$4 sm:$0xff]  }
 0x1ba   : > { %v7351_v26 = vcombine.low %v2239_v55, %v2243_v3  ;;  %v1884_v40 = vrot.slane %v1882_v18, 4  ;;  %v7335_v50 = vcombine.low %v1866_v2, %v1880_v51  ;;  %v1887_v11 = vrot.slane %v1885_v59, 5  ;;  %v3286_v3 = vld [vmem:[#allocation2 + $0x18] sm:$0x1f] }
 0x1bb   : > { %v1893_v53 = vrot.slane %v1891_v14, 5  ;;  %v1899_v28 = vshll.u32 %v6884_v44, 16  ;;  %v1898_v58 = vrot.slane %v1896_v60, 4  ;;  %v1905_v43 = vshll.u32 %v6885_v31, 16 }
 0x1bc   : > { %5798 = vmatmul.mubr.bf16.gmra.mrb[68].mxu0 %v7351_v26  ;;  %v6946_v21 = vcombine.low %v1965_v57, %v1965_v57  ;;  %v6947_v47 = vcombine.high %v1965_v57, %v1965_v57  ;;  %5636 = vmatprep.mubr.bf16.mxu1 %v7335_v50  ;;  %v1888_v46 = vor.u32 %v1887_v11, %v1884_v40 }
 0x1bd   : > { %5805 = vmatprep.mubr.bf16.mxu0 %v8409_v9  ;;  %v1901_v25 = vrot.slane %v1899_v28, 5  ;;  %v6948_v36 = vcombine.low %v1966_v62, %v1966_v62  ;;  %v6949_v17 = vcombine.high %v1966_v62, %v1966_v62  ;;  %5637 = vmatmul.mubr.bf16.gmra.mrb[68].mxu1 %v8412_v49  ;;  %v1907_v54 = vrot.slane %v1905_v43, 5 }
 0x1be   : > { %v6982_v42 = vrot.slane %v6946_v21, 9  ;;  %v2246_v30 = vrot.slane %v6947_v47, 5  ;;  %v6886_v13 = vcombine.low %v1324_v1, %v1324_v1  ;;  %v1889_v61 = vrot.slane %v1888_v46, 4 }
 0x1bf   : > { %v1902_v0 = vor.u32 %v1901_v25, %v1898_v58  ;;  %v6983_v22 = vrot.slane %v6948_v36, 9  ;;  %v2250_v23 = vrot.slane %v6949_v17, 5  ;;  %v6887_v56 = vcombine.high %v1324_v1, %v1324_v1  ;;  %v2932_v25 = vld [vmem:[#allocation2 + $0x8] sm:$0x1e] }
 0x1c0   : > { %v2247_v32 = vsel %vm9062_vm11, %v6982_v42, %v2246_v30  ;;  %v6888_v39 = vcombine.low %v1325_v20, %v1325_v20  ;;  %v6889_v45 = vcombine.high %v1325_v20, %v1325_v20  ;;  %v1894_v37 = vsel %vm9070_vm12, %v1889_v61, %v1893_v53  ;;  %v2933_v42 = vld [vmem:[#allocation2 + $0x10] sm:$0x1e] }
 0x1c1   : > { %v1903_v7 = vrot.slane %v1902_v0, 4  ;;  %v2251_v5 = vsel %vm9062_vm11, %v6983_v22, %v2250_v23  ;;  %v1910_v12 = vshrl.u32 %v6886_v13, 16  ;;  %v1913_v6 = vshll.u32 %v6886_v13, 16  ;;  %v3287_v22 = vld [vmem:[#allocation2 + $0x20] sm:$0x1f] }
 0x1c2   : > { %v7352_v24 = vcombine.low %v2247_v32, %v2251_v5  ;;  %v1919_v29 = vshll.u32 %v6887_v56, 16  ;;  %v1924_v15 = vshrl.u32 %v6888_v39, 16  ;;  %v1927_v48 = vshll.u32 %v6888_v39, 16  ;;  %v8445_v56 = vld [vmem:[#allocation2 + $0x120] ss:$8 sps:$4 sm:$0xff]  }
 0x1c3   : > { %v1908_v35 = vsel %vm9070_vm12, %v1903_v7, %v1907_v54  ;;  %v1912_v8 = vrot.slane %v1910_v12, 4  ;;  %v1933_v33 = vshll.u32 %v6889_v45, 16  ;;  %v1915_v38 = vrot.slane %v1913_v6, 5 }
 0x1c4   : > { %v7336_v16 = vcombine.low %v1894_v37, %v1908_v35  ;;  %5806 = vmatmul.mubr.bf16.gmra.mrb[72].mxu0 %v7352_v24  ;;  %v1921_v27 = vrot.slane %v1919_v29, 5  ;;  %v1926_v44 = vrot.slane %v1924_v15, 4  ;;  %v1929_v55 = vrot.slane %v1927_v48, 5 }
 0x1c5   : > { %5813 = vmatprep.mubr.bf16.mxu0 %v8422_v34  ;;  %v1935_v31 = vrot.slane %v1933_v33, 5  ;;  %v6950_v18 = vcombine.low %v1967_v19, %v1967_v19  ;;  %v6951_v2 = vcombine.high %v1967_v19, %v1967_v19  ;;  %v1916_v59 = vor.u32 %v1915_v38, %v1912_v8 }
 0x1c6   : > { %5644 = vmatprep.mubr.bf16.mxu1 %v7336_v16  ;;  %v6952_v14 = vcombine.low %v1968_v10, %v1968_v10  ;;  %v6953_v57 = vcombine.high %v1968_v10, %v1968_v10  ;;  %v7146_v51 = vcombine.low %v3285_v41, %v3285_v41  ;;  %v1930_v26 = vor.u32 %v1929_v55, %v1926_v44  ;;  %v3288_v10 = vld [vmem:[#allocation2 + $0x28] sm:$0x1f] }
 0x1c7   : > { %5645 = vmatmul.mubr.bf16.gmra.mrb[72].mxu1 %v8427_v52  ;;  %v6984_v9 = vrot.slane %v6950_v18, 9  ;;  %v2254_v40 = vrot.slane %v6951_v2, 5  ;;  %v7147_v60 = vcombine.high %v3285_v41, %v3285_v41  ;;  %v1917_v62 = vrot.slane %v1916_v59, 4  ;;  %v2292_v55 = vld [vmem:[#allocation2 + $0x8] sm:$0x1f] }
 0x1c8   : > { %v6985_v50 = vrot.slane %v6952_v14, 9  ;;  %v2258_v11 = vrot.slane %v6953_v57, 5  ;;  %v7148_v53 = vcombine.low %v3286_v3, %v3286_v3  ;;  %v1931_v28 = vrot.slane %v1930_v26, 4  ;;  %v2293_v59 = vld [vmem:[#allocation2 + $0x10] sm:$0x1f] }
 0x1c9   : > { %v2255_v1 = vsel %vm9062_vm11, %v6984_v9, %v2254_v40  ;;  %v7149_v49 = vcombine.high %v3286_v3, %v3286_v3  ;;  %v3478_v58 = vshrl.u32 %v7146_v51, 16  ;;  %v1922_v43 = vsel %vm9070_vm12, %v1917_v62, %v1921_v27  ;;  %v2934_v9 = vld [vmem:[#allocation2 + $0x18] sm:$0x1e] }
 0x1ca   : > { %v2259_v21 = vsel %vm9062_vm11, %v6985_v50, %v2258_v11  ;;  %v3481_v47 = vshll.u32 %v7146_v51, 16  ;;  %v3487_v46 = vshll.u32 %v7147_v60, 16  ;;  %v1936_v36 = vsel %vm9070_vm12, %v1931_v28, %v1935_v31  ;;  %v8450_v11 = vld [vmem:[#allocation2 + $0x10] ss:$8 sps:$4 sm:$0xff]  }
 0x1cb   : > { %v7353_v17 = vcombine.low %v2255_v1, %v2259_v21  ;;  %v3480_v20 = vrot.slane %v3478_v58, 4  ;;  %v3492_v54 = vshrl.u32 %v7148_v53, 16  ;;  %v7337_v30 = vcombine.low %v1922_v43, %v1936_v36 }
 0x1cc   : > { %v3483_v13 = vrot.slane %v3481_v47, 5  ;;  %v3489_v61 = vrot.slane %v3487_v46, 5  ;;  %v3495_v0 = vshll.u32 %v7148_v53, 16  ;;  %v3501_v32 = vshll.u32 %v7149_v49, 16 }
 0x1cd   : > { %5814 = vmatmul.mubr.bf16.gmra.mrb[76].mxu0 %v7353_v17  ;;  %v3494_v23 = vrot.slane %v3492_v54, 4  ;;  %v7050_v39 = vcombine.low %v2932_v25, %v2932_v25  ;;  %v7051_v45 = vcombine.high %v2932_v25, %v2932_v25  ;;  %5652 = vmatprep.mubr.bf16.mxu1 %v7337_v30  ;;  %v7052_v5 = vcombine.low %v2933_v42, %v2933_v42 }
 0x1ce   : > { %v3484_v37 = vor.u32 %v3483_v13, %v3480_v20  ;;  %v3497_v7 = vrot.slane %v3495_v0, 5  ;;  %v7053_v12 = vcombine.high %v2933_v42, %v2933_v42  ;;  %v3503_v41 = vrot.slane %v3501_v32, 5  ;;  %v2935_v13 = vld [vmem:[#allocation2 + $0x20] sm:$0x1e] }
 0x1cf   : > { %5653 = vmatmul.mubr.bf16.gmra.mrb[76].mxu1 %v8445_v56  ;;  %v7114_v24 = vrot.slane %v7050_v39, 9  ;;  %v3126_v6 = vrot.slane %v7051_v45, 5  ;;  %v7150_v29 = vcombine.low %v3287_v22, %v3287_v22  ;;  %v7115_v35 = vrot.slane %v7052_v5, 9 }
 0x1d0   : > { %v3485_v15 = vrot.slane %v3484_v37, 4  ;;  %v3498_v19 = vor.u32 %v3497_v7, %v3494_v23  ;;  %v3130_v34 = vrot.slane %v7053_v12, 5  ;;  %v7151_v48 = vcombine.high %v3287_v22, %v3287_v22  ;;  %v3289_v37 = vld [vmem:[#allocation2 + $0x30] sm:$0x1f] }
 0x1d1   : > { %v3127_v8 = vsel %vm9062_vm11, %v7114_v24, %v3126_v6  ;;  %v7152_v33 = vcombine.low %v3288_v10, %v3288_v10  ;;  %v7153_v16 = vcombine.high %v3288_v10, %v3288_v10  ;;  %v3506_v52 = vshrl.u32 %v7150_v29, 16 }
 0x1d2   : > { %v3490_v38 = vsel %vm9070_vm12, %v3485_v15, %v3489_v61  ;;  %v3499_v27 = vrot.slane %v3498_v19, 4  ;;  %v3131_v44 = vsel %vm9062_vm11, %v7115_v35, %v3130_v34  ;;  %v3509_v18 = vshll.u32 %v7150_v29, 16 }
 0x1d3   : > { %v7386_v31 = vcombine.low %v3127_v8, %v3131_v44  ;;  %v3515_v2 = vshll.u32 %v7151_v48, 16  ;;  %v3520_v3 = vshrl.u32 %v7152_v33, 16  ;;  %v3508_v57 = vrot.slane %v3506_v52, 4  ;;  %v8464_v8 = vld [vmem:[#allocation2 + $0x20] ss:$8 sps:$4 sm:$0xff]  }
 0x1d4   : > { %v3504_v14 = vsel %vm9070_vm12, %v3499_v27, %v3503_v41  ;;  %v3523_v51 = vshll.u32 %v7152_v33, 16  ;;  %v3529_v26 = vshll.u32 %v7153_v16, 16  ;;  %v3511_v60 = vrot.slane %v3509_v18, 5  ;;  %v3290_v41 = vld [vmem:[#allocation2 + $0x38] sm:$0x1f] }
 0x1d5   : > { %v7418_v40 = vcombine.low %v3490_v38, %v3504_v14  ;;  %5854 = vmatprep.mubr.bf16.mxu1 %v7386_v31  ;;  %v3517_v62 = vrot.slane %v3515_v2, 5  ;;  %v3522_v50 = vrot.slane %v3520_v3, 4  ;;  %v6986_v1 = vcombine.low %v2292_v55, %v2292_v55  ;;  %v2294_v14 = vld [vmem:[#allocation2 + $0x18] sm:$0x1f] }
 0x1d6   : > { %v3525_v53 = vrot.slane %v3523_v51, 5  ;;  %v3531_v28 = vrot.slane %v3529_v26, 5  ;;  %v6987_v49 = vcombine.high %v2292_v55, %v2292_v55  ;;  %v3512_v58 = vor.u32 %v3511_v60, %v3508_v57  ;;  %v2295_v57 = vld [vmem:[#allocation2 + $0x20] sm:$0x1f]  ;;  %v8482_v60 = vld [vmem:[#allocation3 + $0x208] sm:$0xff]  }
 0x1d7   : > { %6015 = vmatprep.mubr.bf16.mxu0 %v7418_v40  ;;  %v6988_v43 = vcombine.low %v2293_v59, %v2293_v59  ;;  %v6989_v21 = vcombine.high %v2293_v59, %v2293_v59  ;;  %v7054_v47 = vcombine.low %v2934_v9, %v2934_v9  ;;  %v2485_v25 = vshrl.u32 %v6986_v1, 16 }
 0x1d8   : > { %6016 = vmatmul.mubr.bf16.vlgmr.msra.gmra.mrb[80].mxu0 %v8450_v11  ;;  %v3526_v46 = vor.u32 %v3525_v53, %v3522_v50  ;;  %v2488_v36 = vshll.u32 %v6986_v1, 16  ;;  %v2494_v17 = vshll.u32 %v6987_v49, 16  ;;  %v3513_v20 = vrot.slane %v3512_v58, 4 }
 0x1d9   : > { %v2499_v54 = vshrl.u32 %v6988_v43, 16  ;;  %v2502_v42 = vshll.u32 %v6988_v43, 16  ;;  %v2508_v30 = vshll.u32 %v6989_v21, 16  ;;  %v2487_v0 = vrot.slane %v2485_v25, 4  ;;  %v8747_v43 = vld [vmem:[#allocation3 + $0x200] sm:$0xff]  }
 0x1da   : > { %v3527_v61 = vrot.slane %v3526_v46, 4  ;;  %v2490_v22 = vrot.slane %v2488_v36, 5  ;;  %v2496_v23 = vrot.slane %v2494_v17, 5  ;;  %v3518_v32 = vsel %vm9070_vm12, %v3513_v20, %v3517_v62  ;;  %v2936_v36 = vld [vmem:[#allocation2 + $0x28] sm:$0x1e] }
 0x1db   : > { %v2501_v56 = vrot.slane %v2499_v54, 4  ;;  %v2504_v39 = vrot.slane %v2502_v42, 5  ;;  %v2510_v45 = vrot.slane %v2508_v30, 5  ;;  %v7055_v12 = vcombine.high %v2934_v9, %v2934_v9  ;;  %v8509_v30 = vld [vmem:[#allocation3 + $0x210] sm:$0xff]  }
 0x1dc   : > { %v3532_v7 = vsel %vm9070_vm12, %v3527_v61, %v3531_v28  ;;  %v2491_v5 = vor.u32 %v2490_v22, %v2487_v0  ;;  %v7056_v10 = vcombine.low %v2935_v13, %v2935_v13  ;;  %v7057_v29 = vcombine.high %v2935_v13, %v2935_v13 }
 0x1dd   : > { %v7419_v24 = vcombine.low %v3518_v32, %v3532_v7  ;;  %v2505_v6 = vor.u32 %v2504_v39, %v2501_v56  ;;  %v7116_v15 = vrot.slane %v7054_v47, 9  ;;  %v3134_v35 = vrot.slane %v7055_v12, 5 }
 0x1de   : > { %v2492_v19 = vrot.slane %v2491_v5, 4  ;;  %v7117_v34 = vrot.slane %v7056_v10, 9  ;;  %v7154_v48 = vcombine.low %v3289_v37, %v3289_v37  ;;  %v3138_v16 = vrot.slane %v7057_v29, 5 }
 0x1df   : > { %6023 = vmatprep.mubr.bf16.mxu0 %v7419_v24  ;;  %v2506_v33 = vrot.slane %v2505_v6, 4  ;;  %v7155_v38 = vcombine.high %v3289_v37, %v3289_v37  ;;  %v7156_v27 = vcombine.low %v3290_v41, %v3290_v41  ;;  %v3135_v52 = vsel %vm9062_vm11, %v7116_v15, %v3134_v35  ;;  %v3291_v37 = vld [vmem:[#allocation2 + $0x40] sm:$0x1f] }
 0x1e0   : > { %v2497_v44 = vsel %vm9070_vm12, %v2492_v19, %v2496_v23  ;;  %6024 = vmatmul.mubr.bf16.gmra.mrb[84].mxu0 %v8464_v8  ;;  %v7157_v55 = vcombine.high %v3290_v41, %v3290_v41  ;;  %v3534_v31 = vshrl.u32 %v7154_v48, 16  ;;  %v3139_v2 = vsel %vm9062_vm11, %v7117_v34, %v3138_v16  ;;  %v2937_v23 = vld [vmem:[#allocation2 + $0x30] sm:$0x1e]  ;;  %v3292_v34 = vld [vmem:[#allocation2 + $0x48] sm:$0x1f] }
 0x1e1   : > { %v2511_v18 = vsel %vm9070_vm12, %v2506_v33, %v2510_v45  ;;  %v3537_v3 = vshll.u32 %v7154_v48, 16  ;;  %v3543_v59 = vshll.u32 %v7155_v38, 16  ;;  %v7387_v26 = vcombine.low %v3135_v52, %v3139_v2  ;;  %v8536_v48 = vld [vmem:[#allocation3 + $0x218] sm:$0xff]  }
 0x1e2   : > { %v7370_v51 = vcombine.low %v2497_v44, %v2511_v18  ;;  %v3536_v9 = vrot.slane %v3534_v31, 4  ;;  %v3548_v40 = vshrl.u32 %v7156_v27, 16  ;;  %v3551_v11 = vshll.u32 %v7156_v27, 16  ;;  %v8477_v31 = vld [vmem:[#allocation2 + $0x30] ss:$8 sps:$4 sm:$0xff]  }
 0x1e3   : > { %v3539_v62 = vrot.slane %v3537_v3, 5  ;;  %v3545_v50 = vrot.slane %v3543_v59, 5  ;;  %v3557_v53 = vshll.u32 %v7157_v55, 16  ;;  %v6990_v1 = vcombine.low %v2294_v14, %v2294_v14 }
 0x1e4   : > { %5855 = vmatmul.mubr.bf16.vlgmr.msra.gmra.mrb[80].mxu1 %v7370_v51  ;;  %v3550_v28 = vrot.slane %v3548_v40, 4  ;;  %v6991_v49 = vcombine.high %v2294_v14, %v2294_v14  ;;  %v6992_v58 = vcombine.low %v2295_v57, %v2295_v57  ;;  %v3553_v47 = vrot.slane %v3551_v11, 5 }
 0x1e5   : > { %8082 = vmatpush3.bf16.msra.mxu1 %v8747_v43  ;;  %5862 = vmatprep.mubr.bf16.mxu1 %v7387_v26  ;;  %v3540_v21 = vor.u32 %v3539_v62, %v3536_v9  ;;  %v3559_v46 = vrot.slane %v3557_v53, 5  ;;  %v6993_v25 = vcombine.high %v2295_v57, %v2295_v57  ;;  %v2513_v17 = vshrl.u32 %v6990_v1, 16  ;;  %v8563_v57 = vld [vmem:[#allocation3 + $0x220] sm:$0xff]  }
 0x1e6   : > { %v2516_v20 = vshll.u32 %v6990_v1, 16  ;;  %v2522_v54 = vshll.u32 %v6991_v49, 16  ;;  %v2527_v42 = vshrl.u32 %v6992_v58, 16  ;;  %8083 = vmatprep.subr.bf16.mxu1 %v8482_v60  ;;  %v3554_v61 = vor.u32 %v3553_v47, %v3550_v28  ;;  %v2297_v28 = vld [vmem:[#allocation2 + $0x30] sm:$0x1f] }
 0x1e7   : > { %v3541_v13 = vrot.slane %v3540_v21, 4  ;;  %v2530_v0 = vshll.u32 %v6992_v58, 16  ;;  %v2536_v22 = vshll.u32 %v6993_v25, 16  ;;  %v2515_v32 = vrot.slane %v2513_v17, 4 }
 0x1e8   : > { %v2518_v56 = vrot.slane %v2516_v20, 5  ;;  %v2524_v39 = vrot.slane %v2522_v54, 5  ;;  %v2529_v45 = vrot.slane %v2527_v42, 4  ;;  %v3555_v5 = vrot.slane %v3554_v61, 4 }
 0x1e9   : > { %v3546_v7 = vsel %vm9070_vm12, %v3541_v13, %v3545_v50  ;;  %v2532_v12 = vrot.slane %v2530_v0, 5  ;;  %v2538_v10 = vrot.slane %v2536_v22, 5  ;;  %8084 = vmatpush3.bf16.msra.mxu1 %v8482_v60  ;;  %v7058_v24 = vcombine.low %v2936_v36, %v2936_v36  ;;  %v2296_v60 = vld [vmem:[#allocation2 + $0x28] sm:$0x1f] }
 0x1ea   : > { %v2519_v41 = vor.u32 %v2518_v56, %v2515_v32  ;;  %v7059_v6 = vcombine.high %v2936_v36, %v2936_v36  ;;  %v7060_v29 = vcombine.low %v2937_v23, %v2937_v23  ;;  %8085 = vmatprep.subr.bf16.mxu1 %v8509_v30  ;;  %v3560_v15 = vsel %vm9070_vm12, %v3555_v5, %v3559_v46  ;;  %v8590_v36 = vld [vmem:[#allocation3 + $0x228] sm:$0xff]  }
 0x1eb   : > { %v2533_v19 = vor.u32 %v2532_v12, %v2529_v45  ;;  %v7061_v35 = vcombine.high %v2937_v23, %v2937_v23  ;;  %v7158_v8 = vcombine.low %v3291_v37, %v3291_v37  ;;  %v7420_v33 = vcombine.low %v3546_v7, %v3560_v15  ;;  %v2939_v12 = vld [vmem:[#allocation2 + $0x40] sm:$0x1e] }
 0x1ec   : > { %v2520_v16 = vrot.slane %v2519_v41, 4  ;;  %v7118_v38 = vrot.slane %v7058_v24, 9  ;;  %v3142_v27 = vrot.slane %v7059_v6, 5  ;;  %v7119_v52 = vrot.slane %v7060_v29, 9 }
 0x1ed   : > { %v2534_v44 = vrot.slane %v2533_v19, 4  ;;  %v3146_v55 = vrot.slane %v7061_v35, 5  ;;  %v7159_v18 = vcombine.high %v3291_v37, %v3291_v37  ;;  %8086 = vmatpush3.bf16.msra.mxu1 %v8509_v30  ;;  %6031 = vmatprep.mubr.bf16.mxu0 %v7420_v33  ;;  %v7160_v59 = vcombine.low %v3292_v34, %v3292_v34 }
 0x1ee   : > { %v2525_v2 = vsel %vm9070_vm12, %v2520_v16, %v2524_v39  ;;  %v3143_v3 = vsel %vm9062_vm11, %v7118_v38, %v3142_v27  ;;  %v7161_v14 = vcombine.high %v3292_v34, %v3292_v34  ;;  %6032 = vmatmul.mubr.bf16.gmra.mrb[88].mxu0 %v8477_v31  ;;  %v3562_v9 = vshrl.u32 %v7158_v8, 16  ;;  %8087 = vmatprep.subr.bf16.mxu1 %v8536_v48  ;;  %v2938_v39 = vld [vmem:[#allocation2 + $0x38] sm:$0x1e]  ;;  %v3293_v34 = vld [vmem:[#allocation2 + $0x60] sm:$0x1f] }
 0x1ef   : > { %v2539_v51 = vsel %vm9070_vm12, %v2534_v44, %v2538_v10  ;;  %v3147_v26 = vsel %vm9062_vm11, %v7119_v52, %v3146_v55  ;;  %v3565_v40 = vshll.u32 %v7158_v8, 16  ;;  %v3571_v11 = vshll.u32 %v7159_v18, 16  ;;  %v3294_v38 = vld [vmem:[#allocation2 + $0x68] sm:$0x1f] }
 0x1f0   : > { %v7371_v62 = vcombine.low %v2525_v2, %v2539_v51  ;;  %v7388_v50 = vcombine.low %v3143_v3, %v3147_v26  ;;  %v3576_v53 = vshrl.u32 %v7160_v59, 16  ;;  %v3564_v1 = vrot.slane %v3562_v9, 4  ;;  %v8491_v3 = vld [vmem:[#allocation2 + $0x40] ss:$8 sps:$4 sm:$0xff]  }
 0x1f1   : > { %v3567_v49 = vrot.slane %v3565_v40, 5  ;;  %v3579_v58 = vshll.u32 %v7160_v59, 16  ;;  %v3585_v43 = vshll.u32 %v7161_v14, 16  ;;  %8088 = vmatpush3.bf16.msra.mxu1 %v8536_v48  ;;  %v3573_v21 = vrot.slane %v3571_v11, 5 }
 0x1f2   : > { %5863 = vmatmul.mubr.bf16.gmra.mrb[84].mxu1 %v7371_v62  ;;  %v3578_v47 = vrot.slane %v3576_v53, 4  ;;  %v6994_v46 = vcombine.low %v2296_v60, %v2296_v60  ;;  %v6995_v25 = vcombine.high %v2296_v60, %v2296_v60  ;;  %8089 = vmatprep.subr.bf16.mxu1 %v8563_v57  ;;  %v6996_v42 = vcombine.low %v2297_v28, %v2297_v28 }
 0x1f3   : > { %5870 = vmatprep.mubr.bf16.mxu1 %v7388_v50  ;;  %v3568_v17 = vor.u32 %v3567_v49, %v3564_v1  ;;  %v3581_v20 = vrot.slane %v3579_v58, 5  ;;  %v3587_v54 = vrot.slane %v3585_v43, 5  ;;  %v6997_v30 = vcombine.high %v2297_v28, %v2297_v28  ;;  %v2298_v50 = vld [vmem:[#allocation2 + $0x38] sm:$0x1f]  ;;  %v2299_v49 = vld [vmem:[#allocation2 + $0x40] sm:$0x1f] }
 0x1f4   : > { %v2541_v13 = vshrl.u32 %v6994_v46, 16  ;;  %v2544_v61 = vshll.u32 %v6994_v46, 16  ;;  %v2550_v0 = vshll.u32 %v6995_v25, 16  ;;  %v2555_v32 = vshrl.u32 %v6996_v42, 16 }
 0x1f5   : > { %v3569_v22 = vrot.slane %v3568_v17, 4  ;;  %v3582_v23 = vor.u32 %v3581_v20, %v3578_v47  ;;  %v2558_v56 = vshll.u32 %v6996_v42, 16  ;;  %8090 = vmatpush3.bf16.msra.mxu1 %v8563_v57  ;;  %v2564_v5 = vshll.u32 %v6997_v30, 16 }
 0x1f6   : > { %v2543_v45 = vrot.slane %v2541_v13, 4  ;;  %v2546_v37 = vrot.slane %v2544_v61, 5  ;;  %v2552_v7 = vrot.slane %v2550_v0, 5  ;;  %8091 = vmatprep.subr.bf16.mxu1 %v8590_v36  ;;  %v2557_v24 = vrot.slane %v2555_v32, 4 }
 0x1f7   : > { %v3574_v10 = vsel %vm9070_vm12, %v3569_v22, %v3573_v21  ;;  %v3583_v41 = vrot.slane %v3582_v23, 4  ;;  %v2560_v6 = vrot.slane %v2558_v56, 5  ;;  %v2566_v15 = vrot.slane %v2564_v5, 5 }
 0x1f8   : > { %v2547_v29 = vor.u32 %v2546_v37, %v2543_v45  ;;  %v7062_v19 = vcombine.low %v2938_v39, %v2938_v39  ;;  %v7063_v35 = vcombine.high %v2938_v39, %v2938_v39  ;;  %v7064_v33 = vcombine.low %v2939_v12, %v2939_v12 }
 0x1f9   : > { %v3588_v8 = vsel %vm9070_vm12, %v3583_v41, %v3587_v54  ;;  %v2561_v48 = vor.u32 %v2560_v6, %v2557_v24  ;;  %v7065_v16 = vcombine.high %v2939_v12, %v2939_v12  ;;  %8092 = vmatpush3.bf16.msra.mxu1 %v8590_v36  ;;  %v7162_v59 = vcombine.low %v3293_v34, %v3293_v34  ;;  %v2940_v12 = vld [vmem:[#allocation2 + $0x58] sm:$0x1e] }
 0x1fa   : > { %v7421_v27 = vcombine.low %v3574_v10, %v3588_v8  ;;  %v2548_v44 = vrot.slane %v2547_v29, 4  ;;  %v7120_v52 = vrot.slane %v7062_v19, 9  ;;  %v3150_v55 = vrot.slane %v7063_v35, 5  ;;  %v2941_v29 = vld [vmem:[#allocation2 + $0x60] sm:$0x1e] }
 0x1fb   : > { %v2562_v31 = vrot.slane %v2561_v48, 4  ;;  %v7121_v18 = vrot.slane %v7064_v33, 9  ;;  %v3154_v2 = vrot.slane %v7065_v16, 5  ;;  %v7163_v51 = vcombine.high %v3293_v34, %v3293_v34 }
 0x1fc   : > { %6039 = vmatprep.mubr.bf16.mxu0 %v7421_v27  ;;  %v2553_v14 = vsel %vm9070_vm12, %v2548_v44, %v2552_v7  ;;  %v3151_v57 = vsel %vm9062_vm11, %v7120_v52, %v3150_v55  ;;  %v7164_v26 = vcombine.low %v3294_v38, %v3294_v38  ;;  %v7165_v60 = vcombine.high %v3294_v38, %v3294_v38  ;;  %v3295_v38 = vld [vmem:[#allocation2 + $0x70] sm:$0x1f] }
 0x1fd   : > { %v2567_v9 = vsel %vm9070_vm12, %v2562_v31, %v2566_v15  ;;  %v3155_v40 = vsel %vm9062_vm11, %v7121_v18, %v3154_v2  ;;  %6040 = vmatmul.mubr.bf16.gmra.mrb[92].mxu0 %v8491_v3  ;;  %v3590_v62 = vshrl.u32 %v7162_v59, 16  ;;  %v3593_v28 = vshll.u32 %v7162_v59, 16  ;;  %v9474_v58 = vpop.f32.mrb[16].mxu0  ;;  %v3296_v31 = vld [vmem:[#allocation2 + $0x78] sm:$0x1f] }
 0x1fe   : > { %v7372_v11 = vcombine.low %v2553_v14, %v2567_v9  ;;  %v7389_v53 = vcombine.low %v3151_v57, %v3155_v40  ;;  %v3599_v1 = vshll.u32 %v7163_v51, 16  ;;  %v3604_v21 = vshrl.u32 %v7164_v26, 16  ;;  %v9476_v25 = vpop.f32.mrb[17].mxu0 }
 0x1ff   : > { %v3592_v43 = vrot.slane %v3590_v62, 4  ;;  %v3607_v47 = vshll.u32 %v7164_v26, 16  ;;  %v3613_v46 = vshll.u32 %v7165_v60, 16  ;;  %v3595_v36 = vrot.slane %v3593_v28, 5  ;;  %v9478_v42 = vpop.f32.mrb[18].mxu0 }
 0x200   : > { %5871 = vmatmul.mubr.bf16.gmra.mrb[88].mxu1 %v7372_v11  ;;  %v3601_v17 = vrot.slane %v3599_v1, 5  ;;  %v6998_v20 = vcombine.low %v2298_v50, %v2298_v50  ;;  %v6999_v54 = vcombine.high %v2298_v50, %v2298_v50  ;;  %v3606_v30 = vrot.slane %v3604_v21, 4  ;;  %v9480_v22 = vpop.f32.mrb[19].mxu0  ;;  %v8504_v26 = vld [vmem:[#allocation2 + $0x60] ss:$8 sps:$4 sm:$0xff]  }
 0x201   : > { %5878 = vmatprep.mubr.bf16.mxu1 %v7389_v53  ;;  %v3609_v13 = vrot.slane %v3607_v47, 5  ;;  %v3615_v61 = vrot.slane %v3613_v46, 5  ;;  %v7000_v0 = vcombine.low %v2299_v49, %v2299_v49  ;;  %v3596_v23 = vor.u32 %v3595_v36, %v3592_v43  ;;  %v2300_v21 = vld [vmem:[#allocation2 + $0x58] sm:$0x1f] }
 0x202   : > { %v7001_v32 = vcombine.high %v2299_v49, %v2299_v49  ;;  %v2569_v56 = vshrl.u32 %v6998_v20, 16  ;;  %v2572_v39 = vshll.u32 %v6998_v20, 16  ;;  %v2578_v37 = vshll.u32 %v6999_v54, 16  ;;  %v2301_v54 = vld [vmem:[#allocation2 + $0x60] sm:$0x1f] }
 0x203   : > { %v3610_v45 = vor.u32 %v3609_v13, %v3606_v30  ;;  %v2583_v7 = vshrl.u32 %v7000_v0, 16  ;;  %v2586_v5 = vshll.u32 %v7000_v0, 16  ;;  %v3597_v10 = vrot.slane %v3596_v23, 4 }
 0x204   : > { %v2571_v41 = vrot.slane %v2569_v56, 4  ;;  %v2574_v24 = vrot.slane %v2572_v39, 5  ;;  %v2592_v6 = vshll.u32 %v7001_v32, 16  ;;  %v2580_v19 = vrot.slane %v2578_v37, 5  ;;  %v8617_v39 = vld [vmem:[#allocation3 + $0x230] sm:$0xff]  }
 0x205   : > { %v3611_v15 = vrot.slane %v3610_v45, 4  ;;  %v2585_v35 = vrot.slane %v2583_v7, 4  ;;  %v2588_v34 = vrot.slane %v2586_v5, 5  ;;  %v3602_v8 = vsel %vm9070_vm12, %v3597_v10, %v3601_v17  ;;  %8093 = vmatprep.subr.bf16.mxu1 %v8617_v39 }
 0x206   : > { %v2575_v48 = vor.u32 %v2574_v24, %v2571_v41  ;;  %v2594_v33 = vrot.slane %v2592_v6, 5  ;;  %v7066_v16 = vcombine.low %v2940_v12, %v2940_v12  ;;  %v7067_v52 = vcombine.high %v2940_v12, %v2940_v12  ;;  %8094 = vmatpush3.bf16.msra.mxu1 %v8617_v39 }
 0x207   : > { %v3616_v27 = vsel %vm9070_vm12, %v3611_v15, %v3615_v61  ;;  %v2589_v44 = vor.u32 %v2588_v34, %v2585_v35  ;;  %v7068_v55 = vcombine.low %v2941_v29, %v2941_v29  ;;  %v7069_v3 = vcombine.high %v2941_v29, %v2941_v29 }
 0x208   : > { %v7422_v18 = vcombine.low %v3602_v8, %v3616_v27  ;;  %v2576_v2 = vrot.slane %v2575_v48, 4  ;;  %v7122_v59 = vrot.slane %v7066_v16, 9  ;;  %v3158_v57 = vrot.slane %v7067_v52, 5  ;;  %v9486_v40 = vpop.f32.mrb[16].mxu1  ;;  %v2942_v8 = vld [vmem:[#allocation2 + $0x68] sm:$0x1e] }
 0x209   : > { %v2590_v14 = vrot.slane %v2589_v44, 4  ;;  %v7123_v51 = vrot.slane %v7068_v55, 9  ;;  %v7166_v9 = vcombine.low %v3295_v38, %v3295_v38  ;;  %v3162_v62 = vrot.slane %v7069_v3, 5  ;;  %v9490_v53 = vpop.f32.mrb[17].mxu1  ;;  %v2943_v27 = vld [vmem:[#allocation2 + $0x70] sm:$0x1e] }
 0x20a   : > { %6047 = vmatprep.mubr.bf16.mxu0 %v7422_v18  ;;  %v2581_v60 = vsel %vm9070_vm12, %v2576_v2, %v2580_v19  ;;  %v7167_v50 = vcombine.high %v3295_v38, %v3295_v38  ;;  %v7168_v11 = vcombine.low %v3296_v31, %v3296_v31  ;;  %v3159_v1 = vsel %vm9062_vm11, %v7122_v59, %v3158_v57  ;;  %v9496_v47 = vpop.f32.mrb[18].mxu1 }
 0x20b   : > { %v2595_v28 = vsel %vm9070_vm12, %v2590_v14, %v2594_v33  ;;  %6048 = vmatmul.mubr.bf16.gmra.mrb[96].mxu0 %v8504_v26  ;;  %v7169_v49 = vcombine.high %v3296_v31, %v3296_v31  ;;  %v3618_v43 = vshrl.u32 %v7166_v9, 16  ;;  %v3163_v36 = vsel %vm9062_vm11, %v7123_v51, %v3162_v62  ;;  %v9500_v30 = vpop.f32.mrb[20].mxu0  ;;  %v9502_v13 = vpop.f32.mrb[19].mxu1 }
 0x20c   : > { %v7373_v46 = vcombine.low %v2581_v60, %v2595_v28  ;;  %v3621_v17 = vshll.u32 %v7166_v9, 16  ;;  %v3627_v20 = vshll.u32 %v7167_v50, 16  ;;  %v7390_v61 = vcombine.low %v3159_v1, %v3163_v36  ;;  %v9504_v56 = vpop.f32.mrb[21].mxu0  ;;  %v3297_v50 = vld [vmem:[#allocation2 + $0x80] sm:$0x1f] }
 0x20d   : > { %v3620_v0 = vrot.slane %v3618_v43, 4  ;;  %v3632_v23 = vshrl.u32 %v7168_v11, 16  ;;  %v3635_v32 = vshll.u32 %v7168_v11, 16  ;;  %v3641_v7 = vshll.u32 %v7169_v49, 16  ;;  %v9506_v12 = vpop.f32.mrb[22].mxu0 }
 0x20e   : > { %5879 = vmatmul.mubr.bf16.gmra.mrb[92].mxu1 %v7373_v46  ;;  %v3623_v45 = vrot.slane %v3621_v17, 5  ;;  %v3629_v37 = vrot.slane %v3627_v20, 5  ;;  %v7002_v5 = vcombine.low %v2300_v21, %v2300_v21  ;;  %v7003_v24 = vcombine.high %v2300_v21, %v2300_v21  ;;  %v9508_v29 = vpop.f32.mrb[23].mxu0  ;;  %v3298_v21 = vld [vmem:[#allocation2 + $0x88] sm:$0x1f] }
 0x20f   : > { %5886 = vmatprep.mubr.bf16.mxu1 %v7390_v61  ;;  %v3634_v10 = vrot.slane %v3632_v23, 4  ;;  %v3637_v41 = vrot.slane %v3635_v32, 5  ;;  %v7004_v6 = vcombine.low %v2301_v54, %v2301_v54  ;;  %v3643_v19 = vrot.slane %v3641_v7, 5  ;;  %v8518_v23 = vld [vmem:[#allocation2 + $0x70] ss:$8 sps:$4 sm:$0xff]  }
 0x210   : > { %v3624_v15 = vor.u32 %v3623_v45, %v3620_v0  ;;  %v7005_v35 = vcombine.high %v2301_v54, %v2301_v54  ;;  %v2597_v34 = vshrl.u32 %v7002_v5, 16  ;;  %v2600_v33 = vshll.u32 %v7002_v5, 16  ;;  %v9510_v44 = vpop.f32.mrb[20].mxu1 }
 0x211   : > { %v3638_v48 = vor.u32 %v3637_v41, %v3634_v10  ;;  %v2606_v16 = vshll.u32 %v7003_v24, 16  ;;  %v2611_v38 = vshrl.u32 %v7004_v6, 16  ;;  %v2614_v31 = vshll.u32 %v7004_v6, 16  ;;  %v9512_v2 = vpop.f32.mrb[21].mxu1 }
 0x212   : > { %v3625_v52 = vrot.slane %v3624_v15, 4  ;;  %v2599_v55 = vrot.slane %v2597_v34, 4  ;;  %v2620_v18 = vshll.u32 %v7005_v35, 16  ;;  %v2602_v59 = vrot.slane %v2600_v33, 5  ;;  %v9514_v51 = vpop.f32.mrb[22].mxu1 }
 0x213   : > { %v3639_v3 = vrot.slane %v3638_v48, 4  ;;  %v2608_v14 = vrot.slane %v2606_v16, 5  ;;  %v2613_v57 = vrot.slane %v2611_v38, 4  ;;  %v2616_v9 = vrot.slane %v2614_v31, 5  ;;  %v9518_v11 = vpop.f32.mrb[23].mxu1 }
 0x214   : > { %v3630_v26 = vsel %vm9070_vm12, %v3625_v52, %v3629_v37  ;;  %v2622_v60 = vrot.slane %v2620_v18, 5  ;;  %v7070_v62 = vcombine.low %v2942_v8, %v2942_v8  ;;  %v2603_v1 = vor.u32 %v2602_v59, %v2599_v55  ;;  %v2302_v15 = vld [vmem:[#allocation2 + $0x68] sm:$0x1f]  ;;  %v2303_v33 = vld [vmem:[#allocation2 + $0x70] sm:$0x1f] }
 0x215   : > { %v3644_v28 = vsel %vm9070_vm12, %v3639_v3, %v3643_v19  ;;  %v7071_v49 = vcombine.high %v2942_v8, %v2942_v8  ;;  %v7072_v43 = vcombine.low %v2943_v27, %v2943_v27  ;;  %v2617_v36 = vor.u32 %v2616_v9, %v2613_v57 }
 0x216   : > { %v7423_v46 = vcombine.low %v3630_v26, %v3644_v28  ;;  %v7073_v17 = vcombine.high %v2943_v27, %v2943_v27  ;;  %v7124_v20 = vrot.slane %v7070_v62, 9  ;;  %v2604_v54 = vrot.slane %v2603_v1, 4 }
 0x217   : > { %v3166_v61 = vrot.slane %v7071_v49, 5  ;;  %v7125_v0 = vrot.slane %v7072_v43, 9  ;;  %v7170_v32 = vcombine.low %v3297_v50, %v3297_v50  ;;  %v2618_v39 = vrot.slane %v2617_v36, 4  ;;  %v9522_v5 = vpop.f32.mrb[24].mxu0 }
 0x218   : > { %6055 = vmatprep.mubr.bf16.mxu0 %v7423_v46  ;;  %v3170_v45 = vrot.slane %v7073_v17, 5  ;;  %v7171_v37 = vcombine.high %v3297_v50, %v3297_v50  ;;  %v7172_v7 = vcombine.low %v3298_v21, %v3298_v21  ;;  %v2609_v10 = vsel %vm9070_vm12, %v2604_v54, %v2608_v14  ;;  %v9528_v19 = vpop.f32.mrb[25].mxu0  ;;  %v9538_v57 = vpop.f32.mrb[24].mxu1 }
 0x219   : > { %v3167_v41 = vsel %vm9062_vm11, %v7124_v20, %v3166_v61  ;;  %6056 = vmatmul.mubr.bf16.gmra.mrb[100].mxu0 %v8518_v23  ;;  %v7173_v24 = vcombine.high %v3298_v21, %v3298_v21  ;;  %v3646_v6 = vshrl.u32 %v7170_v32, 16  ;;  %v2623_v35 = vsel %vm9070_vm12, %v2618_v39, %v2622_v60  ;;  %v9534_v16 = vpop.f32.mrb[26].mxu0  ;;  %v9540_v50 = vpop.f32.mrb[25].mxu1  ;;  %v2944_v21 = vld [vmem:[#allocation2 + $0x78] sm:$0x1e] }
 0x21a   : > { %v3171_v34 = vsel %vm9062_vm11, %v7125_v0, %v3170_v45  ;;  %v3649_v8 = vshll.u32 %v7170_v32, 16  ;;  %v3655_v48 = vshll.u32 %v7171_v37, 16  ;;  %v7374_v38 = vcombine.low %v2609_v10, %v2623_v35  ;;  %v9536_v31 = vpop.f32.mrb[27].mxu0  ;;  %v9542_v46 = vpop.f32.mrb[26].mxu1  ;;  %v2945_v45 = vld [vmem:[#allocation2 + $0x80] sm:$0x1e] }
 0x21b   : > { %v7391_v27 = vcombine.low %v3167_v41, %v3171_v34  ;;  %v3648_v52 = vrot.slane %v3646_v6, 4  ;;  %v3660_v55 = vshrl.u32 %v7172_v7, 16  ;;  %v3663_v59 = vshll.u32 %v7172_v7, 16  ;;  %v9544_v61 = vpop.f32.mrb[27].mxu1 }
 0x21c   : > { %v3651_v18 = vrot.slane %v3649_v8, 5  ;;  %v3657_v3 = vrot.slane %v3655_v48, 5  ;;  %v3669_v14 = vshll.u32 %v7173_v24, 16  ;;  %5887 = vmatmul.mubr.bf16.gmra.mrb[96].mxu1 %v7374_v38  ;;  %v7006_v9 = vcombine.low %v2302_v15, %v2302_v15  ;;  %v3299_v24 = vld [vmem:[#allocation2 + $0x90] sm:$0x1f] }
 0x21d   : > { %v3662_v26 = vrot.slane %v3660_v55, 4  ;;  %v7007_v60 = vcombine.high %v2302_v15, %v2302_v15  ;;  %v7008_v62 = vcombine.low %v2303_v33, %v2303_v33  ;;  %5894 = vmatprep.mubr.bf16.mxu1 %v7391_v27  ;;  %v3665_v1 = vrot.slane %v3663_v59, 5  ;;  %v3300_v59 = vld [vmem:[#allocation2 + $0x98] sm:$0x1f] }
 0x21e   : > { %v3652_v28 = vor.u32 %v3651_v18, %v3648_v52  ;;  %v3671_v49 = vrot.slane %v3669_v14, 5  ;;  %v7009_v43 = vcombine.high %v2303_v33, %v2303_v33  ;;  %v2625_v36 = vshrl.u32 %v7006_v9, 16 }
 0x21f   : > { %v2628_v17 = vshll.u32 %v7006_v9, 16  ;;  %v2634_v20 = vshll.u32 %v7007_v60, 16  ;;  %v2639_v54 = vshrl.u32 %v7008_v62, 16  ;;  %v3666_v23 = vor.u32 %v3665_v1, %v3662_v26 }
 0x220   : > { %v3653_v0 = vrot.slane %v3652_v28, 4  ;;  %v2642_v32 = vshll.u32 %v7008_v62, 16  ;;  %v2648_v39 = vshll.u32 %v7009_v43, 16  ;;  %v2627_v37 = vrot.slane %v2625_v36, 4  ;;  %v8531_v36 = vld [vmem:[#allocation2 + $0x80] ss:$8 sps:$4 sm:$0xff]  }
 0x221   : > { %v2630_v7 = vrot.slane %v2628_v17, 5  ;;  %v2636_v10 = vrot.slane %v2634_v20, 5  ;;  %v2641_v41 = vrot.slane %v2639_v54, 4  ;;  %v3667_v15 = vrot.slane %v3666_v23, 4 }
 0x222   : > { %v3658_v6 = vsel %vm9070_vm12, %v3653_v0, %v3657_v3  ;;  %v2644_v35 = vrot.slane %v2642_v32, 5  ;;  %v2650_v34 = vrot.slane %v2648_v39, 5  ;;  %v7074_v48 = vcombine.low %v2944_v21, %v2944_v21  ;;  %v9548_v27 = vpop.f32.mrb[28].mxu0 }
 0x223   : > { %v2631_v8 = vor.u32 %v2630_v7, %v2627_v37  ;;  %v7075_v33 = vcombine.high %v2944_v21, %v2944_v21  ;;  %v7076_v38 = vcombine.low %v2945_v45, %v2945_v45  ;;  %v3672_v52 = vsel %vm9070_vm12, %v3667_v15, %v3671_v49  ;;  %v9552_v26 = vpop.f32.mrb[29].mxu0  ;;  %v2304_v7 = vld [vmem:[#allocation2 + $0x78] sm:$0x1f] }
 0x224   : > { %v2645_v55 = vor.u32 %v2644_v35, %v2641_v41  ;;  %v7077_v18 = vcombine.high %v2945_v45, %v2945_v45  ;;  %v7174_v14 = vcombine.low %v3299_v24, %v3299_v24  ;;  %v7424_v9 = vcombine.low %v3658_v6, %v3672_v52  ;;  %v9554_v28 = vpop.f32.mrb[30].mxu0 }
 0x225   : > { %v2632_v3 = vrot.slane %v2631_v8, 4  ;;  %v7126_v60 = vrot.slane %v7074_v48, 9  ;;  %v3174_v62 = vrot.slane %v7075_v33, 5  ;;  %v7127_v43 = vrot.slane %v7076_v38, 9  ;;  %v9556_v20 = vpop.f32.mrb[31].mxu0 }
 0x226   : > { %v2646_v1 = vrot.slane %v2645_v55, 4  ;;  %v3178_v21 = vrot.slane %v7077_v18, 5  ;;  %v7175_v17 = vcombine.high %v3299_v24, %v3299_v24  ;;  %6063 = vmatprep.mubr.bf16.mxu0 %v7424_v9  ;;  %v7176_v0 = vcombine.low %v3300_v59, %v3300_v59  ;;  %v9566_v18 = vpop.f32.mrb[28].mxu1 }
 0x227   : > { %v2637_v49 = vsel %vm9070_vm12, %v2632_v3, %v2636_v10  ;;  %v3175_v54 = vsel %vm9062_vm11, %v7126_v60, %v3174_v62  ;;  %v7177_v23 = vcombine.high %v3300_v59, %v3300_v59  ;;  %6064 = vmatmul.mubr.bf16.gmra.mrb[104].mxu0 %v8531_v36  ;;  %v3674_v45 = vshrl.u32 %v7174_v14, 16  ;;  %v2305_v10 = vld [vmem:[#allocation2 + $0x80] sm:$0x1f]  ;;  %v8644_v59 = vld [vmem:[#allocation3 + $0x238] sm:$0xff]   ;;  %v2946_v62 = vld [vmem:[#allocation2 + $0x88] sm:$0x1e] }
 0x228   : > { %v2651_v32 = vsel %vm9070_vm12, %v2646_v1, %v2650_v34  ;;  %v3179_v39 = vsel %vm9062_vm11, %v7127_v43, %v3178_v21  ;;  %v3677_v37 = vshll.u32 %v7174_v14, 16  ;;  %v3683_v6 = vshll.u32 %v7175_v17, 16  ;;  %v9568_v1 = vpop.f32.mrb[29].mxu1  ;;  %8095 = vmatprep.subr.bf16.mxu1 %v8644_v59 }
 0x229   : > { %v7375_v41 = vcombine.low %v2637_v49, %v2651_v32  ;;  %v7392_v24 = vcombine.low %v3175_v54, %v3179_v39  ;;  %v3688_v15 = vshrl.u32 %v7176_v0, 16  ;;  %v3676_v35 = vrot.slane %v3674_v45, 4  ;;  %v2947_v49 = vld [vmem:[#allocation2 + $0x90] sm:$0x1e]  ;;  %v9570_v54 = vpop.f32.mrb[30].mxu1  ;;  %8096 = vmatpush3.bf16.msra.mxu1 %v8644_v59 }
 0x22a   : > { %v3679_v8 = vrot.slane %v3677_v37, 5  ;;  %v3691_v48 = vshll.u32 %v7176_v0, 16  ;;  %v3697_v33 = vshll.u32 %v7177_v23, 16  ;;  %v3685_v38 = vrot.slane %v3683_v6, 5  ;;  %10862 = vst [vmem:[#allocation6_spill] sm:$0xff] %v9570_v54  ;;  %v9574_v37 = vpop.f32.mrb[31].mxu1 }
 0x22b   : > { %5895 = vmatmul.mubr.bf16.gmra.mrb[100].mxu1 %v7375_v41  ;;  %v3690_v52 = vrot.slane %v3688_v15, 4  ;;  %v7010_v34 = vcombine.low %v2304_v7, %v2304_v7  ;;  %v7011_v55 = vcombine.high %v2304_v7, %v2304_v7  ;;  %v7012_v60 = vcombine.low %v2305_v10, %v2305_v10  ;;  %10863 = vst [vmem:[#allocation7_spill] sm:$0xff] %v9574_v37 }
 0x22c   : > { %5902 = vmatprep.mubr.bf16.mxu1 %v7392_v24  ;;  %v3680_v14 = vor.u32 %v3679_v8, %v3676_v35  ;;  %v3693_v9 = vrot.slane %v3691_v48, 5  ;;  %v3699_v3 = vrot.slane %v3697_v33, 5  ;;  %v7013_v43 = vcombine.high %v2305_v10, %v2305_v10 }
 0x22d   : > { %v2653_v21 = vshrl.u32 %v7010_v34, 16  ;;  %v2656_v36 = vshll.u32 %v7010_v34, 16  ;;  %v2662_v17 = vshll.u32 %v7011_v55, 16  ;;  %v2667_v32 = vshrl.u32 %v7012_v60, 16  ;;  %v9572_v45 = vpop.f32.mrb[32].mxu0 }
 0x22e   : > { %v3681_v0 = vrot.slane %v3680_v14, 4  ;;  %v3694_v23 = vor.u32 %v3693_v9, %v3690_v52  ;;  %v2670_v39 = vshll.u32 %v7012_v60, 16  ;;  %v2676_v6 = vshll.u32 %v7013_v43, 16  ;;  %v9576_v15 = vpop.f32.mrb[33].mxu0  ;;  %v3301_v9 = vld [vmem:[#allocation2 + $0xb0] sm:$0x1f] }
 0x22f   : > { %v2655_v7 = vrot.slane %v2653_v21, 4  ;;  %v2658_v41 = vrot.slane %v2656_v36, 5  ;;  %v2664_v24 = vrot.slane %v2662_v17, 5  ;;  %10864 = vst [vmem:[#allocation8_spill] sm:$0xff] %v9576_v15  ;;  %v2669_v8 = vrot.slane %v2667_v32, 4  ;;  %v9580_v33 = vpop.f32.mrb[34].mxu0 }
 0x230   : > { %v3686_v10 = vsel %vm9070_vm12, %v3681_v0, %v3685_v38  ;;  %v3695_v35 = vrot.slane %v3694_v23, 4  ;;  %v2672_v48 = vrot.slane %v2670_v39, 5  ;;  %10865 = vst [vmem:[#allocation9_spill] sm:$0xff] %v9580_v33  ;;  %v2678_v34 = vrot.slane %v2676_v6, 5  ;;  %v9582_v59 = vpop.f32.mrb[35].mxu0  ;;  %v9586_v39 = vpop.f32.mrb[32].mxu1 }
 0x231   : > { %v2659_v52 = vor.u32 %v2658_v41, %v2655_v7  ;;  %v7078_v55 = vcombine.low %v2946_v62, %v2946_v62  ;;  %v7079_v14 = vcombine.high %v2946_v62, %v2946_v62  ;;  %10866 = vst [vmem:[#allocation10_spill] sm:$0xff] %v9582_v59  ;;  %v7080_v21 = vcombine.low %v2947_v49, %v2947_v49  ;;  %v3302_v17 = vld [vmem:[#allocation2 + $0xb8] sm:$0x1f]  ;;  %v9588_v37 = vpop.f32.mrb[33].mxu1 }
 0x232   : > { %v3700_v60 = vsel %vm9070_vm12, %v3695_v35, %v3699_v3  ;;  %v2673_v43 = vor.u32 %v2672_v48, %v2669_v8  ;;  %v7081_v36 = vcombine.high %v2947_v49, %v2947_v49  ;;  %10867 = vst [vmem:[#allocation11_spill] sm:$0xff] %v9586_v39  ;;  %v8545_v62 = vld [vmem:[#allocation2 + $0x90] ss:$8 sps:$4 sm:$0xff]   ;;  %v7178_v33 = vcombine.low %v3301_v9, %v3301_v9  ;;  %v9594_v8 = vpop.f32.mrb[34].mxu1 }
 0x233   : > { %v7425_v38 = vcombine.low %v3686_v10, %v3700_v60  ;;  %v2660_v0 = vrot.slane %v2659_v52, 4  ;;  %v7128_v23 = vrot.slane %v7078_v55, 9  ;;  %v3182_v32 = vrot.slane %v7079_v14, 5  ;;  %10868 = vst [vmem:[#allocation12_spill] sm:$0xff] %v9588_v37  ;;  %10869 = vst [vmem:[#allocation13_spill] sm:$0xff] %v9594_v8 }
 0x234   : > { %v2674_v7 = vrot.slane %v2673_v43, 4  ;;  %v7129_v41 = vrot.slane %v7080_v21, 9  ;;  %v3186_v6 = vrot.slane %v7081_v36, 5  ;;  %v7179_v10 = vcombine.high %v3301_v9, %v3301_v9  ;;  %v2306_v60 = vld [vmem:[#allocation2 + $0x88] sm:$0x1f]  ;;  %v9600_v43 = vpop.f32.mrb[35].mxu1 }
 0x235   : > { %6071 = vmatprep.mubr.bf16.mxu0 %v7425_v38  ;;  %v2665_v3 = vsel %vm9070_vm12, %v2660_v0, %v2664_v24  ;;  %v3183_v49 = vsel %vm9062_vm11, %v7128_v23, %v3182_v32  ;;  %v7180_v35 = vcombine.low %v3302_v17, %v3302_v17  ;;  %v7181_v55 = vcombine.high %v3302_v17, %v3302_v17  ;;  %v2307_v9 = vld [vmem:[#allocation2 + $0x90] sm:$0x1f] }
 0x236   : > { %v2679_v48 = vsel %vm9070_vm12, %v2674_v7, %v2678_v34  ;;  %v3187_v52 = vsel %vm9062_vm11, %v7129_v41, %v3186_v6  ;;  %6072 = vmatmul.mubr.bf16.gmra.mrb[108].mxu0 %v8545_v62  ;;  %v3702_v14 = vshrl.u32 %v7178_v33, 16  ;;  %10870 = vst [vmem:[#allocation14_spill] sm:$0xff] %v9600_v43  ;;  %v3705_v36 = vshll.u32 %v7178_v33, 16  ;;  %v9602_v0 = vpop.f32.mrb[36].mxu0 }
 0x237   : > { %v7376_v24 = vcombine.low %v2665_v3, %v2679_v48  ;;  %v7393_v21 = vcombine.low %v3183_v49, %v3187_v52  ;;  %v3711_v38 = vshll.u32 %v7179_v10, 16  ;;  %10871 = vst [vmem:[#allocation15_spill] sm:$0xff] %v9602_v0  ;;  %v3716_v32 = vshrl.u32 %v7180_v35, 16  ;;  %v9604_v7 = vpop.f32.mrb[37].mxu0 }
 0x238   : > { %v3704_v23 = vrot.slane %v3702_v14, 4  ;;  %v3719_v8 = vshll.u32 %v7180_v35, 16  ;;  %v3725_v34 = vshll.u32 %v7181_v55, 16  ;;  %10872 = vst [vmem:[#allocation16_spill] sm:$0xff] %v9604_v7  ;;  %v3707_v41 = vrot.slane %v3705_v36, 5  ;;  %v9606_v37 = vpop.f32.mrb[38].mxu0 }
 0x239   : > { %5903 = vmatmul.mubr.bf16.gmra.mrb[104].mxu1 %v7376_v24  ;;  %v3713_v17 = vrot.slane %v3711_v38, 5  ;;  %v7014_v6 = vcombine.low %v2306_v60, %v2306_v60  ;;  %v7015_v62 = vcombine.high %v2306_v60, %v2306_v60  ;;  %10873 = vst [vmem:[#allocation17_spill] sm:$0xff] %v9606_v37  ;;  %v3718_v3 = vrot.slane %v3716_v32, 4  ;;  %v9608_v48 = vpop.f32.mrb[39].mxu0  ;;  %v2948_v38 = vld [vmem:[#allocation2 + $0xa8] sm:$0x1e] }
 0x23a   : > { %5910 = vmatprep.mubr.bf16.mxu1 %v7393_v21  ;;  %v3721_v33 = vrot.slane %v3719_v8, 5  ;;  %v3727_v49 = vrot.slane %v3725_v34, 5  ;;  %v7016_v10 = vcombine.low %v2307_v9, %v2307_v9  ;;  %10874 = vst [vmem:[#allocation18_spill] sm:$0xff] %v9608_v48  ;;  %v3708_v52 = vor.u32 %v3707_v41, %v3704_v23  ;;  %v2949_v21 = vld [vmem:[#allocation2 + $0xb0] sm:$0x1e]  ;;  %v9610_v54 = vpop.f32.mrb[36].mxu1 }
 0x23b   : > { %v7017_v14 = vcombine.high %v2307_v9, %v2307_v9  ;;  %v2681_v35 = vshrl.u32 %v7014_v6, 16  ;;  %v2684_v55 = vshll.u32 %v7014_v6, 16  ;;  %v2690_v7 = vshll.u32 %v7015_v62, 16  ;;  %10875 = vst [vmem:[#allocation19_spill] sm:$0xff] %v9610_v54  ;;  %v3303_v62 = vld [vmem:[#allocation2 + $0xc0] sm:$0x1f] }
 0x23c   : > { %v3722_v43 = vor.u32 %v3721_v33, %v3718_v3  ;;  %v2695_v24 = vshrl.u32 %v7016_v10, 16  ;;  %v2698_v36 = vshll.u32 %v7016_v10, 16  ;;  %v3709_v0 = vrot.slane %v3708_v52, 4  ;;  %v9614_v3 = vpop.f32.mrb[37].mxu1  ;;  %v8572_v48 = vld [vmem:[#allocation2 + $0xc0] ss:$8 sps:$4 sm:$0xff]  }
 0x23d   : > { %v2683_v60 = vrot.slane %v2681_v35, 4  ;;  %v2686_v39 = vrot.slane %v2684_v55, 5  ;;  %v2704_v37 = vshll.u32 %v7017_v14, 16  ;;  %v2692_v8 = vrot.slane %v2690_v7, 5  ;;  %10876 = vst [vmem:[#allocation20_spill] sm:$0xff] %v9614_v3  ;;  %v9618_v14 = vpop.f32.mrb[38].mxu1 }
 0x23e   : > { %v3723_v32 = vrot.slane %v3722_v43, 4  ;;  %v2697_v34 = vrot.slane %v2695_v24, 4  ;;  %v2700_v59 = vrot.slane %v2698_v36, 5  ;;  %v3714_v9 = vsel %vm9070_vm12, %v3709_v0, %v3713_v17  ;;  %v3304_v7 = vld [vmem:[#allocation2 + $0xc8] sm:$0x1f]  ;;  %10877 = vst [vmem:[#allocation21_spill] sm:$0xff] %v9618_v14 }
 0x23f   : > { %v2687_v23 = vor.u32 %v2686_v39, %v2683_v60  ;;  %v2706_v41 = vrot.slane %v2704_v37, 5  ;;  %v7082_v6 = vcombine.low %v2948_v38, %v2948_v38  ;;  %v7083_v52 = vcombine.high %v2948_v38, %v2948_v38  ;;  %v9620_v0 = vpop.f32.mrb[39].mxu1  ;;  %v8558_v60 = vld [vmem:[#allocation2 + $0xb0] ss:$8 sps:$4 sm:$0xff]  }
 0x240   : > { %v3728_v33 = vsel %vm9070_vm12, %v3723_v32, %v3727_v49  ;;  %v2701_v10 = vor.u32 %v2700_v59, %v2697_v34  ;;  %v7084_v43 = vcombine.low %v2949_v21, %v2949_v21  ;;  %v7085_v24 = vcombine.high %v2949_v21, %v2949_v21  ;;  %10878 = vst [vmem:[#allocation22_spill] sm:$0xff] %v9620_v0 }
 0x241   : > { %v7426_v35 = vcombine.low %v3714_v9, %v3728_v33  ;;  %v2688_v55 = vrot.slane %v2687_v23, 4  ;;  %v7130_v36 = vrot.slane %v7082_v6, 9  ;;  %v3190_v39 = vrot.slane %v7083_v52, 5  ;;  %v2308_v6 = vld [vmem:[#allocation2 + $0xa8] sm:$0x1f] }
 0x242   : > { %v2702_v37 = vrot.slane %v2701_v10, 4  ;;  %v7131_v17 = vrot.slane %v7084_v43, 9  ;;  %v7182_v3 = vcombine.low %v3303_v62, %v3303_v62  ;;  %v3194_v49 = vrot.slane %v7085_v24, 5 }
 0x243   : > { %6079 = vmatprep.mubr.bf16.mxu0 %v7426_v35  ;;  %v2693_v59 = vsel %vm9070_vm12, %v2688_v55, %v2692_v8  ;;  %v7183_v38 = vcombine.high %v3303_v62, %v3303_v62  ;;  %v7184_v32 = vcombine.low %v3304_v7, %v3304_v7  ;;  %v3191_v21 = vsel %vm9062_vm11, %v7130_v36, %v3190_v39  ;;  %v9628_v33 = vpop.f32.mrb[40].mxu0  ;;  %v2309_v62 = vld [vmem:[#allocation2 + $0xb0] sm:$0x1f] }
 0x244   : > { %v2707_v34 = vsel %vm9070_vm12, %v2702_v37, %v2706_v41  ;;  %6080 = vmatmul.mubr.bf16.gmra.mrb[112].mxu0 %v8558_v60  ;;  %v7185_v9 = vcombine.high %v3304_v7, %v3304_v7  ;;  %v3730_v23 = vshrl.u32 %v7182_v3, 16  ;;  %10879 = vst [vmem:[#allocation23_spill] sm:$0xff] %v9628_v33  ;;  %v3195_v52 = vsel %vm9062_vm11, %v7131_v17, %v3194_v49  ;;  %v9632_v35 = vpop.f32.mrb[41].mxu0 }
 0x245   : > { %v7377_v10 = vcombine.low %v2693_v59, %v2707_v34  ;;  %v3733_v8 = vshll.u32 %v7182_v3, 16  ;;  %v3739_v43 = vshll.u32 %v7183_v38, 16  ;;  %10880 = vst [vmem:[#allocation24_spill] sm:$0xff] %v9632_v35  ;;  %v7394_v55 = vcombine.low %v3191_v21, %v3195_v52  ;;  %v9634_v36 = vpop.f32.mrb[42].mxu0  ;;  %v9638_v34 = vpop.f32.mrb[40].mxu1 }
 0x246   : > { %v3732_v41 = vrot.slane %v3730_v23, 4  ;;  %v3744_v24 = vshrl.u32 %v7184_v32, 16  ;;  %v3747_v37 = vshll.u32 %v7184_v32, 16  ;;  %10881 = vst [vmem:[#allocation25_spill] sm:$0xff] %v9634_v36  ;;  %v3753_v60 = vshll.u32 %v7185_v9, 16  ;;  %v9636_v59 = vpop.f32.mrb[43].mxu0 }
 0x247   : > { %5911 = vmatmul.mubr.bf16.gmra.mrb[108].mxu1 %v7377_v10  ;;  %v3735_v7 = vrot.slane %v3733_v8, 5  ;;  %v3741_v39 = vrot.slane %v3739_v43, 5  ;;  %v7018_v0 = vcombine.low %v2308_v6, %v2308_v6  ;;  %10882 = vst [vmem:[#allocation26_spill] sm:$0xff] %v9636_v59  ;;  %10883 = vst [vmem:[#allocation27_spill] sm:$0xff] %v9638_v34  ;;  %v7019_v49 = vcombine.high %v2308_v6, %v2308_v6  ;;  %v9640_v21 = vpop.f32.mrb[41].mxu1 }
 0x248   : > { %5918 = vmatprep.mubr.bf16.mxu1 %v7394_v55  ;;  %v3746_v3 = vrot.slane %v3744_v24, 4  ;;  %v3749_v17 = vrot.slane %v3747_v37, 5  ;;  %v7020_v38 = vcombine.low %v2309_v62, %v2309_v62  ;;  %10884 = vst [vmem:[#allocation28_spill] sm:$0xff] %v9640_v21  ;;  %v3755_v32 = vrot.slane %v3753_v60, 5  ;;  %v9642_v10 = vpop.f32.mrb[42].mxu1 }
 0x249   : > { %v3736_v23 = vor.u32 %v3735_v7, %v3732_v41  ;;  %v7021_v52 = vcombine.high %v2309_v62, %v2309_v62  ;;  %v2709_v36 = vshrl.u32 %v7018_v0, 16  ;;  %10885 = vst [vmem:[#allocation29_spill] sm:$0xff] %v9642_v10  ;;  %v2712_v9 = vshll.u32 %v7018_v0, 16  ;;  %v2950_v59 = vld [vmem:[#allocation2 + $0xb8] sm:$0x1e]  ;;  %v9644_v35 = vpop.f32.mrb[43].mxu1 }
 0x24a   : > { %v3750_v8 = vor.u32 %v3749_v17, %v3746_v3  ;;  %v2718_v43 = vshll.u32 %v7019_v49, 16  ;;  %v2723_v14 = vshrl.u32 %v7020_v38, 16  ;;  %10886 = vst [vmem:[#allocation30_spill] sm:$0xff] %v9644_v35  ;;  %v2726_v37 = vshll.u32 %v7020_v38, 16  ;;  %v2951_v34 = vld [vmem:[#allocation2 + $0xc0] sm:$0x1e] }
 0x24b   : > { %v3737_v55 = vrot.slane %v3736_v23, 4  ;;  %v2711_v24 = vrot.slane %v2709_v36, 4  ;;  %v2732_v6 = vshll.u32 %v7021_v52, 16  ;;  %v2714_v21 = vrot.slane %v2712_v9, 5  ;;  %v3305_v17 = vld [vmem:[#allocation2 + $0xd0] sm:$0x1f] }
 0x24c   : > { %v3751_v33 = vrot.slane %v3750_v8, 4  ;;  %v2720_v41 = vrot.slane %v2718_v43, 5  ;;  %v2725_v7 = vrot.slane %v2723_v14, 4  ;;  %v2728_v60 = vrot.slane %v2726_v37, 5  ;;  %v3306_v38 = vld [vmem:[#allocation2 + $0xd8] sm:$0x1f] }
 0x24d   : > { %v3742_v62 = vsel %vm9070_vm12, %v3737_v55, %v3741_v39  ;;  %v2734_v3 = vrot.slane %v2732_v6, 5  ;;  %v7086_v0 = vcombine.low %v2950_v59, %v2950_v59  ;;  %v2715_v35 = vor.u32 %v2714_v21, %v2711_v24 }
 0x24e   : > { %v3756_v49 = vsel %vm9070_vm12, %v3751_v33, %v3755_v32  ;;  %v7087_v23 = vcombine.high %v2950_v59, %v2950_v59  ;;  %v7088_v36 = vcombine.low %v2951_v34, %v2951_v34  ;;  %v2729_v10 = vor.u32 %v2728_v60, %v2725_v7  ;;  %v2310_v7 = vld [vmem:[#allocation2 + $0xb8] sm:$0x1f] }
 0x24f   : > { %v7427_v52 = vcombine.low %v3742_v62, %v3756_v49  ;;  %v7089_v8 = vcombine.high %v2951_v34, %v2951_v34  ;;  %v7132_v9 = vrot.slane %v7086_v0, 9  ;;  %v2716_v43 = vrot.slane %v2715_v35, 4  ;;  %v9650_v55 = vpop.f32.mrb[44].mxu0 }
 0x250   : > { %v3198_v14 = vrot.slane %v7087_v23, 5  ;;  %v7133_v54 = vrot.slane %v7088_v36, 9  ;;  %v7186_v39 = vcombine.low %v3305_v17, %v3305_v17  ;;  %10887 = vst [vmem:[#allocation31_spill] sm:$0xff] %v9650_v55  ;;  %v2730_v37 = vrot.slane %v2729_v10, 4  ;;  %v9652_v21 = vpop.f32.mrb[45].mxu0  ;;  %v9654_v59 = vpop.f32.mrb[44].mxu1 }
 0x251   : > { %6087 = vmatprep.mubr.bf16.mxu0 %v7427_v52  ;;  %v3202_v6 = vrot.slane %v7089_v8, 5  ;;  %v7187_v15 = vcombine.high %v3305_v17, %v3305_v17  ;;  %v7188_v33 = vcombine.low %v3306_v38, %v3306_v38  ;;  %10888 = vst [vmem:[#allocation32_spill] sm:$0xff] %v9652_v21  ;;  %10889 = vst [vmem:[#allocation33_spill] sm:$0xff] %v9654_v59  ;;  %v9660_v62 = vpop.f32.mrb[46].mxu0  ;;  %v9662_v10 = vpop.f32.mrb[45].mxu1 }
 0x252   : > { %v2721_v34 = vsel %vm9070_vm12, %v2716_v43, %v2720_v41  ;;  %v3199_v35 = vsel %vm9062_vm11, %v7132_v9, %v3198_v14  ;;  %6088 = vmatmul.mubr.bf16.gmra.mrb[116].mxu0 %v8572_v48  ;;  %v7189_v32 = vcombine.high %v3306_v38, %v3306_v38  ;;  %v3758_v24 = vshrl.u32 %v7186_v39, 16  ;;  %10890 = vst [vmem:[#allocation34_spill] sm:$0xff] %v9660_v62  ;;  %v2311_v41 = vld [vmem:[#allocation2 + $0xc0] sm:$0x1f]  ;;  %v9668_v23 = vpop.f32.mrb[47].mxu0  ;;  %v9670_v36 = vpop.f32.mrb[46].mxu1 }
 0x253   : > { %10891 = vst [vmem:[#allocation35_spill] sm:$0xff] %v9662_v10  ;;  %v2735_v60 = vsel %vm9070_vm12, %v2730_v37, %v2734_v3  ;;  %v3203_v0 = vsel %vm9062_vm11, %v7133_v54, %v3202_v6  ;;  %v3761_v17 = vshll.u32 %v7186_v39, 16  ;;  %v3767_v49 = vshll.u32 %v7187_v15, 16  ;;  %10892 = vst [vmem:[#allocation36_spill] sm:$0xff] %v9668_v23  ;;  %v9672_v9 = vpop.f32.mrb[47].mxu1 }
 0x254   : > { %10893 = vst [vmem:[#allocation37_spill] sm:$0xff] %v9670_v36  ;;  %v7378_v48 = vcombine.low %v2721_v34, %v2735_v60  ;;  %v7395_v38 = vcombine.low %v3199_v35, %v3203_v0  ;;  %v3760_v52 = vrot.slane %v3758_v24, 4  ;;  %v3772_v8 = vshrl.u32 %v7188_v33, 16  ;;  %10894 = vst [vmem:[#allocation38_spill] sm:$0xff] %v9672_v9  ;;  %v2952_v0 = vld [vmem:[#allocation2 + $0xc8] sm:$0x1e] }
 0x255   : > { %v3763_v43 = vrot.slane %v3761_v17, 5  ;;  %v3769_v14 = vrot.slane %v3767_v49, 5  ;;  %v3775_v10 = vshll.u32 %v7188_v33, 16  ;;  %v3781_v3 = vshll.u32 %v7189_v32, 16  ;;  %v2953_v32 = vld [vmem:[#allocation2 + $0xd0] sm:$0x1e] }
 0x256   : > { %5919 = vmatmul.mubr.bf16.gmra.mrb[112].mxu1 %v7378_v48  ;;  %v3774_v37 = vrot.slane %v3772_v8, 4  ;;  %v7022_v54 = vcombine.low %v2310_v7, %v2310_v7  ;;  %v7023_v39 = vcombine.high %v2310_v7, %v2310_v7  ;;  %v7024_v15 = vcombine.low %v2311_v41, %v2311_v41  ;;  %v3307_v21 = vld [vmem:[#allocation2 + $0xe0] sm:$0x1f] }
 0x257   : > { %5926 = vmatprep.mubr.bf16.mxu1 %v7395_v38  ;;  %v3764_v6 = vor.u32 %v3763_v43, %v3760_v52  ;;  %v3777_v59 = vrot.slane %v3775_v10, 5  ;;  %v3783_v23 = vrot.slane %v3781_v3, 5  ;;  %v7025_v36 = vcombine.high %v2311_v41, %v2311_v41 }
 0x258   : > { %v2737_v34 = vshrl.u32 %v7022_v54, 16  ;;  %v2740_v35 = vshll.u32 %v7022_v54, 16  ;;  %v2746_v24 = vshll.u32 %v7023_v39, 16  ;;  %v2751_v60 = vshrl.u32 %v7024_v15, 16 }
 0x259   : > { %v3765_v9 = vrot.slane %v3764_v6, 4  ;;  %v3778_v17 = vor.u32 %v3777_v59, %v3774_v37  ;;  %v2754_v49 = vshll.u32 %v7024_v15, 16  ;;  %v2760_v33 = vshll.u32 %v7025_v36, 16  ;;  %v3308_v15 = vld [vmem:[#allocation2 + $0xe8] sm:$0x1f] }
 0x25a   : > { %v2739_v48 = vrot.slane %v2737_v34, 4  ;;  %v2742_v8 = vrot.slane %v2740_v35, 5  ;;  %v2748_v62 = vrot.slane %v2746_v24, 5  ;;  %v2753_v7 = vrot.slane %v2751_v60, 4 }
 0x25b   : > { %v3770_v10 = vsel %vm9070_vm12, %v3765_v9, %v3769_v14  ;;  %v3779_v38 = vrot.slane %v3778_v17, 4  ;;  %v2756_v41 = vrot.slane %v2754_v49, 5  ;;  %v2762_v52 = vrot.slane %v2760_v33, 5  ;;  %v8585_v17 = vld [vmem:[#allocation2 + $0xd0] ss:$8 sps:$4 sm:$0xff]  }
 0x25c   : > { %v2743_v43 = vor.u32 %v2742_v8, %v2739_v48  ;;  %v7090_v3 = vcombine.low %v2952_v0, %v2952_v0  ;;  %v7091_v54 = vcombine.high %v2952_v0, %v2952_v0  ;;  %v7092_v39 = vcombine.low %v2953_v32, %v2953_v32  ;;  %v2312_v8 = vld [vmem:[#allocation2 + $0xc8] sm:$0x1f] }
 0x25d   : > { %v3784_v59 = vsel %vm9070_vm12, %v3779_v38, %v3783_v23  ;;  %v2757_v36 = vor.u32 %v2756_v41, %v2753_v7  ;;  %v7093_v37 = vcombine.high %v2953_v32, %v2953_v32  ;;  %v7190_v6 = vcombine.low %v3307_v21, %v3307_v21 }
 0x25e   : > { %v7428_v34 = vcombine.low %v3770_v10, %v3784_v59  ;;  %v2744_v35 = vrot.slane %v2743_v43, 4  ;;  %v7134_v24 = vrot.slane %v7090_v3, 9  ;;  %v3206_v60 = vrot.slane %v7091_v54, 5  ;;  %v2313_v43 = vld [vmem:[#allocation2 + $0xd0] sm:$0x1f] }
 0x25f   : > { %v2758_v55 = vrot.slane %v2757_v36, 4  ;;  %v7135_v9 = vrot.slane %v7092_v39, 9  ;;  %v3210_v14 = vrot.slane %v7093_v37, 5  ;;  %v7191_v49 = vcombine.high %v3307_v21, %v3307_v21  ;;  %v9678_v33 = vpop.f32.mrb[48].mxu1  ;;  %v2954_v37 = vld [vmem:[#allocation2 + $0xd8] sm:$0x1e] }
 0x260   : > { %6095 = vmatprep.mubr.bf16.mxu0 %v7428_v34  ;;  %v2749_v0 = vsel %vm9070_vm12, %v2744_v35, %v2748_v62  ;;  %v3207_v23 = vsel %vm9062_vm11, %v7134_v24, %v3206_v60  ;;  %v7192_v32 = vcombine.low %v3308_v15, %v3308_v15  ;;  %v7193_v48 = vcombine.high %v3308_v15, %v3308_v15  ;;  %v9684_v7 = vpop.f32.mrb[49].mxu1  ;;  %v9690_v3 = vpop.f32.mrb[48].mxu0 }
 0x261   : > { %v2763_v10 = vsel %vm9070_vm12, %v2758_v55, %v2762_v52  ;;  %v3211_v21 = vsel %vm9062_vm11, %v7135_v9, %v3210_v14  ;;  %6096 = vmatmul.mubr.bf16.gmra.mrb[120].mxu0 %v8585_v17  ;;  %v3786_v38 = vshrl.u32 %v7190_v6, 16  ;;  %v3789_v41 = vshll.u32 %v7190_v6, 16  ;;  %v9692_v62 = vpop.f32.mrb[50].mxu1  ;;  %v9694_v15 = vpop.f32.mrb[49].mxu0 }
 0x262   : > { %10895 = vst [vmem:[#allocation39_spill] sm:$0xff] %v9692_v62  ;;  %v7379_v54 = vcombine.low %v2749_v0, %v2763_v10  ;;  %v7396_v39 = vcombine.low %v3207_v23, %v3211_v21  ;;  %v3795_v59 = vshll.u32 %v7191_v49, 16  ;;  %v3800_v36 = vshrl.u32 %v7192_v32, 16  ;;  %v9696_v34 = vpop.f32.mrb[51].mxu1  ;;  %v9698_v60 = vpop.f32.mrb[50].mxu0 }
 0x263   : > { %10896 = vst [vmem:[#allocation40_spill] sm:$0xff] %v9696_v34  ;;  %v3788_v55 = vrot.slane %v3786_v38, 4  ;;  %v3791_v52 = vrot.slane %v3789_v41, 5  ;;  %v3803_v35 = vshll.u32 %v7192_v32, 16  ;;  %v3809_v24 = vshll.u32 %v7193_v48, 16  ;;  %v9708_v49 = vpop.f32.mrb[51].mxu0 }
 0x264   : > { %5927 = vmatmul.mubr.bf16.gmra.mrb[116].mxu1 %v7379_v54  ;;  %v3797_v6 = vrot.slane %v3795_v59, 5  ;;  %v3802_v9 = vrot.slane %v3800_v36, 4  ;;  %v9702_v14 = vadd.f32 %v9476_v25, %v9474_v58  ;;  %v9706_v17 = vadd.f32 %v9480_v22, %v9478_v42  ;;  %v2955_v22 = vld [vmem:[#allocation2 + $0xe0] sm:$0x1e] }
 0x265   : > { %5934 = vmatprep.mubr.bf16.mxu1 %v7396_v39  ;;  %v3792_v0 = vor.u32 %v3791_v52, %v3788_v55  ;;  %v3805_v23 = vrot.slane %v3803_v35, 5  ;;  %v3811_v32 = vrot.slane %v3809_v24, 5  ;;  %v7026_v48 = vcombine.low %v2312_v8, %v2312_v8  ;;  %v3309_v24 = vld [vmem:[#allocation2 + $0x100] sm:$0x1f] }
 0x266   : > { %10897 = vst [vmem:[#allocation41_spill] sm:$0xff] %v9702_v14  ;;  %10898 = vst [vmem:[#allocation42_spill] sm:$0xff] %v9706_v17  ;;  %v7027_v10 = vcombine.high %v2312_v8, %v2312_v8  ;;  %v7028_v21 = vcombine.low %v2313_v43, %v2313_v43  ;;  %v7029_v38 = vcombine.high %v2313_v43, %v2313_v43 }
 0x267   : > { %v7094_v41 = vcombine.low %v2954_v37, %v2954_v37  ;;  %v3793_v54 = vrot.slane %v3792_v0, 4  ;;  %v3806_v59 = vor.u32 %v3805_v23, %v3802_v9  ;;  %v2765_v36 = vshrl.u32 %v7026_v48, 16 }
 0x268   : > { %v2768_v58 = vshll.u32 %v7026_v48, 16  ;;  %v2774_v25 = vshll.u32 %v7027_v10, 16  ;;  %v2779_v14 = vshrl.u32 %v7028_v21, 16  ;;  %v2782_v34 = vshll.u32 %v7028_v21, 16  ;;  %v9712_v8 = vpop.f32.mrb[52].mxu0 }
 0x269   : > { %v2788_v42 = vshll.u32 %v7029_v38, 16  ;;  %v3798_v39 = vsel %vm9070_vm12, %v3793_v54, %v3797_v6  ;;  %v3807_v55 = vrot.slane %v3806_v59, 4  ;;  %v2767_v52 = vrot.slane %v2765_v36, 4  ;;  %10899 = vst [vmem:[#allocation43_spill] sm:$0xff] %v9712_v8  ;;  %v9714_v23 = vpop.f32.mrb[53].mxu0  ;;  %v9716_v48 = vpop.f32.mrb[52].mxu1 }
 0x26a   : > { %v2770_v35 = vrot.slane %v2768_v58, 5  ;;  %v2776_v43 = vrot.slane %v2774_v25, 5  ;;  %v2781_v17 = vrot.slane %v2779_v14, 4  ;;  %v2784_v0 = vrot.slane %v2782_v34, 5  ;;  %10900 = vst [vmem:[#allocation44_spill] sm:$0xff] %v9714_v23  ;;  %10901 = vst [vmem:[#allocation45_spill] sm:$0xff] %v9716_v48 }
 0x26b   : > { %v2790_v9 = vrot.slane %v2788_v42, 5  ;;  %v3812_v10 = vsel %vm9070_vm12, %v3807_v55, %v3811_v32  ;;  %v7095_v38 = vcombine.high %v2954_v37, %v2954_v37  ;;  %v7096_v6 = vcombine.low %v2955_v22, %v2955_v22  ;;  %v3310_v54 = vld [vmem:[#allocation2 + $0x108] sm:$0x1f]  ;;  %v9720_v59 = vpop.f32.mrb[54].mxu0  ;;  %v9722_v36 = vpop.f32.mrb[53].mxu1 }
 0x26c   : > { %v2771_v21 = vor.u32 %v2770_v35, %v2767_v52  ;;  %10902 = vst [vmem:[#allocation46_spill] sm:$0xff] %v9720_v59  ;;  %10903 = vst [vmem:[#allocation47_spill] sm:$0xff] %v9722_v36  ;;  %v7429_v58 = vcombine.low %v3798_v39, %v3812_v10  ;;  %v2785_v25 = vor.u32 %v2784_v0, %v2781_v17  ;;  %v7136_v34 = vrot.slane %v7094_v41, 9  ;;  %v9724_v42 = vpop.f32.mrb[55].mxu0  ;;  %v9726_v62 = vpop.f32.mrb[54].mxu1 }
 0x26d   : > { %v7097_v14 = vcombine.high %v2955_v22, %v2955_v22  ;;  %v3214_v23 = vrot.slane %v7095_v38, 5  ;;  %v7137_v8 = vrot.slane %v7096_v6, 9  ;;  %v8599_v32 = vld [vmem:[#allocation2 + $0xe0] ss:$8 sps:$4 sm:$0xff]   ;;  %v7194_v55 = vcombine.low %v3309_v24, %v3309_v24  ;;  %v9728_v37 = vpop.f32.mrb[55].mxu1 }
 0x26e   : > { %v2772_v48 = vrot.slane %v2771_v21, 4  ;;  %10904 = vst [vmem:[#allocation48_spill] sm:$0xff] %v9728_v37  ;;  %6103 = vmatprep.mubr.bf16.mxu0 %v7429_v58  ;;  %v2786_v52 = vrot.slane %v2785_v25, 4  ;;  %v7195_v59 = vcombine.high %v3309_v24, %v3309_v24  ;;  %v7196_v36 = vcombine.low %v3310_v54, %v3310_v54  ;;  %v2314_v37 = vld [vmem:[#allocation2 + $0xd8] sm:$0x1f] }
 0x26f   : > { %v3218_v35 = vrot.slane %v7097_v14, 5  ;;  %v3215_v41 = vsel %vm9062_vm11, %v7136_v34, %v3214_v23  ;;  %6104 = vmatmul.mubr.bf16.gmra.mrb[124].mxu0 %v8599_v32  ;;  %v7197_v22 = vcombine.high %v3310_v54, %v3310_v54  ;;  %v3814_v39 = vshrl.u32 %v7194_v55, 16 }
 0x270   : > { %v2777_v17 = vsel %vm9070_vm12, %v2772_v48, %v2776_v43  ;;  %v2791_v0 = vsel %vm9070_vm12, %v2786_v52, %v2790_v9  ;;  %v3817_v21 = vshll.u32 %v7194_v55, 16  ;;  %v3823_v38 = vshll.u32 %v7195_v59, 16  ;;  %v2315_v59 = vld [vmem:[#allocation2 + $0xe0] sm:$0x1f]  ;;  %v2956_v52 = vld [vmem:[#allocation2 + $0xf8] sm:$0x1e] }
 0x271   : > { %v3219_v10 = vsel %vm9062_vm11, %v7137_v8, %v3218_v35  ;;  %v7380_v6 = vcombine.low %v2777_v17, %v2791_v0  ;;  %v3816_v24 = vrot.slane %v3814_v39, 4  ;;  %v3828_v58 = vshrl.u32 %v7196_v36, 16 }
 0x272   : > { %v7397_v25 = vcombine.low %v3215_v41, %v3219_v10  ;;  %v3819_v14 = vrot.slane %v3817_v21, 5  ;;  %v3831_v43 = vshll.u32 %v7196_v36, 16  ;;  %v3837_v48 = vshll.u32 %v7197_v22, 16  ;;  %v2957_v22 = vld [vmem:[#allocation2 + $0x100] sm:$0x1e] }
 0x273   : > { %5935 = vmatmul.mubr.bf16.gmra.mrb[120].mxu1 %v7380_v6  ;;  %v3830_v23 = vrot.slane %v3828_v58, 4  ;;  %v9740_v54 = vadd.f32 %v9490_v53, %v9486_v40  ;;  %v9744_v9 = vadd.f32 %v9504_v56, %v9500_v30  ;;  %v9748_v8 = vadd.f32 %v9502_v13, %v9496_v47 }
 0x274   : > { %5942 = vmatprep.mubr.bf16.mxu1 %v7397_v25  ;;  %v3820_v34 = vor.u32 %v3819_v14, %v3816_v24  ;;  %v3825_v36 = vrot.slane %v3823_v38, 5  ;;  %v3833_v32 = vrot.slane %v3831_v43, 5  ;;  %v9752_v55 = vadd.f32 %v9508_v29, %v9506_v12 }
 0x275   : > { %10905 = vst [vmem:[#allocation49_spill] sm:$0xff] %v9744_v9  ;;  %v3839_v40 = vrot.slane %v3837_v48, 5  ;;  %v7030_v53 = vcombine.low %v2314_v37, %v2314_v37  ;;  %v7031_v35 = vcombine.high %v2314_v37, %v2314_v37  ;;  %v7032_v56 = vcombine.low %v2315_v59, %v2315_v59  ;;  %v9754_v47 = vpop.f32.mrb[56].mxu0  ;;  %v9756_v13 = vpop.f32.mrb[56].mxu1 }
 0x276   : > { %10906 = vst [vmem:[#allocation50_spill] sm:$0xff] %v9752_v55  ;;  %v3821_v17 = vrot.slane %v3820_v34, 4  ;;  %v3834_v30 = vor.u32 %v3833_v32, %v3830_v23  ;;  %v7033_v41 = vcombine.high %v2315_v59, %v2315_v59  ;;  %10907 = vst [vmem:[#allocation51_spill] sm:$0xff] %v9756_v13  ;;  %v7098_v21 = vcombine.low %v2956_v52, %v2956_v52  ;;  %v9758_v38 = vpop.f32.mrb[57].mxu0  ;;  %v9760_v12 = vpop.f32.mrb[57].mxu1 }
 0x277   : > { %v2793_v39 = vshrl.u32 %v7030_v53, 16  ;;  %v2796_v0 = vshll.u32 %v7030_v53, 16  ;;  %v2802_v10 = vshll.u32 %v7031_v35, 16  ;;  %10908 = vst [vmem:[#allocation52_spill] sm:$0xff] %v9760_v12  ;;  %v2807_v6 = vshrl.u32 %v7032_v56, 16  ;;  %v9764_v58 = vpop.f32.mrb[58].mxu0 }
 0x278   : > { %v3826_v29 = vsel %vm9070_vm12, %v3821_v17, %v3825_v36  ;;  %v3835_v37 = vrot.slane %v3834_v30, 4  ;;  %v2810_v24 = vshll.u32 %v7032_v56, 16  ;;  %10909 = vst [vmem:[#allocation53_spill] sm:$0xff] %v9764_v58  ;;  %v9766_v25 = vpop.f32.mrb[58].mxu1  ;;  %v2816_v23 = vshll.u32 %v7033_v41, 16  ;;  %v9768_v59 = vpop.f32.mrb[59].mxu0 }
 0x279   : > { %10910 = vst [vmem:[#allocation54_spill] sm:$0xff] %v9766_v25  ;;  %v2795_v14 = vrot.slane %v2793_v39, 4  ;;  %v2798_v43 = vrot.slane %v2796_v0, 5  ;;  %v2804_v48 = vrot.slane %v2802_v10, 5  ;;  %10911 = vst [vmem:[#allocation55_spill] sm:$0xff] %v9768_v59  ;;  %v9770_v34 = vpop.f32.mrb[59].mxu1  ;;  %v7099_v35 = vcombine.high %v2956_v52, %v2956_v52 }
 0x27a   : > { %10912 = vst [vmem:[#allocation56_spill] sm:$0xff] %v9770_v34  ;;  %v3840_v32 = vsel %vm9070_vm12, %v3835_v37, %v3839_v40  ;;  %v2809_v53 = vrot.slane %v2807_v6, 4  ;;  %v2812_v36 = vrot.slane %v2810_v24, 5  ;;  %v3311_v17 = vld [vmem:[#allocation2 + $0x110] sm:$0x1f]  ;;  %v2818_v55 = vrot.slane %v2816_v23, 5 }
 0x27b   : > { %v7430_v30 = vcombine.low %v3826_v29, %v3840_v32  ;;  %v2799_v56 = vor.u32 %v2798_v43, %v2795_v14  ;;  %v7100_v9 = vcombine.low %v2957_v22, %v2957_v22  ;;  %v3312_v25 = vld [vmem:[#allocation2 + $0x118] sm:$0x1f]  ;;  %v7101_v0 = vcombine.high %v2957_v22, %v2957_v22  ;;  %v8612_v12 = vld [vmem:[#allocation2 + $0x100] ss:$8 sps:$4 sm:$0xff]  }
 0x27c   : > { %v2813_v39 = vor.u32 %v2812_v36, %v2809_v53  ;;  %v7138_v10 = vrot.slane %v7098_v21, 9  ;;  %v3222_v41 = vrot.slane %v7099_v35, 5  ;;  %v7198_v59 = vcombine.low %v3311_v17, %v3311_v17  ;;  %v8722_v52 = vld [vmem:[%s10840_s5] sm:$0xff]   ;;  %v8723_v40 = vld [vmem:[%s10840_s5 + $0x8] sm:$0xff]  }
 0x27d   : > { %6111 = vmatprep.mubr.bf16.mxu0 %v7430_v30  ;;  %v2800_v13 = vrot.slane %v2799_v56, 4  ;;  %v7139_v34 = vrot.slane %v7100_v9, 9  ;;  %v7199_v58 = vcombine.high %v3311_v17, %v3311_v17  ;;  %v3226_v21 = vrot.slane %v7101_v0, 5  ;;  %v9782_v6 = vpop.f32.mrb[60].mxu0  ;;  %8129 = vmatprep.subr.bf16.mxu0 %v8722_v52  ;;  %v2316_v30 = vld [vmem:[#allocation2 + $0xf8] sm:$0x1f] }
 0x27e   : > { %v2814_v29 = vrot.slane %v2813_v39, 4  ;;  %v3223_v22 = vsel %vm9062_vm11, %v7138_v10, %v3222_v41  ;;  %6112 = vmatmul.mubr.bf16.gmra.mrb[128].mxu0 %v8612_v12  ;;  %v7200_v37 = vcombine.low %v3312_v25, %v3312_v25  ;;  %v7201_v24 = vcombine.high %v3312_v25, %v3312_v25  ;;  %v9786_v23 = vpop.f32.mrb[61].mxu0  ;;  %v8724_v41 = vld [vmem:[%s10840_s5 + $0x10] sm:$0xff]  }
 0x27f   : > { %v2805_v9 = vsel %vm9070_vm12, %v2800_v13, %v2804_v48  ;;  %v3842_v14 = vshrl.u32 %v7198_v59, 16  ;;  %v3845_v43 = vshll.u32 %v7198_v59, 16  ;;  %v3227_v53 = vsel %vm9062_vm11, %v7139_v34, %v3226_v21  ;;  %v9792_v35 = vpop.f32.mrb[62].mxu0  ;;  %8130 = vmatpush3.bf16.msra.mxu0 %v8722_v52 }
 0x280   : > { %v2819_v32 = vsel %vm9070_vm12, %v2814_v29, %v2818_v55  ;;  %v3851_v36 = vshll.u32 %v7199_v58, 16  ;;  %v3856_v12 = vshrl.u32 %v7200_v37, 16  ;;  %v9794_v17 = vpop.f32.mrb[60].mxu1  ;;  %v7398_v25 = vcombine.low %v3223_v22, %v3227_v53  ;;  %v9796_v56 = vpop.f32.mrb[63].mxu0  ;;  %8131 = vmatprep.subr.bf16.mxu0 %v8723_v40 }
 0x281   : > { %v7381_v13 = vcombine.low %v2805_v9, %v2819_v32  ;;  %v3844_v48 = vrot.slane %v3842_v14, 4  ;;  %v3847_v59 = vrot.slane %v3845_v43, 5  ;;  %v9798_v39 = vpop.f32.mrb[61].mxu1  ;;  %v3859_v34 = vshll.u32 %v7200_v37, 16  ;;  %v2317_v37 = vld [vmem:[#allocation2 + $0x100] sm:$0x1f] }
 0x282   : > { %v3853_v55 = vrot.slane %v3851_v36, 5  ;;  %v3858_v0 = vrot.slane %v3856_v12, 4  ;;  %v3865_v58 = vshll.u32 %v7201_v24, 16  ;;  %v9800_v10 = vpop.f32.mrb[62].mxu1  ;;  %v9807_v29 = vadd.f32 %v9512_v2, %v9510_v44  ;;  %v2958_v44 = vld [vmem:[#allocation2 + $0x108] sm:$0x1e] }
 0x283   : > { %10913 = vst [vmem:[#allocation57_spill] sm:$0xff] %v9800_v10  ;;  %5943 = vmatmul.mubr.bf16.gmra.mrb[124].mxu1 %v7381_v13  ;;  %v3848_v52 = vor.u32 %v3847_v59, %v3844_v48  ;;  %v9811_v22 = vadd.f32 %v9528_v19, %v9522_v5  ;;  %v9815_v21 = vadd.f32 %v9518_v11, %v9514_v51  ;;  %v9817_v9 = vpop.f32.mrb[63].mxu1  ;;  %v3861_v24 = vrot.slane %v3859_v34, 5  ;;  %v8626_v10 = vld [vmem:[#allocation2 + $0x110] ss:$8 sps:$4 sm:$0xff]  }
 0x284   : > { %10915 = vst [vmem:[#allocation59_spill] sm:$0xff] %v9817_v9  ;;  %5950 = vmatprep.mubr.bf16.mxu1 %v7398_v25  ;;  %v9821_v14 = vadd.f32 %v9536_v31, %v9534_v16  ;;  %v7034_v43 = vcombine.low %v2316_v30, %v2316_v30  ;;  %8132 = vmatpush3.bf16.msra.mxu0 %v8723_v40  ;;  %v3867_v32 = vrot.slane %v3865_v58, 5  ;;  %v2959_v16 = vld [vmem:[#allocation2 + $0x110] sm:$0x1e] }
 0x285   : > { %10914 = vst [vmem:[#allocation58_spill] sm:$0xff] %v9811_v22  ;;  %v3849_v2 = vrot.slane %v3848_v52, 4  ;;  %v7035_v5 = vcombine.high %v2316_v30, %v2316_v30  ;;  %8133 = vmatprep.subr.bf16.mxu0 %v8724_v41  ;;  %v3862_v19 = vor.u32 %v3861_v24, %v3858_v0  ;;  %v7036_v53 = vcombine.low %v2317_v37, %v2317_v37 }
 0x286   : > { %10916 = vst [vmem:[#allocation60_spill] sm:$0xff] %v9821_v14  ;;  %v7037_v51 = vcombine.high %v2317_v37, %v2317_v37  ;;  %v2821_v11 = vshrl.u32 %v7034_v43, 16  ;;  %v9823_v36 = vpop.f32.mrb[64].mxu0  ;;  %v2824_v13 = vshll.u32 %v7034_v43, 16  ;;  %v7102_v31 = vcombine.low %v2958_v44, %v2958_v44 }
 0x287   : > { %v3854_v12 = vsel %vm9070_vm12, %v3849_v2, %v3853_v55  ;;  %v2830_v25 = vshll.u32 %v7035_v5, 16  ;;  %v9827_v48 = vpop.f32.mrb[65].mxu0  ;;  %v3863_v40 = vrot.slane %v3862_v19, 4  ;;  %v2835_v34 = vshrl.u32 %v7036_v53, 16 }
 0x288   : > { %10917 = vst [vmem:[#allocation61_spill] sm:$0xff] %v9827_v48  ;;  %v2823_v59 = vrot.slane %v2821_v11, 4  ;;  %v2838_v30 = vshll.u32 %v7036_v53, 16  ;;  %v9829_v58 = vpop.f32.mrb[66].mxu0  ;;  %8134 = vmatpush3.bf16.msra.mxu0 %v8724_v41  ;;  %v2826_v0 = vrot.slane %v2824_v13, 5  ;;  %v2844_v37 = vshll.u32 %v7037_v51, 16 }
 0x289   : > { %10918 = vst [vmem:[#allocation62_spill] sm:$0xff] %v9829_v58  ;;  %v2832_v52 = vrot.slane %v2830_v25, 5  ;;  %v7103_v24 = vcombine.high %v2958_v44, %v2958_v44  ;;  %v9831_v14 = vpop.f32.mrb[67].mxu0  ;;  %v9833_v55 = vpop.f32.mrb[64].mxu1  ;;  %v3868_v43 = vsel %vm9070_vm12, %v3863_v40, %v3867_v32  ;;  %v2837_v2 = vrot.slane %v2835_v34, 4 }
 0x28a   : > { %10919 = vst [vmem:[#allocation63_spill] sm:$0xff] %v9831_v14  ;;  %10920 = vst [vmem:[#allocation64_spill] sm:$0xff] %v9833_v55  ;;  %v2840_v5 = vrot.slane %v2838_v30, 5  ;;  %v7104_v19 = vcombine.low %v2959_v16, %v2959_v16  ;;  %v3313_v11 = vld [vmem:[#allocation2 + $0x120] sm:$0x1f]  ;;  %v9837_v22 = vpop.f32.mrb[65].mxu1  ;;  %v7431_v53 = vcombine.low %v3854_v12, %v3868_v43  ;;  %v2827_v58 = vor.u32 %v2826_v0, %v2823_v59 }
 0x28b   : > { %10921 = vst [vmem:[#allocation65_spill] sm:$0xff] %v9837_v22  ;;  %v2846_v41 = vrot.slane %v2844_v37, 5  ;;  %v7105_v13 = vcombine.high %v2959_v16, %v2959_v16  ;;  %v3314_v25 = vld [vmem:[#allocation2 + $0x128] sm:$0x1f]  ;;  %v9839_v51 = vpop.f32.mrb[66].mxu1  ;;  %v7140_v14 = vrot.slane %v7102_v31, 9  ;;  %v7202_v34 = vcombine.low %v3313_v11, %v3313_v11 }
 0x28c   : > { %v2841_v44 = vor.u32 %v2840_v5, %v2837_v2  ;;  %v3230_v9 = vrot.slane %v7103_v24, 5  ;;  %v7141_v55 = vrot.slane %v7104_v19, 9  ;;  %v9841_v48 = vpop.f32.mrb[67].mxu1  ;;  %6119 = vmatprep.mubr.bf16.mxu0 %v7431_v53  ;;  %v2828_v32 = vrot.slane %v2827_v58, 4  ;;  %v9848_v31 = vld [vmem:[%s10839_s4] ss:$0 sm:$0xff] }
 0x28d   : > { %v3234_v40 = vrot.slane %v7105_v13, 5  ;;  %v7203_v30 = vcombine.high %v3313_v11, %v3313_v11  ;;  %6120 = vmatmul.mubr.bf16.gmra.mrb[132].mxu0 %v8626_v10  ;;  %v7204_v16 = vcombine.low %v3314_v25, %v3314_v25  ;;  %v7205_v59 = vcombine.high %v3314_v25, %v3314_v25  ;;  %v2318_v5 = vld [vmem:[#allocation2 + $0x108] sm:$0x1f] }
 0x28e   : > { %v2842_v22 = vrot.slane %v2841_v44, 4  ;;  %v3231_v12 = vsel %vm9062_vm11, %v7140_v14, %v3230_v9  ;;  %v2833_v0 = vsel %vm9070_vm12, %v2828_v32, %v2832_v52  ;;  %v3870_v37 = vshrl.u32 %v7202_v34, 16 }
 0x28f   : > { %v3235_v58 = vsel %vm9062_vm11, %v7141_v55, %v3234_v40  ;;  %v3873_v24 = vshll.u32 %v7202_v34, 16  ;;  %v9854_v43 = vpop.f32.mrb[68].mxu0  ;;  %v3879_v14 = vshll.u32 %v7203_v30, 16  ;;  %v3884_v2 = vshrl.u32 %v7204_v16, 16 }
 0x290   : > { %v2847_v10 = vsel %vm9070_vm12, %v2842_v22, %v2846_v41  ;;  %v7399_v9 = vcombine.low %v3231_v12, %v3235_v58  ;;  %v9858_v19 = vpop.f32.mrb[69].mxu0  ;;  %v3872_v53 = vrot.slane %v3870_v37, 4  ;;  %v3887_v52 = vshll.u32 %v7204_v16, 16  ;;  %v9862_v55 = vpop.f32.mrb[68].mxu1  ;;  %v2960_v37 = vld [vmem:[#allocation2 + $0x118] sm:$0x1e] }
 0x291   : > { %v7382_v11 = vcombine.low %v2833_v0, %v2847_v10  ;;  %v3875_v13 = vrot.slane %v3873_v24, 5  ;;  %v9860_v25 = vpop.f32.mrb[70].mxu0  ;;  %v3881_v44 = vrot.slane %v3879_v14, 5  ;;  %v3886_v32 = vrot.slane %v3884_v2, 4  ;;  %v9870_v34 = vpop.f32.mrb[69].mxu1 }
 0x292   : > { %v3893_v40 = vshll.u32 %v7205_v59, 16  ;;  %v9866_v22 = vadd.f32 %v9540_v50, %v9538_v57  ;;  %v9868_v41 = vpop.f32.mrb[71].mxu0  ;;  %v3889_v12 = vrot.slane %v3887_v52, 5  ;;  %v9874_v16 = vadd.f32 %v9552_v26, %v9548_v27  ;;  %v2319_v59 = vld [vmem:[#allocation2 + $0x110] sm:$0x1f]  ;;  %v9880_v58 = vpop.f32.mrb[70].mxu1 }
 0x293   : > { %5951 = vmatmul.mubr.bf16.gmra.mrb[128].mxu1 %v7382_v11  ;;  %v3876_v30 = vor.u32 %v3875_v13, %v3872_v53  ;;  %v9878_v0 = vadd.f32 %v9544_v61, %v9542_v46  ;;  %10923 = vst [vmem:[#allocation67_spill] sm:$0xff] %v9880_v58  ;;  %v9884_v57 = vadd.f32 %v9740_v54, %v9848_v31  ;;  %v9894_v46 = vpop.f32.mrb[71].mxu1  ;;  %v2961_v52 = vld [vmem:[#allocation2 + $0x120] sm:$0x1e] }
 0x294   : > { %10922 = vst [vmem:[#allocation66_spill] sm:$0xff] %v9874_v16  ;;  %v9888_v50 = vadd.f32 %v9748_v8, %v9848_v31  ;;  %5958 = vmatprep.mubr.bf16.mxu1 %v7399_v9  ;;  %v9892_v27 = vadd.f32 %v9556_v20, %v9554_v28  ;;  %v7038_v26 = vcombine.low %v2318_v5, %v2318_v5  ;;  %10927 = vst [vmem:[#allocation71_spill] sm:$0xff] %v9894_v46  ;;  %v3316_v46 = vld [vmem:[#allocation2 + $0x138] sm:$0x1f] }
 0x295   : > { %10924 = vst [vmem:[#allocation68_spill] sm:$0xff] %v9884_v57  ;;  %v3877_v61 = vrot.slane %v3876_v30, 4  ;;  %v3890_v24 = vor.u32 %v3889_v12, %v3886_v32  ;;  %v3895_v10 = vrot.slane %v3893_v40, 5  ;;  %v7039_v14 = vcombine.high %v2318_v5, %v2318_v5 }
 0x296   : > { %10925 = vst [vmem:[#allocation69_spill] sm:$0xff] %v9888_v50  ;;  %10926 = vst [vmem:[#allocation70_spill] sm:$0xff] %v9892_v27  ;;  %v7040_v2 = vcombine.low %v2319_v59, %v2319_v59  ;;  %v7041_v54 = vcombine.high %v2319_v59, %v2319_v59  ;;  %v2849_v11 = vshrl.u32 %v7038_v26, 16  ;;  %v2852_v53 = vshll.u32 %v7038_v26, 16  ;;  %v3315_v26 = vld [vmem:[#allocation2 + $0x130] sm:$0x1f] }
 0x297   : > { %v3882_v8 = vsel %vm9070_vm12, %v3877_v61, %v3881_v44  ;;  %v3891_v9 = vrot.slane %v3890_v24, 4  ;;  %v2858_v13 = vshll.u32 %v7039_v14, 16  ;;  %v7106_v28 = vcombine.low %v2960_v37, %v2960_v37  ;;  %v9898_v20 = vpop.f32.mrb[72].mxu0 }
 0x298   : > { %10928 = vst [vmem:[#allocation72_spill] sm:$0xff] %v9898_v20  ;;  %v2851_v27 = vrot.slane %v2849_v11, 4  ;;  %v2854_v16 = vrot.slane %v2852_v53, 5  ;;  %v2863_v50 = vshrl.u32 %v7040_v2, 16  ;;  %v2866_v30 = vshll.u32 %v7040_v2, 16  ;;  %v9900_v32 = vpop.f32.mrb[73].mxu0 }
 0x299   : > { %10929 = vst [vmem:[#allocation73_spill] sm:$0xff] %v9900_v32  ;;  %v3896_v5 = vsel %vm9070_vm12, %v3891_v9, %v3895_v10  ;;  %v2860_v40 = vrot.slane %v2858_v13, 5  ;;  %v2872_v12 = vshll.u32 %v7041_v54, 16  ;;  %v7107_v59 = vcombine.high %v2960_v37, %v2960_v37  ;;  %v9904_v44 = vpop.f32.mrb[74].mxu0  ;;  %v8639_v10 = vld [vmem:[#allocation2 + $0x120] ss:$8 sps:$4 sm:$0xff]  }
 0x29a   : > { %v7432_v61 = vcombine.low %v3882_v8, %v3896_v5  ;;  %v2855_v24 = vor.u32 %v2854_v16, %v2851_v27  ;;  %v2865_v14 = vrot.slane %v2863_v50, 4  ;;  %v2868_v57 = vrot.slane %v2866_v30, 5  ;;  %v9906_v11 = vpop.f32.mrb[75].mxu0  ;;  %v9908_v53 = vpop.f32.mrb[72].mxu1 }
 0x29b   : > { %10930 = vst [vmem:[#allocation74_spill] sm:$0xff] %v9908_v53  ;;  %v2874_v2 = vrot.slane %v2872_v12, 5  ;;  %v7108_v58 = vcombine.low %v2961_v52, %v2961_v52  ;;  %v7109_v32 = vcombine.high %v2961_v52, %v2961_v52  ;;  %v7142_v20 = vrot.slane %v7106_v28, 9  ;;  %v9910_v9 = vpop.f32.mrb[73].mxu1 }
 0x29c   : > { %10931 = vst [vmem:[#allocation75_spill] sm:$0xff] %v9910_v9  ;;  %6127 = vmatprep.mubr.bf16.mxu0 %v7432_v61  ;;  %v2856_v37 = vrot.slane %v2855_v24, 4  ;;  %v2869_v54 = vor.u32 %v2868_v57, %v2865_v14  ;;  %v3238_v13 = vrot.slane %v7107_v59, 5  ;;  %v7206_v8 = vcombine.low %v3315_v26, %v3315_v26  ;;  %v9912_v16 = vpop.f32.mrb[74].mxu1  ;;  %v8725_v57 = vld [vmem:[%s10840_s5 + $0x18] sm:$0xff]  }
 0x29d   : > { %10932 = vst [vmem:[#allocation76_spill] sm:$0xff] %v9912_v16  ;;  %v7143_v50 = vrot.slane %v7108_v58, 9  ;;  %v3242_v27 = vrot.slane %v7109_v32, 5  ;;  %6128 = vmatmul.mubr.bf16.gmra.mrb[136].mxu0 %v8639_v10  ;;  %v7207_v30 = vcombine.high %v3315_v26, %v3315_v26  ;;  %v7208_v5 = vcombine.low %v3316_v46, %v3316_v46  ;;  %v9914_v53 = vpop.f32.mrb[75].mxu1  ;;  %8135 = vmatprep.subr.bf16.mxu0 %v8725_v57  ;;  %v2321_v16 = vld [vmem:[#allocation2 + $0x120] sm:$0x1f] }
 0x29e   : > { %10933 = vst [vmem:[#allocation77_spill] sm:$0xff] %v9914_v53  ;;  %v2861_v52 = vsel %vm9070_vm12, %v2856_v37, %v2860_v40  ;;  %v2870_v28 = vrot.slane %v2869_v54, 4  ;;  %v3239_v12 = vsel %vm9062_vm11, %v7142_v20, %v3238_v13  ;;  %v7209_v61 = vcombine.high %v3316_v46, %v3316_v46  ;;  %v2320_v37 = vld [vmem:[#allocation2 + $0x118] sm:$0x1f]  ;;  %8136 = vmatpush3.bf16.msra.mxu0 %v8725_v57 }
 0x29f   : > { %v3243_v58 = vsel %vm9062_vm11, %v7143_v50, %v3242_v27  ;;  %v3898_v32 = vshrl.u32 %v7206_v8, 16  ;;  %v3901_v59 = vshll.u32 %v7206_v8, 16  ;;  %v3907_v26 = vshll.u32 %v7207_v30, 16 }
 0x2a0   : > { %v2875_v24 = vsel %vm9070_vm12, %v2870_v28, %v2874_v2  ;;  %v7400_v14 = vcombine.low %v3239_v12, %v3243_v58  ;;  %v3912_v40 = vshrl.u32 %v7208_v5, 16  ;;  %v3915_v10 = vshll.u32 %v7208_v5, 16  ;;  %v9927_v54 = vpop.f32.mrb[76].mxu0  ;;  %v10937_v28 = vld [vmem:[#allocation8_spill] sm:$0xff]  ;;  %v10939_v58 = vld [vmem:[#allocation6_spill] sm:$0xff] }
 0x2a1   : > { %v7383_v46 = vcombine.low %v2861_v52, %v2875_v24  ;;  %v3900_v20 = vrot.slane %v3898_v32, 4  ;;  %v3903_v13 = vrot.slane %v3901_v59, 5  ;;  %v3909_v53 = vrot.slane %v3907_v26, 5  ;;  %v9929_v9 = vpop.f32.mrb[77].mxu0  ;;  %v10940_v32 = vld [vmem:[#allocation7_spill] sm:$0xff]  ;;  %v10941_v59 = vld [vmem:[#allocation9_spill] sm:$0xff] }
 0x2a2   : > { %10934 = vst [vmem:[#allocation78_spill] sm:$0xff] %v9929_v9  ;;  %v3914_v8 = vrot.slane %v3912_v40, 4  ;;  %v3917_v50 = vrot.slane %v3915_v10, 5  ;;  %v3921_v27 = vshll.u32 %v7209_v61, 16  ;;  %v9933_v2 = vadd.f32 %v9568_v1, %v9566_v18  ;;  %v9935_v30 = vpop.f32.mrb[78].mxu0  ;;  %v9937_v5 = vpop.f32.mrb[76].mxu1 }
 0x2a3   : > { %10935 = vst [vmem:[#allocation79_spill] sm:$0xff] %v9935_v30  ;;  %10936 = vst [vmem:[#allocation80_spill] sm:$0xff] %v9937_v5  ;;  %5959 = vmatmul.mubr.bf16.gmra.mrb[132].mxu1 %v7383_v46  ;;  %v3904_v52 = vor.u32 %v3903_v13, %v3900_v20  ;;  %v9941_v12 = vadd.f32 %v10937_v28, %v9572_v45  ;;  %v9945_v57 = vadd.f32 %v10940_v32, %v10939_v58  ;;  %v10942_v61 = vld [vmem:[#allocation10_spill] sm:$0xff]  ;;  %v9951_v18 = vpop.f32.mrb[79].mxu0  ;;  %v9953_v1 = vpop.f32.mrb[77].mxu1  ;;  %v10950_v30 = vld [vmem:[#allocation11_spill] sm:$0xff] }
 0x2a4   : > { %v9949_v26 = vadd.f32 %v10942_v61, %v10941_v59  ;;  %10944 = vst [vmem:[#allocation7_spill] sm:$0xff] %v9951_v18  ;;  %10945 = vst [vmem:[#allocation9_spill] sm:$0xff] %v9953_v1  ;;  %v9957_v24 = vadd.f32 %v9807_v29, %v9848_v31  ;;  %5966 = vmatprep.mubr.bf16.mxu1 %v7400_v14  ;;  %v3918_v40 = vor.u32 %v3917_v50, %v3914_v8  ;;  %v9959_v46 = vpop.f32.mrb[78].mxu1  ;;  %v10951_v9 = vld [vmem:[#allocation12_spill] sm:$0xff] }
 0x2a5   : > { %10938 = vst [vmem:[#allocation8_spill] sm:$0xff] %v9941_v12  ;;  %v3923_v45 = vrot.slane %v3921_v27, 5  ;;  %v7042_v10 = vcombine.low %v2320_v37, %v2320_v37  ;;  %10947 = vst [vmem:[#allocation81_spill] sm:$0xff] %v9959_v46  ;;  %v9963_v20 = vadd.f32 %v9815_v21, %v9848_v31  ;;  %v3905_v13 = vrot.slane %v3904_v52, 4  ;;  %v9965_v32 = vpop.f32.mrb[79].mxu1 }
 0x2a6   : > { %10943 = vst [vmem:[#allocation6_spill] sm:$0xff] %v9949_v26  ;;  %10946 = vst [vmem:[#allocation10_spill] sm:$0xff] %v9957_v24  ;;  %v7043_v28 = vcombine.high %v2320_v37, %v2320_v37  ;;  %v7044_v58 = vcombine.low %v2321_v16, %v2321_v16  ;;  %v3919_v59 = vrot.slane %v3918_v40, 4  ;;  %v7045_v61 = vcombine.high %v2321_v16, %v2321_v16  ;;  %v2962_v12 = vld [vmem:[#allocation2 + $0x128] sm:$0x1e] }
 0x2a7   : > { %10948 = vst [vmem:[#allocation82_spill] sm:$0xff] %v9963_v20  ;;  %10949 = vst [vmem:[#allocation83_spill] sm:$0xff] %v9965_v32  ;;  %v2877_v26 = vshrl.u32 %v7042_v10, 16  ;;  %v2880_v29 = vshll.u32 %v7042_v10, 16  ;;  %v3910_v14 = vsel %vm9070_vm12, %v3905_v13, %v3909_v53  ;;  %v2963_v24 = vld [vmem:[#allocation2 + $0x130] sm:$0x1e]  ;;  %v7110_v5 = vcombine.low %v2962_v12, %v2962_v12 }
 0x2a8   : > { %v2886_v8 = vshll.u32 %v7043_v28, 16  ;;  %v2891_v50 = vshrl.u32 %v7044_v58, 16  ;;  %v2894_v27 = vshll.u32 %v7044_v58, 16  ;;  %v3924_v21 = vsel %vm9070_vm12, %v3919_v59, %v3923_v45  ;;  %v8653_v53 = vld [vmem:[#allocation2 + $0x130] ss:$8 sps:$4 sm:$0xff]  }
 0x2a9   : > { %v2879_v20 = vrot.slane %v2877_v26, 4  ;;  %v2882_v52 = vrot.slane %v2880_v29, 5  ;;  %v2900_v37 = vshll.u32 %v7045_v61, 16  ;;  %v7433_v46 = vcombine.low %v3910_v14, %v3924_v21  ;;  %v10952_v14 = vld [vmem:[#allocation15_spill] sm:$0xff] }
 0x2aa   : > { %v2888_v32 = vrot.slane %v2886_v8, 5  ;;  %v2893_v40 = vrot.slane %v2891_v50, 4  ;;  %v2896_v16 = vrot.slane %v2894_v27, 5  ;;  %v7111_v18 = vcombine.high %v2962_v12, %v2962_v12  ;;  %v2322_v12 = vld [vmem:[#allocation2 + $0x128] sm:$0x1f] }
 0x2ab   : > { %v2883_v1 = vor.u32 %v2882_v52, %v2879_v20  ;;  %v2902_v10 = vrot.slane %v2900_v37, 5  ;;  %6135 = vmatprep.mubr.bf16.mxu0 %v7433_v46  ;;  %v7112_v28 = vcombine.low %v2963_v24, %v2963_v24  ;;  %v7113_v58 = vcombine.high %v2963_v24, %v2963_v24  ;;  %v9975_v26 = vpop.f32.mrb[80].mxu0  ;;  %v10953_v20 = vld [vmem:[#allocation16_spill] sm:$0xff]  ;;  %v10957_v52 = vld [vmem:[#allocation14_spill] sm:$0xff] }
 0x2ac   : > { %v2897_v13 = vor.u32 %v2896_v16, %v2893_v40  ;;  %v9973_v45 = vadd.f32 %v10951_v9, %v10950_v30  ;;  %v7144_v61 = vrot.slane %v7110_v5, 9  ;;  %v3246_v29 = vrot.slane %v7111_v18, 5  ;;  %6136 = vmatmul.mubr.bf16.gmra.mrb[140].mxu0 %v8653_v53  ;;  %v9981_v50 = vpop.f32.mrb[81].mxu0  ;;  %v2323_v27 = vld [vmem:[#allocation2 + $0x130] sm:$0x1f]  ;;  %v10958_v40 = vld [vmem:[#allocation17_spill] sm:$0xff] }
 0x2ad   : > { %v2884_v59 = vrot.slane %v2883_v1, 4  ;;  %v9979_v8 = vadd.f32 %v10953_v20, %v10952_v14  ;;  %v9985_v24 = vadd.f32 %v9866_v22, %v9848_v31  ;;  %v7145_v9 = vrot.slane %v7112_v28, 9  ;;  %v9987_v21 = vpop.f32.mrb[82].mxu0  ;;  %v10956_v1 = vld [vmem:[#allocation13_spill] sm:$0xff]  ;;  %v10959_v16 = vld [vmem:[#allocation18_spill] sm:$0xff] }
 0x2ae   : > { %v2898_v46 = vrot.slane %v2897_v13, 4  ;;  %v3250_v30 = vrot.slane %v7113_v58, 5  ;;  %v3247_v18 = vsel %vm9062_vm11, %v7144_v61, %v3246_v29  ;;  %v9995_v37 = vadd.f32 %v10957_v52, %v10956_v1  ;;  %v10001_v53 = vpop.f32.mrb[83].mxu0 }
 0x2af   : > { %10954 = vst [vmem:[#allocation11_spill] sm:$0xff] %v9979_v8  ;;  %10955 = vst [vmem:[#allocation12_spill] sm:$0xff] %v9985_v24  ;;  %v2889_v5 = vsel %vm9070_vm12, %v2884_v59, %v2888_v32  ;;  %v9999_v22 = vadd.f32 %v10959_v16, %v10958_v40  ;;  %v7046_v32 = vcombine.low %v2322_v12, %v2322_v12  ;;  %v3925_v59 = vld [vmem:[#allocation2 + $0x10] sm:$0x1e] }
 0x2b0   : > { %10961 = vst [vmem:[#allocation16_spill] sm:$0xff] %v10001_v53  ;;  %v2903_v13 = vsel %vm9070_vm12, %v2898_v46, %v2902_v10  ;;  %v3251_v28 = vsel %vm9062_vm11, %v7145_v9, %v3250_v30  ;;  %v7047_v58 = vcombine.high %v2322_v12, %v2322_v12  ;;  %v10009_v61 = vadd.f32 %v9878_v0, %v9848_v31 }
 0x2b1   : > { %10960 = vst [vmem:[#allocation15_spill] sm:$0xff] %v9999_v22  ;;  %v7384_v29 = vcombine.low %v2889_v5, %v2903_v13  ;;  %v7401_v14 = vcombine.low %v3247_v18, %v3251_v28  ;;  %v7048_v20 = vcombine.low %v2323_v27, %v2323_v27  ;;  %v7049_v1 = vcombine.high %v2323_v27, %v2323_v27  ;;  %v3926_v22 = vld [vmem:[#allocation2 + $0x18] sm:$0x1e] }
 0x2b2   : > { %10962 = vst [vmem:[#allocation13_spill] sm:$0xff] %v10009_v61  ;;  %v2905_v52 = vshrl.u32 %v7046_v32, 16  ;;  %v2908_v40 = vshll.u32 %v7046_v32, 16  ;;  %v2914_v16 = vshll.u32 %v7047_v58, 16  ;;  %v7210_v8 = vcombine.low %v3925_v59, %v3925_v59 }
 0x2b3   : > { %5967 = vmatmul.mubr.bf16.gmra.mrb[136].mxu1 %v7384_v29  ;;  %v2919_v10 = vshrl.u32 %v7048_v20, 16  ;;  %v2922_v46 = vshll.u32 %v7048_v20, 16  ;;  %v7211_v9 = vcombine.high %v3925_v59, %v3925_v59  ;;  %v2928_v53 = vshll.u32 %v7049_v1, 16  ;;  %v10011_v0 = vpop.f32.mrb[84].mxu0 }
 0x2b4   : > { %5974 = vmatprep.mubr.bf16.mxu1 %v7401_v14  ;;  %v2907_v12 = vrot.slane %v2905_v52, 4  ;;  %v2910_v30 = vrot.slane %v2908_v40, 5  ;;  %v2916_v24 = vrot.slane %v2914_v16, 5  ;;  %10963 = vst [vmem:[#allocation14_spill] sm:$0xff] %v10011_v0  ;;  %v7212_v13 = vcombine.low %v3926_v22, %v3926_v22  ;;  %v10013_v28 = vpop.f32.mrb[85].mxu0  ;;  %v10966_v40 = vld [vmem:[#allocation19_spill] sm:$0xff] }
 0x2b5   : > { %v2921_v5 = vrot.slane %v2919_v10, 4  ;;  %v2924_v18 = vrot.slane %v2922_v46, 5  ;;  %v7213_v27 = vcombine.high %v3926_v22, %v3926_v22  ;;  %10964 = vst [vmem:[#allocation17_spill] sm:$0xff] %v10013_v28  ;;  %v2930_v58 = vrot.slane %v2928_v53, 5  ;;  %v10015_v20 = vpop.f32.mrb[86].mxu0  ;;  %v10967_v16 = vld [vmem:[#allocation20_spill] sm:$0xff] }
 0x2b6   : > { %v2911_v32 = vor.u32 %v2910_v30, %v2907_v12  ;;  %v7274_v29 = vrot.slane %v7210_v8, 9  ;;  %v4119_v61 = vrot.slane %v7211_v9, 5  ;;  %10965 = vst [vmem:[#allocation18_spill] sm:$0xff] %v10015_v20  ;;  %v7275_v14 = vrot.slane %v7212_v13, 9  ;;  %v3927_v0 = vld [vmem:[#allocation2 + $0x20] sm:$0x1e] }
 0x2b7   : > { %v2925_v59 = vor.u32 %v2924_v18, %v2921_v5  ;;  %v4123_v52 = vrot.slane %v7213_v27, 5  ;;  %v10019_v1 = vadd.f32 %v10967_v16, %v10966_v40  ;;  %v10021_v10 = vpop.f32.mrb[87].mxu0  ;;  %v10969_v12 = vld [vmem:[#allocation23_spill] sm:$0xff]  ;;  %v10970_v53 = vld [vmem:[#allocation24_spill] sm:$0xff]  ;;  %v10972_v9 = vld [vmem:[#allocation21_spill] sm:$0xff]  ;;  %v10033_v13 = vpop.f32.mrb[80].mxu1  ;;  %v10037_v27 = vadd.f32 %v9933_v2, %v9848_v31 }
 0x2b8   : > { %10968 = vst [vmem:[#allocation19_spill] sm:$0xff] %v10021_v10  ;;  %v2912_v46 = vrot.slane %v2911_v32, 4  ;;  %v4120_v22 = vsel %vm9062_vm11, %v7274_v29, %v4119_v61  ;;  %v10027_v8 = vadd.f32 %v10970_v53, %v10969_v12  ;;  %v10973_v30 = vld [vmem:[#allocation22_spill] sm:$0xff]  ;;  %v3928_v18 = vld [vmem:[#allocation2 + $0x28] sm:$0x1e]  ;;  %10974 = vst [vmem:[#allocation23_spill] sm:$0xff] %v10033_v13 }
 0x2b9   : > { %v10031_v5 = vadd.f32 %v10973_v30, %v10972_v9  ;;  %10975 = vst [vmem:[#allocation24_spill] sm:$0xff] %v10037_v27  ;;  %v2926_v40 = vrot.slane %v2925_v59, 4  ;;  %v4124_v32 = vsel %vm9062_vm11, %v7275_v14, %v4123_v52  ;;  %v10976_v61 = vld [vmem:[#allocation25_spill] sm:$0xff]  ;;  %v10977_v29 = vld [vmem:[#allocation26_spill] sm:$0xff]  ;;  %v3929_v12 = vld [vmem:[#allocation2 + $0x30] sm:$0x1e]  ;;  %v10049_v9 = vadd.f32 %v9945_v57, %v9848_v31 }
 0x2ba   : > { %10971 = vst [vmem:[#allocation20_spill] sm:$0xff] %v10027_v8  ;;  %v10043_v16 = vadd.f32 %v10977_v29, %v10976_v61  ;;  %v10045_v53 = vpop.f32.mrb[81].mxu1  ;;  %v2917_v30 = vsel %vm9070_vm12, %v2912_v46, %v2916_v24  ;;  %v7434_v2 = vcombine.low %v4120_v22, %v4124_v32  ;;  %v7214_v8 = vcombine.low %v3927_v0, %v3927_v0  ;;  %v3930_v59 = vld [vmem:[#allocation2 + $0x38] sm:$0x1e]  ;;  %v8726_v24 = vld [vmem:[%s10840_s5 + $0x20] sm:$0xff]  }
 0x2bb   : > { %10979 = vst [vmem:[#allocation22_spill] sm:$0xff] %v10045_v53  ;;  %10980 = vst [vmem:[#allocation25_spill] sm:$0xff] %v10049_v9  ;;  %v10053_v27 = vpop.f32.mrb[82].mxu1  ;;  %v2931_v14 = vsel %vm9070_vm12, %v2926_v40, %v2930_v58  ;;  %v7215_v52 = vcombine.high %v3927_v0, %v3927_v0  ;;  %v7216_v61 = vcombine.low %v3928_v18, %v3928_v18  ;;  %v10983_v40 = vld [vmem:[#allocation27_spill] sm:$0xff]  ;;  %8137 = vmatprep.subr.bf16.mxu0 %v8726_v24 }
 0x2bc   : > { %10978 = vst [vmem:[#allocation21_spill] sm:$0xff] %v10043_v16  ;;  %10981 = vst [vmem:[#allocation26_spill] sm:$0xff] %v10053_v27  ;;  %v7217_v29 = vcombine.high %v3928_v18, %v3928_v18  ;;  %v10057_v16 = vpop.f32.mrb[83].mxu1  ;;  %v7385_v10 = vcombine.low %v2917_v30, %v2931_v14  ;;  %v7276_v20 = vrot.slane %v7214_v8, 9  ;;  %v7218_v57 = vcombine.low %v3929_v12, %v3929_v12  ;;  %v10984_v18 = vld [vmem:[#allocation28_spill] sm:$0xff] }
 0x2bd   : > { %10982 = vst [vmem:[#allocation84_spill] sm:$0xff] %v10057_v16  ;;  %v7219_v9 = vcombine.high %v3929_v12, %v3929_v12  ;;  %v4127_v46 = vrot.slane %v7215_v52, 5  ;;  %v7277_v22 = vrot.slane %v7216_v61, 9  ;;  %v7220_v27 = vcombine.low %v3930_v59, %v3930_v59  ;;  %v3931_v30 = vld [vmem:[#allocation2 + $0x40] sm:$0x1e]  ;;  %8138 = vmatpush3.bf16.msra.mxu0 %v8726_v24 }
 0x2be   : > { %v4131_v32 = vrot.slane %v7217_v29, 5  ;;  %5975 = vmatmul.mubr.bf16.gmra.mrb[140].mxu1 %v7385_v10  ;;  %v7221_v4 = vcombine.high %v3930_v59, %v3930_v59  ;;  %v7278_v58 = vrot.slane %v7218_v57, 9  ;;  %v10064_v28 = vadd.f32 %v10984_v18, %v10983_v40  ;;  %v10987_v10 = vld [vmem:[#allocation31_spill] sm:$0xff]  ;;  %v10988_v59 = vld [vmem:[#allocation32_spill] sm:$0xff]  ;;  %v3933_v61 = vld [vmem:[#allocation2 + $0x60] sm:$0x1e] }
 0x2bf   : > { %v4135_v0 = vrot.slane %v7219_v9, 5  ;;  %v10068_v8 = vadd.f32 %v9973_v45, %v9848_v31  ;;  %v10072_v12 = vadd.f32 %v9995_v37, %v9848_v31  ;;  %8097 = vmatprep.mubr.bf16.mxu1 %v7434_v2  ;;  %v7279_v14 = vrot.slane %v7220_v27, 9  ;;  %v3932_v9 = vld [vmem:[#allocation2 + $0x48] sm:$0x1e]  ;;  %v10990_v40 = vld [vmem:[#allocation29_spill] sm:$0xff]  ;;  %v10991_v2 = vld [vmem:[#allocation30_spill] sm:$0xff] }
 0x2c0   : > { %v10076_v52 = vadd.f32 %v10988_v59, %v10987_v10  ;;  %v4128_v29 = vsel %vm9062_vm11, %v7276_v20, %v4127_v46  ;;  %v4132_v45 = vsel %vm9062_vm11, %v7277_v22, %v4131_v32  ;;  %v4139_v37 = vrot.slane %v7221_v4, 5  ;;  %v10992_v18 = vld [vmem:[#allocation34_spill] sm:$0xff]  ;;  %v10993_v10 = vld [vmem:[#allocation36_spill] sm:$0xff] }
 0x2c1   : > { %10985 = vst [vmem:[#allocation27_spill] sm:$0xff] %v10068_v8  ;;  %10986 = vst [vmem:[#allocation28_spill] sm:$0xff] %v10072_v12  ;;  %v4136_v57 = vsel %vm9062_vm11, %v7278_v58, %v4135_v0  ;;  %v10086_v27 = vadd.f32 %v10991_v2, %v10990_v40  ;;  %v10090_v59 = vadd.f32 %v10993_v10, %v10992_v18  ;;  %v3934_v12 = vld [vmem:[#allocation2 + $0x68] sm:$0x1e]  ;;  %v10094_v16 = vpop.f32.mrb[88].mxu0 }
 0x2c2   : > { %10989 = vst [vmem:[#allocation31_spill] sm:$0xff] %v10076_v52  ;;  %v7222_v52 = vcombine.low %v3931_v30, %v3931_v30  ;;  %v7223_v24 = vcombine.high %v3931_v30, %v3931_v30  ;;  %v4140_v20 = vsel %vm9062_vm11, %v7279_v14, %v4139_v37  ;;  %v7224_v46 = vcombine.low %v3932_v9, %v3932_v9  ;;  %v10096_v10 = vpop.f32.mrb[89].mxu0  ;;  %v10995_v37 = vld [vmem:[#allocation33_spill] sm:$0xff] }
 0x2c3   : > { %10994 = vst [vmem:[#allocation32_spill] sm:$0xff] %v10090_v59  ;;  %v7225_v22 = vcombine.high %v3932_v9, %v3932_v9  ;;  %v7226_v32 = vcombine.low %v3933_v61, %v3933_v61  ;;  %v7435_v8 = vcombine.low %v4128_v29, %v4132_v45  ;;  %v7436_v58 = vcombine.low %v4136_v57, %v4140_v20  ;;  %v10996_v9 = vld [vmem:[#allocation35_spill] sm:$0xff]  ;;  %v3935_v29 = vld [vmem:[#allocation2 + $0x70] sm:$0x1e]  ;;  %v10102_v45 = vpop.f32.mrb[90].mxu0 }
 0x2c4   : > { %v7280_v4 = vrot.slane %v7222_v52, 9  ;;  %v4143_v0 = vrot.slane %v7223_v24, 5  ;;  %v7281_v40 = vrot.slane %v7224_v46, 9  ;;  %v7227_v53 = vcombine.high %v3933_v61, %v3933_v61  ;;  %v3936_v20 = vld [vmem:[#allocation2 + $0x78] sm:$0x1e] }
 0x2c5   : > { %v4147_v2 = vrot.slane %v7225_v22, 5  ;;  %v7228_v18 = vcombine.low %v3934_v12, %v3934_v12  ;;  %v7229_v59 = vcombine.high %v3934_v12, %v3934_v12  ;;  %v7282_v14 = vrot.slane %v7226_v32, 9  ;;  %v10110_v46 = vpop.f32.mrb[84].mxu1  ;;  %v10112_v12 = vpop.f32.mrb[91].mxu0  ;;  %v11001_v32 = vld [vmem:[#allocation37_spill] sm:$0xff] }
 0x2c6   : > { %v4144_v30 = vsel %vm9062_vm11, %v7280_v4, %v4143_v0  ;;  %v7611_v13 = vadd.f32 %v10996_v9, %v10995_v37  ;;  %8098 = vmatmul.mubr.bf16.vlgmr.msra.gmra.mrb[144].mxu1 %v7435_v8  ;;  %v4151_v57 = vrot.slane %v7227_v53, 5  ;;  %v10108_v24 = vadd.f32 %v9694_v15, %v9690_v3  ;;  %10998 = vst [vmem:[#allocation30_spill] sm:$0xff] %v10112_v12  ;;  %v11002_v4 = vld [vmem:[#allocation38_spill] sm:$0xff]  ;;  %v10126_v15 = vpop.f32.mrb[85].mxu1 }
 0x2c7   : > { %v4148_v52 = vsel %vm9062_vm11, %v7281_v40, %v4147_v2  ;;  %v7283_v61 = vrot.slane %v7228_v18, 9  ;;  %v10116_v22 = vadd.f32 %v10019_v1, %v9848_v31  ;;  %v10120_v8 = vadd.f32 %v10031_v5, %v9848_v31  ;;  %8101 = vmatprep.mubr.bf16.mxu1 %v7436_v58  ;;  %v3937_v3 = vld [vmem:[#allocation2 + $0x80] sm:$0x1e]  ;;  %v3938_v5 = vld [vmem:[#allocation2 + $0x88] sm:$0x1e]  ;;  %v10134_v37 = vpop.f32.mrb[86].mxu1 }
 0x2c8   : > { %10997 = vst [vmem:[#allocation29_spill] sm:$0xff] %v10108_v24  ;;  %v4155_v53 = vrot.slane %v7229_v59, 5  ;;  %v10124_v0 = vadd.f32 %v11002_v4, %v11001_v32  ;;  %v4152_v40 = vsel %vm9062_vm11, %v7282_v14, %v4151_v57  ;;  %v10132_v1 = vadd.f32 %v9708_v49, %v9698_v60  ;;  %v10138_v4 = vpop.f32.mrb[87].mxu1 }
 0x2c9   : > { %10999 = vst [vmem:[#allocation34_spill] sm:$0xff] %v10116_v22  ;;  %11000 = vst [vmem:[#allocation36_spill] sm:$0xff] %v10120_v8  ;;  %v7230_v2 = vcombine.low %v3935_v29, %v3935_v29  ;;  %v7231_v18 = vcombine.high %v3935_v29, %v3935_v29  ;;  %v7437_v59 = vcombine.low %v4144_v30, %v4148_v52 }
 0x2ca   : > { %11003 = vst [vmem:[#allocation33_spill] sm:$0xff] %v10132_v1  ;;  %v4156_v58 = vsel %vm9062_vm11, %v7283_v61, %v4155_v53  ;;  %v7232_v9 = vcombine.low %v3936_v20, %v3936_v20  ;;  %v7233_v32 = vcombine.high %v3936_v20, %v3936_v20  ;;  %v7234_v57 = vcombine.low %v3937_v3, %v3937_v3  ;;  %v3939_v61 = vld [vmem:[#allocation2 + $0x90] sm:$0x1e] }
 0x2cb   : > { %v7438_v24 = vcombine.low %v4152_v40, %v4156_v58  ;;  %v7284_v8 = vrot.slane %v7230_v2, 9  ;;  %v4159_v14 = vrot.slane %v7231_v18, 5  ;;  %v7235_v49 = vcombine.high %v3937_v3, %v3937_v3  ;;  %v11004_v2 = vld [vmem:[#allocation43_spill] sm:$0xff]  ;;  %v11005_v18 = vld [vmem:[#allocation44_spill] sm:$0xff]  ;;  %v3940_v3 = vld [vmem:[#allocation2 + $0x98] sm:$0x1e] }
 0x2cc   : > { %v7285_v22 = vrot.slane %v7232_v9, 9  ;;  %v4163_v60 = vrot.slane %v7233_v32, 5  ;;  %v7236_v1 = vcombine.low %v3938_v5, %v3938_v5  ;;  %v7237_v12 = vcombine.high %v3938_v5, %v3938_v5  ;;  %v11010_v5 = vld [vmem:[#allocation40_spill] sm:$0xff] }
 0x2cd   : > { %v4160_v29 = vsel %vm9062_vm11, %v7284_v8, %v4159_v14  ;;  %v7286_v30 = vrot.slane %v7234_v57, 9  ;;  %v7617_v52 = vadd.f32 %v9684_v7, %v9678_v33  ;;  %v4167_v53 = vrot.slane %v7235_v49, 5  ;;  %v11009_v7 = vld [vmem:[#allocation39_spill] sm:$0xff]  ;;  %v3941_v32 = vld [vmem:[#allocation2 + $0xb0] sm:$0x1e]  ;;  %v11012_v14 = vld [vmem:[#allocation46_spill] sm:$0xff] }
 0x2ce   : > { %v4164_v20 = vsel %vm9062_vm11, %v7285_v22, %v4163_v60  ;;  %v7287_v40 = vrot.slane %v7236_v1, 9  ;;  %v10148_v58 = vadd.f32 %v11005_v18, %v11004_v2  ;;  %v10152_v9 = vadd.f32 %v10064_v28, %v9848_v31  ;;  %8102 = vmatmul.mubr.bf16.gmra.mrb[148].mxu1 %v7437_v59  ;;  %v3942_v49 = vld [vmem:[#allocation2 + $0xb8] sm:$0x1e] }
 0x2cf   : > { %v10156_v8 = vadd.f32 %v10086_v27, %v9848_v31  ;;  %v4171_v33 = vrot.slane %v7237_v12, 5  ;;  %v7620_v22 = vadd.f32 %v11010_v5, %v11009_v7  ;;  %8105 = vmatprep.mubr.bf16.mxu1 %v7438_v24  ;;  %v10161_v1 = vadd.f32 %v7611_v13, %v9848_v31 }
 0x2d0   : > { %11006 = vst [vmem:[#allocation35_spill] sm:$0xff] %v10148_v58  ;;  %11007 = vst [vmem:[#allocation37_spill] sm:$0xff] %v10152_v9  ;;  %v10165_v57 = vadd.f32 %v9724_v42, %v11012_v14  ;;  %v7238_v28 = vcombine.low %v3939_v61, %v3939_v61  ;;  %v7239_v60 = vcombine.high %v3939_v61, %v3939_v61  ;;  %v10171_v5 = vpop.f32.mrb[92].mxu0 }
 0x2d1   : > { %11008 = vst [vmem:[#allocation38_spill] sm:$0xff] %v10156_v8  ;;  %11011 = vst [vmem:[#allocation43_spill] sm:$0xff] %v10161_v1  ;;  %v7439_v2 = vcombine.low %v4160_v29, %v4164_v20  ;;  %v4168_v27 = vsel %vm9062_vm11, %v7286_v30, %v4167_v53  ;;  %v7240_v12 = vcombine.low %v3940_v3, %v3940_v3  ;;  %v10173_v61 = vpop.f32.mrb[93].mxu0  ;;  %v11014_v53 = vld [vmem:[#allocation45_spill] sm:$0xff] }
 0x2d2   : > { %11013 = vst [vmem:[#allocation44_spill] sm:$0xff] %v10165_v57  ;;  %v7241_v59 = vcombine.high %v3940_v3, %v3940_v3  ;;  %v4172_v18 = vsel %vm9062_vm11, %v7287_v40, %v4171_v33  ;;  %v7288_v24 = vrot.slane %v7238_v28, 9  ;;  %v4175_v7 = vrot.slane %v7239_v60, 5  ;;  %v11015_v3 = vld [vmem:[#allocation47_spill] sm:$0xff]  ;;  %v3943_v40 = vld [vmem:[#allocation2 + $0xc0] sm:$0x1e] }
 0x2d3   : > { %v7242_v13 = vcombine.low %v3941_v32, %v3941_v32  ;;  %v7289_v58 = vrot.slane %v7240_v12, 9  ;;  %v7243_v14 = vcombine.high %v3941_v32, %v3941_v32  ;;  %v7244_v57 = vcombine.low %v3942_v49, %v3942_v49  ;;  %v10179_v33 = vpop.f32.mrb[94].mxu0  ;;  %v10187_v8 = vpop.f32.mrb[88].mxu1 }
 0x2d4   : > { %v4179_v42 = vrot.slane %v7241_v59, 5  ;;  %v4176_v29 = vsel %vm9062_vm11, %v7288_v24, %v4175_v7  ;;  %v7245_v30 = vcombine.high %v3942_v49, %v3942_v49  ;;  %v7623_v1 = vadd.f32 %v11015_v3, %v11014_v53  ;;  %11016 = vst [vmem:[#allocation39_spill] sm:$0xff] %v10179_v33  ;;  %v3944_v59 = vld [vmem:[#allocation2 + $0xc8] sm:$0x1e]  ;;  %v10189_v49 = vpop.f32.mrb[95].mxu0  ;;  %v11020_v53 = vld [vmem:[#allocation48_spill] sm:$0xff] }
 0x2d5   : > { %v7290_v20 = vrot.slane %v7242_v13, 9  ;;  %v4183_v60 = vrot.slane %v7243_v14, 5  ;;  %v7291_v12 = vrot.slane %v7244_v57, 9  ;;  %v10185_v32 = vadd.f32 %v9758_v38, %v9754_v47  ;;  %11018 = vst [vmem:[#allocation46_spill] sm:$0xff] %v10189_v49  ;;  %v10197_v57 = vpop.f32.mrb[89].mxu1  ;;  %v11022_v38 = vld [vmem:[#allocation53_spill] sm:$0xff] }
 0x2d6   : > { %v4180_v28 = vsel %vm9062_vm11, %v7289_v58, %v4179_v42  ;;  %v10193_v24 = vadd.f32 %v10124_v0, %v9848_v31  ;;  %v7440_v7 = vcombine.low %v4168_v27, %v4172_v18  ;;  %v4187_v13 = vrot.slane %v7245_v30, 5  ;;  %v3945_v42 = vld [vmem:[#allocation2 + $0xd0] sm:$0x1e]  ;;  %8106 = vmatmul.mubr.bf16.gmra.mrb[152].mxu1 %v7439_v2  ;;  %v11023_v14 = vld [vmem:[#allocation55_spill] sm:$0xff]  ;;  %v3946_v0 = vld [vmem:[#allocation2 + $0xd8] sm:$0x1e] }
 0x2d7   : > { %11017 = vst [vmem:[#allocation40_spill] sm:$0xff] %v10185_v32  ;;  %v7626_v58 = vadd.f32 %v11020_v53, %v9726_v62  ;;  %v10200_v47 = vadd.f32 %v7617_v52, %v9848_v31  ;;  %v10204_v3 = vadd.f32 %v11023_v14, %v11022_v38  ;;  %v7246_v32 = vcombine.low %v3943_v40, %v3943_v40  ;;  %v3947_v33 = vld [vmem:[#allocation2 + $0xe0] sm:$0x1e] }
 0x2d8   : > { %11019 = vst [vmem:[#allocation45_spill] sm:$0xff] %v10193_v24  ;;  %v7247_v9 = vcombine.high %v3943_v40, %v3943_v40  ;;  %v10206_v24 = vpop.f32.mrb[90].mxu1  ;;  %8109 = vmatprep.mubr.bf16.mxu1 %v7440_v7  ;;  %v10209_v27 = vadd.f32 %v7620_v22, %v9848_v31  ;;  %v7441_v62 = vcombine.low %v4176_v29, %v4180_v28  ;;  %v11027_v29 = vld [vmem:[#allocation51_spill] sm:$0xff]  ;;  %v11028_v28 = vld [vmem:[#allocation52_spill] sm:$0xff] }
 0x2d9   : > { %11021 = vst [vmem:[#allocation47_spill] sm:$0xff] %v10200_v47  ;;  %11024 = vst [vmem:[#allocation48_spill] sm:$0xff] %v10204_v3  ;;  %v7248_v18 = vcombine.low %v3944_v59, %v3944_v59  ;;  %v7249_v30 = vcombine.high %v3944_v59, %v3944_v59  ;;  %v10211_v2 = vpop.f32.mrb[91].mxu1  ;;  %v4184_v52 = vsel %vm9062_vm11, %v7290_v20, %v4183_v60  ;;  %v7292_v38 = vrot.slane %v7246_v32, 9  ;;  %v8727_v32 = vld [vmem:[%s10840_s5 + $0x28] sm:$0xff]  }
 0x2da   : > { %11025 = vst [vmem:[#allocation53_spill] sm:$0xff] %v10209_v27  ;;  %11026 = vst [vmem:[#allocation55_spill] sm:$0xff] %v10211_v2  ;;  %v4188_v53 = vsel %vm9062_vm11, %v7291_v12, %v4187_v13  ;;  %v7250_v40 = vcombine.low %v3945_v42, %v3945_v42  ;;  %v4191_v14 = vrot.slane %v7247_v9, 5  ;;  %v7251_v47 = vcombine.high %v3945_v42, %v3945_v42  ;;  %v3948_v9 = vld [vmem:[#allocation2 + $0xe8] sm:$0x1e] }
 0x2db   : > { %v7293_v3 = vrot.slane %v7248_v18, 9  ;;  %v7252_v7 = vcombine.low %v3946_v0, %v3946_v0  ;;  %v4195_v49 = vrot.slane %v7249_v30, 5  ;;  %v7253_v22 = vcombine.high %v3946_v0, %v3946_v0  ;;  %v11032_v18 = vld [vmem:[#allocation54_spill] sm:$0xff]  ;;  %v11033_v30 = vld [vmem:[#allocation56_spill] sm:$0xff]  ;;  %8139 = vmatprep.subr.bf16.mxu0 %v8727_v32 }
 0x2dc   : > { %v10217_v27 = vrot.slane %v7250_v40, 9  ;;  %v7629_v59 = vadd.f32 %v11028_v28, %v11027_v29  ;;  %v10222_v2 = vadd.f32 %v7623_v1, %v9848_v31  ;;  %v4199_v20 = vrot.slane %v7251_v47, 5  ;;  %v3949_v40 = vld [vmem:[#allocation2 + $0x100] sm:$0x1e]  ;;  %v3950_v29 = vld [vmem:[#allocation2 + $0x108] sm:$0x1e]  ;;  %8140 = vmatpush3.bf16.msra.mxu0 %v8727_v32 }
 0x2dd   : > { %v7295_v60 = vrot.slane %v7252_v7, 9  ;;  %v10226_v12 = vadd.f32 %v9786_v23, %v9782_v6  ;;  %v7442_v13 = vcombine.low %v4184_v52, %v4188_v53  ;;  %v10232_v42 = vadd.f32 %v7626_v58, %v9848_v31 }
 0x2de   : > { %11029 = vst [vmem:[#allocation51_spill] sm:$0xff] %v10222_v2  ;;  %v4203_v0 = vrot.slane %v7253_v22, 5  ;;  %v7632_v1 = vadd.f32 %v11033_v30, %v11032_v18  ;;  %v4192_v47 = vsel %vm9062_vm11, %v7292_v38, %v4191_v14  ;;  %v10240_v6 = vadd.f32 %v9796_v56, %v9792_v35  ;;  %8110 = vmatmul.mubr.bf16.gmra.mrb[156].mxu1 %v7441_v62 }
 0x2df   : > { %11030 = vst [vmem:[#allocation52_spill] sm:$0xff] %v10226_v12  ;;  %11031 = vst [vmem:[#allocation85_spill] sm:$0xff] %v10232_v42  ;;  %v7254_v23 = vcombine.low %v3947_v33, %v3947_v33  ;;  %v7255_v7 = vcombine.high %v3947_v33, %v3947_v33  ;;  %v4196_v58 = vsel %vm9062_vm11, %v7293_v3, %v4195_v49  ;;  %8113 = vmatprep.mubr.bf16.mxu1 %v7442_v13  ;;  %v10249_v33 = vpop.f32.mrb[96].mxu0  ;;  %v3951_v13 = vld [vmem:[#allocation2 + $0x110] sm:$0x1e] }
 0x2e0   : > { %11034 = vst [vmem:[#allocation54_spill] sm:$0xff] %v10240_v6  ;;  %v4200_v52 = vsel %vm9062_vm11, %v10217_v27, %v4199_v20  ;;  %v7256_v53 = vcombine.low %v3948_v9, %v3948_v9  ;;  %v7257_v22 = vcombine.high %v3948_v9, %v3948_v9  ;;  %v4204_v38 = vsel %vm9062_vm11, %v7295_v60, %v4203_v0  ;;  %v10251_v3 = vpop.f32.mrb[97].mxu0 }
 0x2e1   : > { %v7296_v35 = vrot.slane %v7254_v23, 9  ;;  %v4207_v56 = vrot.slane %v7255_v7, 5  ;;  %v7258_v14 = vcombine.low %v3949_v40, %v3949_v40  ;;  %v7259_v18 = vcombine.high %v3949_v40, %v3949_v40  ;;  %v10257_v0 = vpop.f32.mrb[98].mxu0  ;;  %v11036_v40 = vld [vmem:[#allocation61_spill] sm:$0xff] }
 0x2e2   : > { %v7297_v62 = vrot.slane %v7256_v53, 9  ;;  %v4211_v28 = vrot.slane %v7257_v22, 5  ;;  %v7260_v49 = vcombine.low %v3950_v29, %v3950_v29  ;;  %v7261_v20 = vcombine.high %v3950_v29, %v3950_v29  ;;  %11035 = vst [vmem:[#allocation56_spill] sm:$0xff] %v10257_v0  ;;  %v3952_v53 = vld [vmem:[#allocation2 + $0x118] sm:$0x1e]  ;;  %v10265_v22 = vpop.f32.mrb[92].mxu1 }
 0x2e3   : > { %v4208_v27 = vsel %vm9062_vm11, %v7296_v35, %v4207_v56  ;;  %v7298_v9 = vrot.slane %v7258_v14, 9  ;;  %v7635_v60 = vadd.f32 %v9798_v39, %v9794_v17  ;;  %v4215_v30 = vrot.slane %v7259_v18, 5  ;;  %v10267_v29 = vpop.f32.mrb[99].mxu0  ;;  %v11040_v56 = vld [vmem:[#allocation57_spill] sm:$0xff]  ;;  %v11041_v14 = vld [vmem:[#allocation59_spill] sm:$0xff] }
 0x2e4   : > { %v4212_v32 = vsel %vm9062_vm11, %v7297_v62, %v4211_v28  ;;  %v7299_v23 = vrot.slane %v7260_v49, 9  ;;  %v10263_v7 = vadd.f32 %v11036_v40, %v9823_v36  ;;  %11038 = vst [vmem:[#allocation86_spill] sm:$0xff] %v10267_v29  ;;  %v7443_v35 = vcombine.low %v4192_v47, %v4196_v58  ;;  %v3953_v62 = vld [vmem:[#allocation2 + $0x120] sm:$0x1e]  ;;  %v10274_v28 = vpop.f32.mrb[93].mxu1  ;;  %v11044_v49 = vld [vmem:[#allocation63_spill] sm:$0xff] }
 0x2e5   : > { %v10270_v17 = vadd.f32 %v7629_v59, %v9848_v31  ;;  %v4219_v39 = vrot.slane %v7261_v20, 5  ;;  %v7638_v6 = vadd.f32 %v11041_v14, %v11040_v56  ;;  %v10277_v18 = vadd.f32 %v7632_v1, %v9848_v31  ;;  %v11043_v36 = vld [vmem:[#allocation62_spill] sm:$0xff]  ;;  %v3954_v47 = vld [vmem:[#allocation2 + $0x128] sm:$0x1e]  ;;  %v10283_v58 = vpop.f32.mrb[94].mxu1 }
 0x2e6   : > { %11037 = vst [vmem:[#allocation61_spill] sm:$0xff] %v10263_v7  ;;  %v10281_v40 = vadd.f32 %v11044_v49, %v11043_v36  ;;  %v7262_v7 = vcombine.low %v3951_v13, %v3951_v13  ;;  %v7263_v12 = vcombine.high %v3951_v13, %v3951_v13  ;;  %v7444_v59 = vcombine.low %v4200_v52, %v4204_v38  ;;  %v10285_v56 = vpop.f32.mrb[95].mxu1 }
 0x2e7   : > { %11039 = vst [vmem:[#allocation87_spill] sm:$0xff] %v10270_v17  ;;  %11042 = vst [vmem:[#allocation57_spill] sm:$0xff] %v10277_v18  ;;  %v7445_v20 = vcombine.low %v4208_v27, %v4212_v32  ;;  %v7264_v17 = vcombine.low %v3952_v53, %v3952_v53  ;;  %v7265_v42 = vcombine.high %v3952_v53, %v3952_v53  ;;  %8114 = vmatmul.mubr.bf16.gmra.mrb[160].mxu1 %v7443_v35  ;;  %v11046_v32 = vld [vmem:[#allocation64_spill] sm:$0xff]  ;;  %v11047_v53 = vld [vmem:[#allocation65_spill] sm:$0xff] }
 0x2e8   : > { %11045 = vst [vmem:[#allocation59_spill] sm:$0xff] %v10281_v40  ;;  %v4216_v1 = vsel %vm9062_vm11, %v7298_v9, %v4215_v30  ;;  %v4220_v14 = vsel %vm9062_vm11, %v7299_v23, %v4219_v39  ;;  %v7300_v36 = vrot.slane %v7262_v7, 9  ;;  %v7266_v49 = vcombine.low %v3953_v62, %v3953_v62  ;;  %8117 = vmatprep.mubr.bf16.mxu1 %v7444_v59  ;;  %v3955_v35 = vld [vmem:[#allocation2 + $0x130] sm:$0x1e] }
 0x2e9   : > { %v4223_v13 = vrot.slane %v7263_v12, 5  ;;  %v7301_v40 = vrot.slane %v7264_v17, 9  ;;  %v7267_v18 = vcombine.high %v3953_v62, %v3953_v62  ;;  %v7268_v2 = vcombine.low %v3954_v47, %v3954_v47  ;;  %v3956_v12 = vld [vmem:[#allocation2 + $0x138] sm:$0x1e] }
 0x2ea   : > { %v4227_v52 = vrot.slane %v7265_v42, 5  ;;  %v7269_v38 = vcombine.high %v3954_v47, %v3954_v47  ;;  %v7302_v27 = vrot.slane %v7266_v49, 9  ;;  %v7641_v29 = vadd.f32 %v11047_v53, %v11046_v32  ;;  %v11050_v49 = vld [vmem:[#allocation67_spill] sm:$0xff]  ;;  %v10330_v32 = vld [vmem:[%s10839_s4] ss:$0 sm:$0xff] }
 0x2eb   : > { %v10294_v0 = vadd.f32 %v7635_v60, %v9848_v31  ;;  %v4231_v9 = vrot.slane %v7267_v18, 5  ;;  %v7303_v30 = vrot.slane %v7268_v2, 9  ;;  %v10298_v23 = vadd.f32 %v9858_v19, %v9854_v43  ;;  %v11053_v53 = vld [vmem:[#allocation75_spill] sm:$0xff] }
 0x2ec   : > { %v7446_v7 = vcombine.low %v4216_v1, %v4220_v14  ;;  %v10301_v17 = vadd.f32 %v7638_v6, %v9848_v31  ;;  %v4235_v42 = vrot.slane %v7269_v38, 5  ;;  %v7644_v39 = vadd.f32 %v9841_v48, %v9839_v51  ;;  %v11048_v14 = vld [vmem:[#allocation72_spill] sm:$0xff] }
 0x2ed   : > { %v4224_v62 = vsel %vm9062_vm11, %v7300_v36, %v4223_v13  ;;  %v10309_v60 = vadd.f32 %v9868_v41, %v9860_v25  ;;  %v7270_v2 = vcombine.low %v3955_v35, %v3955_v35  ;;  %v7271_v18 = vcombine.high %v3955_v35, %v3955_v35  ;;  %v10319_v25 = vpop.f32.mrb[100].mxu0  ;;  %v11051_v13 = vld [vmem:[#allocation71_spill] sm:$0xff] }
 0x2ee   : > { %v4228_v43 = vsel %vm9062_vm11, %v7301_v40, %v4227_v52  ;;  %v4232_v31 = vsel %vm9062_vm11, %v7302_v27, %v4231_v9  ;;  %v7272_v19 = vcombine.low %v3956_v12, %v3956_v12  ;;  %v7273_v6 = vcombine.high %v3956_v12, %v3956_v12  ;;  %v11049_v40 = vld [vmem:[#allocation73_spill] sm:$0xff]  ;;  %v7934_v38 = vpop.f32.mrb[101].mxu0 }
 0x2ef   : > { %v4236_v48 = vsel %vm9062_vm11, %v7303_v30, %v4235_v42  ;;  %v7304_v51 = vrot.slane %v7270_v2, 9  ;;  %v4239_v47 = vrot.slane %v7271_v18, 5  ;;  %v7647_v59 = vadd.f32 %v9870_v34, %v9862_v55  ;;  %8118 = vmatmul.mubr.bf16.gmra.mrb[164].mxu1 %v7445_v20  ;;  %v11052_v20 = vld [vmem:[#allocation74_spill] sm:$0xff]  ;;  %v7936_v9 = vpop.f32.mrb[102].mxu0 }
 0x2f0   : > { %v7305_v41 = vrot.slane %v7272_v19, 9  ;;  %v4243_v1 = vrot.slane %v7273_v6, 5  ;;  %v10323_v36 = vadd.f32 %v11049_v40, %v11048_v14  ;;  %v7650_v52 = vadd.f32 %v11051_v13, %v11050_v49  ;;  %8121 = vmatprep.mubr.bf16.mxu1 %v7446_v7  ;;  %v11054_v7 = vld [vmem:[#allocation78_spill] sm:$0xff]  ;;  %v7937_v18 = vpop.f32.mrb[103].mxu0  ;;  %v11062_v6 = vld [vmem:[#allocation9_spill] sm:$0xff] }
 0x2f1   : > { %v7447_v27 = vcombine.low %v4224_v62, %v4228_v43  ;;  %v10333_v55 = vadd.f32 %v10330_v32, %v7641_v29  ;;  %v10337_v34 = vadd.f32 %v9906_v11, %v9904_v44  ;;  %v10341_v35 = vadd.f32 %v11053_v53, %v11052_v20  ;;  %v11056_v62 = vld [vmem:[#allocation76_spill] sm:$0xff]  ;;  %v11057_v29 = vld [vmem:[#allocation77_spill] sm:$0xff]  ;;  %v11058_v43 = vld [vmem:[#allocation79_spill] sm:$0xff] }
 0x2f2   : > { %v7448_v30 = vcombine.low %v4232_v31, %v4236_v48  ;;  %v10344_v12 = vadd.f32 %v10330_v32, %v7644_v39  ;;  %v10348_v42 = vadd.f32 %v11054_v7, %v9927_v54  ;;  %v10352_v2 = vadd.f32 %v11057_v29, %v11056_v62  ;;  %v11059_v31 = vld [vmem:[#allocation7_spill] sm:$0xff]  ;;  %v11061_v39 = vld [vmem:[#allocation80_spill] sm:$0xff]  ;;  %v7815_v54 = vpop.f32.mrb[96].mxu1  ;;  %v11069_v53 = vld [vmem:[#allocation41_spill] sm:$0xff] }
 0x2f3   : > { %v4240_v44 = vsel %vm9062_vm11, %v7304_v51, %v4239_v47  ;;  %v4244_v11 = vsel %vm9062_vm11, %v7305_v41, %v4243_v1  ;;  %v10360_v19 = vadd.f32 %v11059_v31, %v11058_v43  ;;  %v10364_v48 = vadd.f32 %v11062_v6, %v11061_v39  ;;  %v11064_v51 = vld [vmem:[#allocation81_spill] sm:$0xff]  ;;  %v11065_v47 = vld [vmem:[#allocation83_spill] sm:$0xff]  ;;  %v11066_v41 = vld [vmem:[#allocation16_spill] sm:$0xff]  ;;  %v7816_v49 = vpop.f32.mrb[97].mxu1 }
 0x2f4   : > { %11055 = vst [vmem:[#allocation62_spill] sm:$0xff] %v10348_v42  ;;  %v10367_v14 = vadd.f32 %v10330_v32, %v7647_v59  ;;  %v10371_v40 = vadd.f32 %v9981_v50, %v9975_v26  ;;  %v10375_v63 = vadd.f32 %v11065_v47, %v11064_v51  ;;  %v10379_v1 = vadd.f32 %v11066_v41, %v9987_v21  ;;  %v11068_v20 = vld [vmem:[#allocation68_spill] sm:$0xff]  ;;  %v11070_v7 = vld [vmem:[#allocation23_spill] sm:$0xff]  ;;  %v11071_v62 = vld [vmem:[#allocation22_spill] sm:$0xff]  ;;  %v7818_v31 = vpop.f32.mrb[98].mxu1 }
 0x2f5   : > { %11060 = vst [vmem:[#allocation63_spill] sm:$0xff] %v10360_v19  ;;  %v10382_v13 = vadd.f32 %v10330_v32, %v7650_v52  ;;  %v5696_v59 = vadd.f32 %v11069_v53, %v11068_v20  ;;  %v7793_v29 = vadd.f32 %v11071_v62, %v11070_v7  ;;  %v11072_v26 = vld [vmem:[#allocation14_spill] sm:$0xff]  ;;  %v11073_v50 = vld [vmem:[#allocation17_spill] sm:$0xff]  ;;  %v7449_v39 = vcombine.low %v4240_v44, %v4244_v11  ;;  %v11077_v41 = vld [vmem:[#allocation84_spill] sm:$0xff]  ;;  %v7819_v20 = vpop.f32.mrb[99].mxu1 }
 0x2f6   : > { %11063 = vst [vmem:[#allocation64_spill] sm:$0xff] %v10371_v40  ;;  %11067 = vst [vmem:[#allocation65_spill] sm:$0xff] %v10379_v1  ;;  %v10390_v43 = vadd.f32 %v11073_v50, %v11072_v26  ;;  %v11074_v6 = vld [vmem:[#allocation69_spill] sm:$0xff]  ;;  %v11075_v51 = vld [vmem:[#allocation42_spill] sm:$0xff]  ;;  %v7799_v26 = vadd.f32 %v10126_v15, %v10110_v46  ;;  %v10408_v44 = vadd.f32 %v10096_v10, %v10094_v16 }
 0x2f7   : > { %v5699_v21 = vadd.f32 %v11075_v51, %v11074_v6  ;;  %v11076_v47 = vld [vmem:[#allocation26_spill] sm:$0xff]  ;;  %v11079_v40 = vld [vmem:[#allocation19_spill] sm:$0xff]  ;;  %v10400_v53 = vadd.f32 %v7793_v29, %v5696_v59  ;;  %v11081_v62 = vld [vmem:[#allocation49_spill] sm:$0xff]  ;;  %8122 = vmatmul.mubr.bf16.gmra.mrb[168].mxu1 %v7447_v27  ;;  %v7802_v59 = vadd.f32 %v10138_v4, %v10134_v37  ;;  %v7805_v10 = vadd.f32 %v10197_v57, %v10187_v8 }
 0x2f8   : > { %v7796_v1 = vadd.f32 %v11077_v41, %v11076_v47  ;;  %v11078_v52 = vld [vmem:[#allocation18_spill] sm:$0xff]  ;;  %8125 = vmatprep.mubr.bf16.mxu1 %v7448_v30  ;;  %v11085_v46 = vld [vmem:[#allocation12_spill] sm:$0xff]  ;;  %v10428_v27 = vadd.f32 %v10173_v61, %v10171_v5  ;;  %v11087_v37 = vld [vmem:[#allocation13_spill] sm:$0xff]  ;;  %v7811_v5 = vadd.f32 %v10274_v28, %v10265_v22  ;;  %v10448_v61 = vadd.f32 %v10251_v3, %v10249_v33 }
 0x2f9   : > { %v10398_v19 = vadd.f32 %v11079_v40, %v11078_v52  ;;  %v11080_v7 = vld [vmem:[#allocation10_spill] sm:$0xff]  ;;  %v11088_v4 = vld [vmem:[#allocation60_spill] sm:$0xff]  ;;  %v10465_v33 = vadd.f32 %v7934_v38, %v10319_v25 }
 0x2fa   : > { %v5704_v42 = vadd.f32 %v11081_v62, %v11080_v7  ;;  %v10410_v11 = vadd.f32 %v7796_v1, %v5699_v21  ;;  %v11082_v50 = vld [vmem:[#allocation82_spill] sm:$0xff]  ;;  %v5715_v21 = vadd.f32 %v11088_v4, %v11087_v37  ;;  %v11092_v62 = vld [vmem:[#allocation24_spill] sm:$0xff] }
 0x2fb   : > { %v11083_v6 = vld [vmem:[#allocation50_spill] sm:$0xff]  ;;  %v11099_v22 = vld [vmem:[#allocation8_spill] sm:$0xff] }
 0x2fc   : > { %v5707_v40 = vadd.f32 %v11083_v6, %v11082_v50  ;;  %v11084_v29 = vld [vmem:[#allocation30_spill] sm:$0xff]  ;;  %v10420_v47 = vadd.f32 %v7799_v26, %v5704_v42  ;;  %v11090_v42 = vld [vmem:[#allocation39_spill] sm:$0xff]  ;;  %v11094_v50 = vld [vmem:[#allocation25_spill] sm:$0xff] }
 0x2fd   : > { %v10418_v51 = vadd.f32 %v11084_v29, %v10102_v45  ;;  %v11086_v15 = vld [vmem:[#allocation58_spill] sm:$0xff]  ;;  %v11089_v45 = vld [vmem:[#allocation55_spill] sm:$0xff]  ;;  %v8728_v3 = vld [vmem:[%s10840_s5 + $0x30] sm:$0xff]  }
 0x2fe   : > { %v5712_v16 = vadd.f32 %v11086_v15, %v11085_v46  ;;  %v10430_v1 = vadd.f32 %v7802_v59, %v5707_v40  ;;  %v7808_v30 = vadd.f32 %v11089_v45, %v10206_v24  ;;  %v11091_v41 = vld [vmem:[#allocation46_spill] sm:$0xff]  ;;  %v7814_v40 = vadd.f32 %v10285_v56, %v10283_v58  ;;  %v11096_v59 = vld [vmem:[#allocation56_spill] sm:$0xff]  ;;  %8141 = vmatprep.subr.bf16.mxu0 %v8728_v3 }
 0x2ff   : > { %v10438_v52 = vadd.f32 %v11091_v41, %v11090_v42  ;;  %v11093_v8 = vld [vmem:[#allocation66_spill] sm:$0xff]  ;;  %v11100_v58 = vld [vmem:[#allocation28_spill] sm:$0xff]  ;;  %v10474_v45 = vadd.f32 %v7937_v18, %v7936_v9  ;;  %8126 = vmatmul.mubr.bf16.gmra.mrb[172].mxu1 %v7449_v39  ;;  %v11115_v39 = vld [vmem:[#allocation29_spill] sm:$0xff]  ;;  %8142 = vmatpush3.bf16.msra.mxu0 %v8728_v3 }
 0x300   : > { %v10440_v7 = vadd.f32 %v7805_v10, %v5712_v16  ;;  %v5720_v57 = vadd.f32 %v11093_v8, %v11092_v62  ;;  %v10450_v26 = vadd.f32 %v7808_v30, %v5715_v21  ;;  %v11095_v24 = vld [vmem:[#allocation70_spill] sm:$0xff]  ;;  %v11098_v16 = vld [vmem:[#allocation27_spill] sm:$0xff]  ;;  %v7817_v10 = vadd.f32 %v7816_v49, %v7815_v54  ;;  %v7939_v30 = vpop.f32.mrb[104].mxu0  ;;  %v11104_v38 = vld [vmem:[#allocation36_spill] sm:$0xff] }
 0x301   : > { %v5723_v6 = vadd.f32 %v11095_v24, %v11094_v50  ;;  %v11097_v29 = vld [vmem:[#allocation86_spill] sm:$0xff]  ;;  %v5728_v28 = vadd.f32 %v11099_v22, %v11098_v16  ;;  %v7820_v21 = vadd.f32 %v7819_v20, %v7818_v31  ;;  %v11103_v54 = vld [vmem:[#allocation11_spill] sm:$0xff]  ;;  %v7940_v25 = vpop.f32.mrb[105].mxu0  ;;  %v11109_v20 = vld [vmem:[#allocation21_spill] sm:$0xff]  ;;  %v7821_v16 = vpop.f32.mrb[100].mxu1 }
 0x302   : > { %v10458_v46 = vadd.f32 %v11097_v29, %v11096_v59  ;;  %v10460_v15 = vadd.f32 %v7811_v5, %v5720_v57  ;;  %v11101_v56 = vld [vmem:[#allocation6_spill] sm:$0xff]  ;;  %v11105_v62 = vld [vmem:[#allocation15_spill] sm:$0xff]  ;;  %v11106_v57 = vld [vmem:[#allocation37_spill] sm:$0xff]  ;;  %v10486_v31 = vadd.f32 %v7940_v25, %v7939_v30  ;;  %v7942_v9 = vpop.f32.mrb[106].mxu0 }
 0x303   : > { %v10470_v37 = vadd.f32 %v7814_v40, %v5723_v6  ;;  %v5731_v4 = vadd.f32 %v11101_v56, %v11100_v58  ;;  %v10476_v42 = vadd.f32 %v7817_v10, %v5728_v28  ;;  %v11102_v41 = vld [vmem:[#allocation34_spill] sm:$0xff]  ;;  %v5739_v8 = vadd.f32 %v11105_v62, %v11104_v38  ;;  %v11107_v5 = vld [vmem:[#allocation20_spill] sm:$0xff]  ;;  %v11110_v40 = vld [vmem:[#allocation43_spill] sm:$0xff]  ;;  %v7943_v22 = vpop.f32.mrb[107].mxu0  ;;  %v7822_v62 = vpop.f32.mrb[101].mxu1 }
 0x304   : > { %v5736_v49 = vadd.f32 %v11103_v54, %v11102_v41  ;;  %v5744_v50 = vadd.f32 %v11107_v5, %v11106_v57  ;;  %v11108_v18 = vld [vmem:[#allocation38_spill] sm:$0xff]  ;;  %v11111_v59 = vld [vmem:[#allocation31_spill] sm:$0xff]  ;;  %v11112_v28 = vld [vmem:[#allocation45_spill] sm:$0xff]  ;;  %v10510_v57 = vadd.f32 %v7943_v22, %v7942_v9 }
 0x305   : > { %v10484_v24 = vadd.f32 %v7820_v21, %v5731_v4  ;;  %v5747_v6 = vadd.f32 %v11109_v20, %v11108_v18  ;;  %v10492_v29 = vadd.f32 %v11111_v59, %v11110_v40  ;;  %v11113_v10 = vld [vmem:[#allocation32_spill] sm:$0xff]  ;;  %v11114_v56 = vld [vmem:[#allocation47_spill] sm:$0xff]  ;;  %v11116_v21 = vld [vmem:[#allocation53_spill] sm:$0xff] }
 0x306   : > { %v10496_v58 = vadd.f32 %v11113_v10, %v11112_v28  ;;  %v10500_v4 = vadd.f32 %v11115_v39, %v11114_v56  ;;  %v11117_v30 = vld [vmem:[#allocation33_spill] sm:$0xff]  ;;  %v11118_v54 = vld [vmem:[#allocation51_spill] sm:$0xff]  ;;  %v11121_v18 = vld [vmem:[#allocation44_spill] sm:$0xff] }
 0x307   : > { %v10504_v41 = vadd.f32 %v11117_v30, %v11116_v21  ;;  %v11119_v25 = vld [vmem:[#allocation35_spill] sm:$0xff]  ;;  %v11120_v5 = vld [vmem:[#allocation85_spill] sm:$0xff]  ;;  %v11123_v59 = vld [vmem:[#allocation40_spill] sm:$0xff]  ;;  %v7823_v21 = vadd.f32 %v7822_v62, %v7821_v16  ;;  %v7824_v30 = vpop.f32.mrb[102].mxu1 }
 0x308   : > { %v10508_v38 = vadd.f32 %v11119_v25, %v11118_v54  ;;  %v10514_v20 = vadd.f32 %v11121_v18, %v11120_v5  ;;  %v11122_v40 = vld [vmem:[#allocation87_spill] sm:$0xff]  ;;  %v11124_v10 = vld [vmem:[#allocation57_spill] sm:$0xff]  ;;  %v11125_v56 = vld [vmem:[#allocation48_spill] sm:$0xff]  ;;  %v5647_v18 = vadd.f32 %v10330_v32, %v10341_v35 }
 0x309   : > { %v10518_v28 = vadd.f32 %v11123_v59, %v11122_v40  ;;  %v10522_v39 = vadd.f32 %v11125_v56, %v11124_v10  ;;  %v11126_v54 = vld [vmem:[#allocation52_spill] sm:$0xff]  ;;  %v11127_v9 = vld [vmem:[#allocation54_spill] sm:$0xff]  ;;  %v11128_v25 = vld [vmem:[#allocation61_spill] sm:$0xff]  ;;  %v7825_v40 = vpop.f32.mrb[103].mxu1  ;;  %v5897_v62 = vadd.f32 %v7823_v21, %v5736_v49  ;;  %v5650_v56 = vadd.f32 %v10330_v32, %v10352_v2 }
 0x30a   : > { %v10526_v3 = vadd.f32 %v11126_v54, %v10294_v0  ;;  %v10530_v22 = vadd.f32 %v11127_v9, %v10301_v17  ;;  %v10534_v5 = vadd.f32 %v11128_v25, %v10333_v55  ;;  %v11129_v59 = vld [vmem:[#allocation59_spill] sm:$0xff]  ;;  %v10544_v0 = vadd.f32 %v10298_v23, %v10367_v14  ;;  %v7945_v54 = vpop.f32.mrb[108].mxu0 }
 0x30b   : > { %v10540_v16 = vadd.f32 %v11129_v59, %v10344_v12  ;;  %v10548_v17 = vadd.f32 %v10309_v60, %v10382_v13  ;;  %v7826_v10 = vadd.f32 %v7825_v40, %v7824_v30  ;;  %v10553_v35 = vadd.f32 %v10323_v36, %v5647_v18  ;;  %v7946_v9 = vpop.f32.mrb[109].mxu0 }
 0x30c   : > { %v10556_v12 = vadd.f32 %v10337_v34, %v5650_v56  ;;  %v7947_v23 = vadd.f32 %v7946_v9, %v7945_v54  ;;  %v7948_v14 = vpop.f32.mrb[110].mxu0  ;;  %v5655_v60 = vadd.f32 %v10330_v32, %v10364_v48  ;;  %v7827_v13 = vpop.f32.mrb[104].mxu1  ;;  %v5658_v36 = vadd.f32 %v10330_v32, %v10375_v63  ;;  %v11130_v34 = vld [vmem:[#allocation62_spill] sm:$0xff]  ;;  %v8729_v48 = vld [vmem:[%s10840_s5 + $0x38] sm:$0xff]   ;;  %v11131_v56 = vld [vmem:[#allocation63_spill] sm:$0xff] }
 0x30d   : > { %v5900_v55 = vadd.f32 %v7826_v10, %v5739_v8  ;;  %v7949_v49 = vpop.f32.mrb[111].mxu0  ;;  %v7828_v21 = vpop.f32.mrb[105].mxu1  ;;  %8143 = vmatprep.subr.bf16.mxu0 %v8729_v48  ;;  %v10573_v9 = vadd.f32 %v10390_v43, %v10420_v47 }
 0x30e   : > { %v7950_v8 = vadd.f32 %v7949_v49, %v7948_v14  ;;  %v7829_v30 = vadd.f32 %v7828_v21, %v7827_v13  ;;  %v7830_v25 = vpop.f32.mrb[106].mxu1  ;;  %v10563_v59 = vadd.f32 %v11130_v34, %v5655_v60  ;;  %v10569_v54 = vadd.f32 %v11131_v56, %v5658_v36  ;;  %8144 = vmatpush3.bf16.msra.mxu0 %v8729_v48  ;;  %v11132_v21 = vld [vmem:[#allocation64_spill] sm:$0xff]  ;;  %v11133_v34 = vld [vmem:[#allocation65_spill] sm:$0xff] }
 0x30f   : > { %v7831_v2 = vpop.f32.mrb[107].mxu1  ;;  %v10581_v36 = vadd.f32 %v10398_v19, %v10430_v1  ;;  %v10586_v48 = vadd.f32 %v11133_v34, %v10410_v11  ;;  %v10599_v19 = vadd.f32 %v10438_v52, %v10470_v37  ;;  %v10603_v11 = vadd.f32 %v10418_v51, %v10450_v26 }
 0x310   : > { %v5905_v18 = vadd.f32 %v7829_v30, %v5744_v50  ;;  %v7832_v40 = vadd.f32 %v7831_v2, %v7830_v25  ;;  %v10577_v30 = vadd.f32 %v11132_v21, %v10400_v53  ;;  %v10591_v53 = vadd.f32 %v10428_v27, %v10460_v15 }
 0x311   : > { %v10606_v27 = vadd.f32 %v10465_v33, %v5897_v62  ;;  %v10610_v52 = vadd.f32 %v10448_v61, %v10476_v42  ;;  %v10619_v33 = vadd.f32 %v10458_v46, %v10484_v24 }
 0x312   : > { %v5908_v10 = vadd.f32 %v7832_v40, %v5747_v6 }
 0x317   : > { %v7951_v14 = vpop.f32.mrb[112].mxu0 }
 0x318   : > { %v7952_v32 = vpop.f32.mrb[113].mxu0 }
 0x319   : > { %v7953_v63 = vadd.f32 %v7952_v32, %v7951_v14  ;;  %v7954_v50 = vpop.f32.mrb[114].mxu0  ;;  %v10595_v14 = vadd.f32 %v10408_v44, %v10440_v7 }
 0x31a   : > { %v7833_v60 = vpop.f32.mrb[108].mxu1  ;;  %v7955_v13 = vpop.f32.mrb[115].mxu0 }
 0x31b   : > { %v7834_v6 = vpop.f32.mrb[109].mxu1  ;;  %v7956_v49 = vadd.f32 %v7955_v13, %v7954_v50 }
 0x31c   : > { %v7835_v25 = vadd.f32 %v7834_v6, %v7833_v60  ;;  %v7836_v2 = vpop.f32.mrb[110].mxu1  ;;  %v10613_v6 = vadd.f32 %v10474_v45, %v5900_v55 }
 0x31d   : > { %v7837_v43 = vpop.f32.mrb[111].mxu1 }
 0x31e   : > { %v5913_v47 = vadd.f32 %v7835_v25, %v10492_v29  ;;  %v7838_v40 = vadd.f32 %v7837_v43, %v7836_v2  ;;  %v10624_v25 = vadd.f32 %v10486_v31, %v5905_v18 }
 0x320   : > { %v5916_v56 = vadd.f32 %v7838_v40, %v10496_v58  ;;  %v10621_v62 = vadd.f32 %v7947_v23, %v5913_v47  ;;  %v10629_v40 = vadd.f32 %v10510_v57, %v5908_v10 }
 0x322   : > { %v10626_v42 = vadd.f32 %v7950_v8, %v5916_v56 }
 0x325   : > { %v7957_v1 = vpop.f32.mrb[116].mxu0 }
 0x326   : > { %v7958_v29 = vpop.f32.mrb[117].mxu0 }
 0x327   : > { %v7959_v32 = vadd.f32 %v7958_v29, %v7957_v1  ;;  %v7960_v50 = vpop.f32.mrb[118].mxu0 }
 0x328   : > { %v7961_v58 = vpop.f32.mrb[119].mxu0 }
 0x329   : > { %v7839_v15 = vpop.f32.mrb[112].mxu1  ;;  %v7962_v60 = vadd.f32 %v7961_v58, %v7960_v50 }
 0x32a   : > { %v7840_v44 = vpop.f32.mrb[113].mxu1 }
 0x32b   : > { %v7841_v7 = vadd.f32 %v7840_v44, %v7839_v15  ;;  %v7842_v13 = vpop.f32.mrb[114].mxu1 }
 0x32c   : > { %v7843_v37 = vpop.f32.mrb[115].mxu1 }
 0x32d   : > { %v5921_v51 = vadd.f32 %v7841_v7, %v10500_v4  ;;  %v7844_v26 = vadd.f32 %v7843_v37, %v7842_v13 }
 0x32f   : > { %v5924_v21 = vadd.f32 %v7844_v26, %v10504_v41  ;;  %v10632_v18 = vadd.f32 %v7953_v63, %v5921_v51 }
 0x331   : > { %v10639_v29 = vadd.f32 %v7956_v49, %v5924_v21 }
 0x334   : > { %v7963_v61 = vpop.f32.mrb[120].mxu0 }
 0x335   : > { %v7964_v2 = vpop.f32.mrb[121].mxu0 }
 0x336   : > { %v7965_v45 = vadd.f32 %v7964_v2, %v7963_v61  ;;  %v7966_v55 = vpop.f32.mrb[122].mxu0 }
 0x337   : > { %v7845_v43 = vpop.f32.mrb[116].mxu1  ;;  %v7967_v4 = vpop.f32.mrb[123].mxu0 }
 0x338   : > { %v7846_v41 = vpop.f32.mrb[117].mxu1  ;;  %v7968_v34 = vadd.f32 %v7967_v4, %v7966_v55 }
 0x339   : > { %v7847_v46 = vadd.f32 %v7846_v41, %v7845_v43  ;;  %v7848_v24 = vpop.f32.mrb[118].mxu1 }
 0x33a   : > { %v7849_v23 = vpop.f32.mrb[119].mxu1 }
 0x33b   : > { %v5929_v47 = vadd.f32 %v7847_v46, %v10508_v38  ;;  %v7850_v31 = vadd.f32 %v7849_v23, %v7848_v24 }
 0x33d   : > { %v5932_v8 = vadd.f32 %v7850_v31, %v10514_v20  ;;  %v10635_v56 = vadd.f32 %v7959_v32, %v5929_v47 }
 0x33f   : > { %v10637_v1 = vadd.f32 %v7962_v60, %v5932_v8 }
 0x342   : > { %v7969_v57 = vpop.f32.mrb[124].mxu0 }
 0x343   : > { %v7970_v10 = vpop.f32.mrb[125].mxu0 }
 0x344   : > { %v7971_v50 = vadd.f32 %v7970_v10, %v7969_v57  ;;  %v7972_v58 = vpop.f32.mrb[126].mxu0 }
 0x345   : > { %v7973_v15 = vpop.f32.mrb[127].mxu0 }
 0x346   : > { %v7851_v44 = vpop.f32.mrb[120].mxu1  ;;  %v7974_v7 = vadd.f32 %v7973_v15, %v7972_v58 }
 0x347   : > { %v7852_v13 = vpop.f32.mrb[121].mxu1 }
 0x348   : > { %v7853_v38 = vadd.f32 %v7852_v13, %v7851_v44  ;;  %v7854_v37 = vpop.f32.mrb[122].mxu1 }
 0x349   : > { %v7855_v63 = vpop.f32.mrb[123].mxu1 }
 0x34a   : > { %v5937_v51 = vadd.f32 %v7853_v38, %v10518_v28  ;;  %v7856_v20 = vadd.f32 %v7855_v63, %v7854_v37 }
 0x34c   : > { %v5940_v32 = vadd.f32 %v7856_v20, %v10522_v39  ;;  %v10643_v60 = vadd.f32 %v7965_v45, %v5937_v51 }
 0x34e   : > { %v10645_v49 = vadd.f32 %v7968_v34, %v5940_v32 }
 0x351   : > { %v7975_v26 = vpop.f32.mrb[128].mxu0 }
 0x352   : > { %v7976_v21 = vpop.f32.mrb[129].mxu0 }
 0x353   : > { %v7977_v61 = vadd.f32 %v7976_v21, %v7975_v26  ;;  %v7978_v2 = vpop.f32.mrb[130].mxu0 }
 0x354   : > { %v7979_v55 = vpop.f32.mrb[131].mxu0 }
 0x355   : > { %v7980_v43 = vadd.f32 %v7979_v55, %v7978_v2 }
 0x356   : > { %v7857_v4 = vpop.f32.mrb[124].mxu1 }
 0x357   : > { %v7858_v41 = vpop.f32.mrb[125].mxu1 }
 0x358   : > { %v7859_v46 = vadd.f32 %v7858_v41, %v7857_v4  ;;  %v7860_v24 = vpop.f32.mrb[126].mxu1 }
 0x359   : > { %v7861_v23 = vpop.f32.mrb[127].mxu1 }
 0x35a   : > { %v5945_v28 = vadd.f32 %v7859_v46, %v10526_v3  ;;  %v7862_v47 = vadd.f32 %v7861_v23, %v7860_v24 }
 0x35c   : > { %v5948_v39 = vadd.f32 %v7862_v47, %v10530_v22  ;;  %v10649_v45 = vadd.f32 %v7971_v50, %v5945_v28 }
 0x35e   : > { %v10651_v34 = vadd.f32 %v7974_v7, %v5948_v39 }
 0x360   : > { %v7981_v31 = vpop.f32.mrb[132].mxu0 }
 0x361   : > { %v7982_v8 = vpop.f32.mrb[133].mxu0 }
 0x362   : > { %v7983_v57 = vadd.f32 %v7982_v8, %v7981_v31  ;;  %v7984_v10 = vpop.f32.mrb[134].mxu0 }
 0x363   : > { %v7985_v58 = vpop.f32.mrb[135].mxu0 }
 0x364   : > { %v7986_v15 = vadd.f32 %v7985_v58, %v7984_v10 }
 0x366   : > { %v7863_v44 = vpop.f32.mrb[128].mxu1 }
 0x367   : > { %v7864_v13 = vpop.f32.mrb[129].mxu1 }
 0x368   : > { %v7865_v38 = vadd.f32 %v7864_v13, %v7863_v44  ;;  %v7866_v37 = vpop.f32.mrb[130].mxu1 }
 0x369   : > { %v7867_v63 = vpop.f32.mrb[131].mxu1 }
 0x36a   : > { %v5953_v3 = vadd.f32 %v7865_v38, %v10534_v5  ;;  %v7868_v51 = vadd.f32 %v7867_v63, %v7866_v37 }
 0x36c   : > { %v5956_v22 = vadd.f32 %v7868_v51, %v10540_v16  ;;  %v10655_v50 = vadd.f32 %v7977_v61, %v5953_v3 }
 0x36e   : > { %v10657_v7 = vadd.f32 %v7980_v43, %v5956_v22 }
 0x370   : > { %v7987_v20 = vpop.f32.mrb[136].mxu0 }
 0x371   : > { %v7988_v32 = vpop.f32.mrb[137].mxu0 }
 0x372   : > { %v7989_v26 = vadd.f32 %v7988_v32, %v7987_v20  ;;  %v7990_v21 = vpop.f32.mrb[138].mxu0 }
 0x373   : > { %v7991_v2 = vpop.f32.mrb[139].mxu0 }
 0x374   : > { %v7992_v55 = vadd.f32 %v7991_v2, %v7990_v21 }
 0x376   : > { %v7869_v4 = vpop.f32.mrb[132].mxu1 }
 0x377   : > { %v7870_v41 = vpop.f32.mrb[133].mxu1 }
 0x378   : > { %v7871_v46 = vadd.f32 %v7870_v41, %v7869_v4  ;;  %v7872_v24 = vpop.f32.mrb[134].mxu1 }
 0x379   : > { %v7873_v23 = vpop.f32.mrb[135].mxu1 }
 0x37a   : > { %v5961_v5 = vadd.f32 %v7871_v46, %v10544_v0  ;;  %v7874_v28 = vadd.f32 %v7873_v23, %v7872_v24 }
 0x37c   : > { %v5964_v16 = vadd.f32 %v7874_v28, %v10548_v17  ;;  %v10661_v61 = vadd.f32 %v7983_v57, %v5961_v5 }
 0x37e   : > { %v10663_v43 = vadd.f32 %v7986_v15, %v5964_v16 }
 0x37f   : > { %v7993_v47 = vpop.f32.mrb[140].mxu0 }
 0x380   : > { %v7994_v39 = vpop.f32.mrb[141].mxu0 }
 0x381   : > { %v7995_v31 = vadd.f32 %v7994_v39, %v7993_v47  ;;  %v7996_v8 = vpop.f32.mrb[142].mxu0 }
 0x382   : > { %v7997_v10 = vpop.f32.mrb[143].mxu0 }
 0x383   : > { %v7998_v58 = vadd.f32 %v7997_v10, %v7996_v8 }
 0x386   : > { %v7875_v44 = vpop.f32.mrb[136].mxu1 }
 0x387   : > { %v7876_v13 = vpop.f32.mrb[137].mxu1 }
 0x388   : > { %v7877_v38 = vadd.f32 %v7876_v13, %v7875_v44  ;;  %v7878_v37 = vpop.f32.mrb[138].mxu1 }
 0x389   : > { %v7879_v63 = vpop.f32.mrb[139].mxu1 }
 0x38a   : > { %v5969_v0 = vadd.f32 %v7877_v38, %v10553_v35  ;;  %v7880_v3 = vadd.f32 %v7879_v63, %v7878_v37 }
 0x38c   : > { %v5972_v17 = vadd.f32 %v7880_v3, %v10556_v12  ;;  %v10667_v57 = vadd.f32 %v7989_v26, %v5969_v0 }
 0x38e   : > { %v10669_v15 = vadd.f32 %v7992_v55, %v5972_v17 }
 0x391   : > { %v7881_v51 = vpop.f32.mrb[140].mxu1 }
 0x392   : > { %v7882_v22 = vpop.f32.mrb[141].mxu1 }
 0x393   : > { %v7883_v20 = vadd.f32 %v7882_v22, %v7881_v51  ;;  %v7884_v32 = vpop.f32.mrb[142].mxu1 }
 0x394   : > { %v7885_v21 = vpop.f32.mrb[143].mxu1 }
 0x395   : > { %v5977_v2 = vadd.f32 %v7883_v20, %v10563_v59  ;;  %v7886_v4 = vadd.f32 %v7885_v21, %v7884_v32 }
 0x397   : > { %v5980_v41 = vadd.f32 %v7886_v4, %v10569_v54  ;;  %v10673_v46 = vadd.f32 %v7995_v31, %v5977_v2 }
 0x399   : > { %v8099_v35 = vpop.f32.mrb[144].mxu1  ;;  %v10675_v24 = vadd.f32 %v7998_v58, %v5980_v41 }
 0x39a   : > { %v6187_v12 = vadd.f32 %v8099_v35, %v10573_v9  ;;  %v6178_v26 = vpop.f32.mrb[145].mxu1 }
 0x39b   : > { %v6179_v55 = vadd.f32 %v6178_v26, %v10577_v30  ;;  %v8100_v23 = vpop.f32.mrb[146].mxu1 }
 0x39c   : > { %v6190_v5 = vadd.f32 %v8100_v23, %v10581_v36  ;;  %v6181_v28 = vpop.f32.mrb[147].mxu1  ;;  %v6307_v59 = vmax.f32 %v6187_v12, 0.0 }
 0x39d   : > { %v6182_v16 = vadd.f32 %v6181_v28, %v10586_v48  ;;  %v6305_v39 = vmax.f32 %v6179_v55, 0.0 }
 0x39e   : > { %v6308_v47 = vmax.f32 %v6190_v5, 0.0 }
 0x39f   : > { %v6306_v54 = vmax.f32 %v6182_v16, 0.0 }
 0x3a0   : > { %v6338_v31 = vpack.c.bf16 %v6308_v47, %v6307_v59 }
 0x3a1   : > { %v6337_v8 = vpack.c.bf16 %v6306_v54, %v6305_v39  ;;  %v8103_v10 = vpop.f32.mrb[148].mxu1 }
 0x3a2   : > { %v6203_v58 = vadd.f32 %v8103_v10, %v10591_v53  ;;  %v6194_v44 = vpop.f32.mrb[149].mxu1 }
 0x3a3   : > { %v6195_v9 = vadd.f32 %v6194_v44, %v10595_v14  ;;  %v8104_v13 = vpop.f32.mrb[150].mxu1  ;;  %8145 = vmatprep.mubr.bf16.mxu0 %v6337_v8 }
 0x3a4   : > { %v6206_v30 = vadd.f32 %v8104_v13, %v10599_v19  ;;  %v6197_v36 = vpop.f32.mrb[151].mxu1  ;;  %8146 = vmatmul.mubr.bf16.vlgmr.msra.gmra.mrb[144].mxu0 %v6338_v31  ;;  %v6311_v38 = vmax.f32 %v6203_v58, 0.0 }
 0x3a5   : > { %v6198_v48 = vadd.f32 %v6197_v36, %v10603_v11  ;;  %v6309_v63 = vmax.f32 %v6195_v9, 0.0 }
 0x3a6   : > { %v6312_v37 = vmax.f32 %v6206_v30, 0.0 }
 0x3a7   : > { %v6310_v0 = vmax.f32 %v6198_v48, 0.0 }
 0x3a8   : > { %v6340_v3 = vpack.c.bf16 %v6312_v37, %v6311_v38 }
 0x3a9   : > { %v6339_v17 = vpack.c.bf16 %v6310_v0, %v6309_v63  ;;  %v8107_v51 = vpop.f32.mrb[152].mxu1 }
 0x3aa   : > { %v6219_v53 = vadd.f32 %v8107_v51, %v10606_v27  ;;  %v6210_v22 = vpop.f32.mrb[153].mxu1 }
 0x3ab   : > { %v6211_v14 = vadd.f32 %v6210_v22, %v10610_v52  ;;  %v8108_v20 = vpop.f32.mrb[154].mxu1  ;;  %8149 = vmatprep.mubr.bf16.mxu0 %v6339_v17 }
 0x3ac   : > { %v6222_v19 = vadd.f32 %v8108_v20, %v10613_v6  ;;  %v6213_v32 = vpop.f32.mrb[155].mxu1  ;;  %8150 = vmatmul.mubr.bf16.gmra.mrb[148].mxu0 %v6340_v3  ;;  %v6315_v21 = vmax.f32 %v6219_v53, 0.0 }
 0x3ad   : > { %v6214_v11 = vadd.f32 %v6213_v32, %v10619_v33  ;;  %v6313_v4 = vmax.f32 %v6211_v14, 0.0 }
 0x3ae   : > { %v6316_v2 = vmax.f32 %v6222_v19, 0.0 }
 0x3af   : > { %v6314_v41 = vmax.f32 %v6214_v11, 0.0 }
 0x3b0   : > { %v6342_v35 = vpack.c.bf16 %v6316_v2, %v6315_v21 }
 0x3b1   : > { %v6341_v12 = vpack.c.bf16 %v6314_v41, %v6313_v4  ;;  %v8111_v26 = vpop.f32.mrb[156].mxu1 }
 0x3b2   : > { %v6235_v27 = vadd.f32 %v8111_v26, %v10621_v62  ;;  %v6226_v55 = vpop.f32.mrb[157].mxu1 }
 0x3b3   : > { %v6227_v52 = vadd.f32 %v6226_v55, %v10624_v25  ;;  %v8112_v23 = vpop.f32.mrb[158].mxu1  ;;  %8153 = vmatprep.mubr.bf16.mxu0 %v6341_v12 }
 0x3b4   : > { %v6238_v6 = vadd.f32 %v8112_v23, %v10626_v42  ;;  %v6229_v5 = vpop.f32.mrb[159].mxu1  ;;  %8154 = vmatmul.mubr.bf16.gmra.mrb[152].mxu0 %v6342_v35  ;;  %v6319_v28 = vmax.f32 %v6235_v27, 0.0 }
 0x3b5   : > { %v6230_v33 = vadd.f32 %v6229_v5, %v10629_v40  ;;  %v6317_v59 = vmax.f32 %v6227_v52, 0.0 }
 0x3b6   : > { %v6320_v16 = vmax.f32 %v6238_v6, 0.0 }
 0x3b7   : > { %v6318_v47 = vmax.f32 %v6230_v33, 0.0 }
 0x3b8   : > { %v6344_v39 = vpack.c.bf16 %v6320_v16, %v6319_v28  ;;  %v8749_v16 = vld [vmem:[%s8905_s26 + $0x8] sm:$0xff]  }
 0x3b9   : > { %v6343_v54 = vpack.c.bf16 %v6318_v47, %v6317_v59  ;;  %v8750_v59 = vld [vmem:[%s8905_s26] sm:$0xff]  }
 0x3ba   : > { %v8115_v31 = vpop.f32.mrb[160].mxu1  ;;  %v6585_v47 = vunpack.c.l.bf16 %v8750_v59 }
 0x3bb   : > { %v6251_v62 = vadd.f32 %v8115_v31, %v10635_v56  ;;  %v6242_v8 = vpop.f32.mrb[161].mxu1  ;;  %8157 = vmatprep.mubr.bf16.mxu0 %v6343_v54  ;;  %v6588_v31 = vunpack.c.h.bf16 %v8749_v16 }
 0x3bc   : > { %v6243_v25 = vadd.f32 %v6242_v8, %v10632_v18  ;;  %v8116_v10 = vpop.f32.mrb[162].mxu1  ;;  %8158 = vmatmul.mubr.bf16.gmra.mrb[156].mxu0 %v6344_v39 }
 0x3bd   : > { %v6254_v42 = vadd.f32 %v8116_v10, %v10637_v1  ;;  %v6245_v58 = vpop.f32.mrb[163].mxu1  ;;  %v6323_v44 = vmax.f32 %v6251_v62, 0.0  ;;  %v6586_v62 = vunpack.c.h.bf16 %v8750_v59  ;;  %v8755_v59 = vld [vmem:[%s8905_s26 + $0x38] sm:$0xff]  }
 0x3be   : > { %v6246_v40 = vadd.f32 %v6245_v58, %v10639_v29  ;;  %v6321_v13 = vmax.f32 %v6243_v25, 0.0 }
 0x3bf   : > { %v6324_v9 = vmax.f32 %v6254_v42, 0.0 }
 0x3c0   : > { %v6322_v30 = vmax.f32 %v6246_v40, 0.0 }
 0x3c1   : > { %v6346_v36 = vpack.c.bf16 %v6324_v9, %v6323_v44 }
 0x3c2   : > { %v6345_v48 = vpack.c.bf16 %v6322_v30, %v6321_v13  ;;  %v8119_v38 = vpop.f32.mrb[164].mxu1 }
 0x3c3   : > { %v6267_v56 = vadd.f32 %v8119_v38, %v10649_v45  ;;  %v6258_v37 = vpop.f32.mrb[165].mxu1  ;;  %v8751_v38 = vld [vmem:[%s8905_s26 + $0x18] sm:$0xff]  }
 0x3c4   : > { %v6259_v18 = vadd.f32 %v6258_v37, %v10643_v60  ;;  %v8120_v63 = vpop.f32.mrb[166].mxu1  ;;  %8161 = vmatprep.mubr.bf16.mxu0 %v6345_v48 }
 0x3c5   : > { %v6270_v1 = vadd.f32 %v8120_v63, %v10651_v34  ;;  %v6261_v0 = vpop.f32.mrb[167].mxu1  ;;  %8162 = vmatmul.mubr.bf16.gmra.mrb[160].mxu0 %v6346_v36  ;;  %v6327_v3 = vmax.f32 %v6267_v56, 0.0  ;;  %v6591_v56 = vunpack.c.l.bf16 %v8751_v38  ;;  %v8752_v63 = vld [vmem:[%s8905_s26 + $0x10] sm:$0xff]  }
 0x3c6   : > { %v6262_v29 = vadd.f32 %v6261_v0, %v10645_v49  ;;  %v6325_v51 = vmax.f32 %v6259_v18, 0.0 }
 0x3c7   : > { %v6328_v17 = vmax.f32 %v6270_v1, 0.0  ;;  %v6589_v1 = vunpack.c.l.bf16 %v8752_v63 }
 0x3c8   : > { %v6326_v53 = vmax.f32 %v6262_v29, 0.0 }
 0x3c9   : > { %v6348_v22 = vpack.c.bf16 %v6328_v17, %v6327_v3  ;;  %v6592_v3 = vunpack.c.h.bf16 %v8751_v38 }
 0x3ca   : > { %v6347_v14 = vpack.c.bf16 %v6326_v53, %v6325_v51  ;;  %v8123_v20 = vpop.f32.mrb[168].mxu1  ;;  %v6590_v53 = vunpack.c.h.bf16 %v8752_v63 }
 0x3cb   : > { %v6283_v45 = vadd.f32 %v8123_v20, %v10661_v61  ;;  %v6274_v19 = vpop.f32.mrb[169].mxu1 }
 0x3cc   : > { %v6275_v60 = vadd.f32 %v6274_v19, %v10655_v50  ;;  %v8124_v32 = vpop.f32.mrb[170].mxu1  ;;  %8165 = vmatprep.mubr.bf16.mxu0 %v6347_v14 }
 0x3cd   : > { %v6286_v34 = vadd.f32 %v8124_v32, %v10663_v43  ;;  %v6277_v11 = vpop.f32.mrb[171].mxu1  ;;  %8166 = vmatmul.mubr.bf16.gmra.mrb[164].mxu0 %v6348_v22  ;;  %v6331_v21 = vmax.f32 %v6283_v45, 0.0 }
 0x3ce   : > { %v6278_v49 = vadd.f32 %v6277_v11, %v10657_v7  ;;  %v6329_v4 = vmax.f32 %v6275_v60, 0.0 }
 0x3cf   : > { %v6332_v2 = vmax.f32 %v6286_v34, 0.0 }
 0x3d0   : > { %v6330_v41 = vmax.f32 %v6278_v49, 0.0 }
 0x3d1   : > { %v6350_v35 = vpack.c.bf16 %v6332_v2, %v6331_v21  ;;  %v8753_v21 = vld [vmem:[%s8905_s26 + $0x28] sm:$0xff]  }
 0x3d2   : > { %v6349_v12 = vpack.c.bf16 %v6330_v41, %v6329_v4  ;;  %v8127_v26 = vpop.f32.mrb[172].mxu1  ;;  %v6595_v2 = vunpack.c.l.bf16 %v8753_v21 }
 0x3d3   : > { %v6299_v61 = vadd.f32 %v8127_v26, %v10673_v46  ;;  %v6290_v27 = vpop.f32.mrb[173].mxu1 }
 0x3d4   : > { %v6291_v50 = vadd.f32 %v6290_v27, %v10667_v57  ;;  %v8128_v55 = vpop.f32.mrb[174].mxu1  ;;  %8169 = vmatprep.mubr.bf16.mxu0 %v6349_v12  ;;  %v10712_v57 = vld [vmem:[%s10841_s6] ss:$0 sm:$0xff]  ;;  %v6596_v27 = vunpack.c.h.bf16 %v8753_v21 }
 0x3d5   : > { %v6302_v43 = vadd.f32 %v8128_v55, %v10675_v24  ;;  %v6293_v52 = vpop.f32.mrb[175].mxu1  ;;  %8170 = vmatmul.mubr.bf16.gmra.mrb[168].mxu0 %v6350_v35  ;;  %v6335_v23 = vmax.f32 %v6299_v61, 0.0  ;;  %v6587_v24 = vunpack.c.l.bf16 %v8749_v16  ;;  %v8754_v35 = vld [vmem:[%s8905_s26 + $0x20] sm:$0xff]  }
 0x3d6   : > { %v6294_v7 = vadd.f32 %v6293_v52, %v10669_v15  ;;  %v6333_v5 = vmax.f32 %v6291_v50, 0.0  ;;  %v6593_v12 = vunpack.c.l.bf16 %v8754_v35 }
 0x3d7   : > { %v6336_v6 = vmax.f32 %v6302_v43, 0.0  ;;  %v6594_v43 = vunpack.c.h.bf16 %v8754_v35 }
 0x3d8   : > { %v6334_v33 = vmax.f32 %v6294_v7, 0.0 }
 0x3d9   : > { %v6352_v28 = vpack.c.bf16 %v6336_v6, %v6335_v23 }
 0x3da   : > { %v6351_v46 = vpack.c.bf16 %v6334_v33, %v6333_v5 }
 0x3dc   : > { %8173 = vmatprep.mubr.bf16.mxu0 %v6351_v46 }
 0x3dd   : > { %8174 = vmatmul.mubr.bf16.gmra.mrb[172].mxu0 %v6352_v28 }
 0x477   : > { %v8147_v39 = vpop.f32.mrb[144].mxu0 }
 0x478   : > { %v6467_v15 = vadd.f32 %v8147_v39, %v10712_v57  ;;  %v6458_v54 = vpop.f32.mrb[145].mxu0 }
 0x479   : > { %v6459_v8 = vadd.f32 %v10712_v57, %v6458_v54  ;;  %v8148_v25 = vpop.f32.mrb[146].mxu0  ;;  %v8756_v54 = vld [vmem:[%s8905_s26 + $0x30] sm:$0xff]  }
 0x47a   : > { %v6619_v10 = vadd.f32 %v6587_v24, %v6467_v15  ;;  %v6470_v42 = vadd.f32 %v8148_v25, %v10712_v57  ;;  %v6461_v58 = vpop.f32.mrb[147].mxu0  ;;  %v6600_v25 = vunpack.c.h.bf16 %v8755_v59 }
 0x47b   : > { %v6617_v40 = vadd.f32 %v6585_v47, %v6459_v8  ;;  %v6462_v44 = vadd.f32 %v10712_v57, %v6461_v58  ;;  %v6599_v47 = vunpack.c.l.bf16 %v8755_v59  ;;  %v6598_v58 = vunpack.c.h.bf16 %v8756_v54 }
 0x47c   : > { %v6651_v9 = vmax.f32 %v6619_v10, 0.0  ;;  %v6620_v13 = vadd.f32 %v6588_v31, %v6470_v42  ;;  %v6597_v31 = vunpack.c.l.bf16 %v8756_v54 }
 0x47d   : > { %v6649_v30 = vmax.f32 %v6617_v40, 0.0  ;;  %v6618_v36 = vadd.f32 %v6586_v62, %v6462_v44 }
 0x47e   : > { %6683 = vst.msk [vmem:[%s10723_s14 + $0x10] sm:$0xff] %vm425_vm0, %v6651_v9  ;;  %v6652_v48 = vmax.f32 %v6620_v13, 0.0 }
 0x47f   : > { %6681 = vst.msk [vmem:[%s10723_s14] sm:$0xff] %vm425_vm0, %v6649_v30  ;;  %v6650_v37 = vmax.f32 %v6618_v36, 0.0  ;;  %v8151_v18 = vpop.f32.mrb[148].mxu0 }
 0x480   : > { %6684 = vst.msk [vmem:[%s10723_s14 + $0x18] sm:$0xff] %vm425_vm0, %v6652_v48  ;;  %v6483_v0 = vadd.f32 %v8151_v18, %v10712_v57  ;;  %v6474_v29 = vpop.f32.mrb[149].mxu0  ;;  %v8757_v18 = vld [vmem:[%s8905_s26 + $0x48] sm:$0xff]  }
 0x481   : > { %6682 = vst.msk [vmem:[%s10723_s14 + $0x8] sm:$0xff] %vm425_vm0, %v6650_v37  ;;  %v6475_v17 = vadd.f32 %v10712_v57, %v6474_v29  ;;  %v8152_v51 = vpop.f32.mrb[150].mxu0  ;;  %v6603_v63 = vunpack.c.l.bf16 %v8757_v18 }
 0x482   : > { %v6623_v22 = vadd.f32 %v6591_v56, %v6483_v0  ;;  %v6486_v14 = vadd.f32 %v8152_v51, %v10712_v57  ;;  %v6477_v20 = vpop.f32.mrb[151].mxu0 }
 0x483   : > { %v6621_v45 = vadd.f32 %v6589_v1, %v6475_v17  ;;  %v6478_v19 = vadd.f32 %v10712_v57, %v6477_v20  ;;  %v8758_v1 = vld [vmem:[%s8905_s26 + $0x40] sm:$0xff]  }
 0x484   : > { %v6655_v60 = vmax.f32 %v6623_v22, 0.0  ;;  %v6624_v32 = vadd.f32 %v6592_v3, %v6486_v14  ;;  %v6601_v0 = vunpack.c.l.bf16 %v8758_v1  ;;  %v6602_v22 = vunpack.c.h.bf16 %v8758_v1 }
 0x485   : > { %v6653_v34 = vmax.f32 %v6621_v45, 0.0  ;;  %v6622_v11 = vadd.f32 %v6590_v53, %v6478_v19  ;;  %v6604_v53 = vunpack.c.h.bf16 %v8757_v18 }
 0x486   : > { %6687 = vst.msk [vmem:[%s10723_s14 + $0x30] sm:$0xff] %vm425_vm0, %v6655_v60  ;;  %v6656_v49 = vmax.f32 %v6624_v32, 0.0 }
 0x487   : > { %6685 = vst.msk [vmem:[%s10723_s14 + $0x20] sm:$0xff] %vm425_vm0, %v6653_v34  ;;  %v6654_v4 = vmax.f32 %v6622_v11, 0.0  ;;  %v8155_v41 = vpop.f32.mrb[152].mxu0 }
 0x488   : > { %6688 = vst.msk [vmem:[%s10723_s14 + $0x38] sm:$0xff] %vm425_vm0, %v6656_v49  ;;  %v6499_v26 = vadd.f32 %v8155_v41, %v10712_v57  ;;  %v6490_v61 = vpop.f32.mrb[153].mxu0  ;;  %v8759_v41 = vld [vmem:[%s8905_s26 + $0x58] sm:$0xff]  }
 0x489   : > { %6686 = vst.msk [vmem:[%s10723_s14 + $0x28] sm:$0xff] %vm425_vm0, %v6654_v4  ;;  %v6491_v50 = vadd.f32 %v10712_v57, %v6490_v61  ;;  %v8156_v55 = vpop.f32.mrb[154].mxu0  ;;  %v6607_v35 = vunpack.c.l.bf16 %v8759_v41  ;;  %v8760_v61 = vld [vmem:[%s8905_s26 + $0x50] sm:$0xff]  }
 0x48a   : > { %v6627_v52 = vadd.f32 %v6595_v2, %v6499_v26  ;;  %v6502_v7 = vadd.f32 %v8156_v55, %v10712_v57  ;;  %v6493_v23 = vpop.f32.mrb[155].mxu0 }
 0x48b   : > { %v6625_v6 = vadd.f32 %v6593_v12, %v6491_v50  ;;  %v6494_v5 = vadd.f32 %v10712_v57, %v6493_v23  ;;  %v6606_v23 = vunpack.c.h.bf16 %v8760_v61 }
 0x48c   : > { %v6659_v33 = vmax.f32 %v6627_v52, 0.0  ;;  %v6628_v28 = vadd.f32 %v6596_v27, %v6502_v7  ;;  %v6605_v27 = vunpack.c.l.bf16 %v8760_v61 }
 0x48d   : > { %v6657_v46 = vmax.f32 %v6625_v6, 0.0  ;;  %v6626_v16 = vadd.f32 %v6594_v43, %v6494_v5  ;;  %v6608_v43 = vunpack.c.h.bf16 %v8759_v41 }
 0x48e   : > { %6691 = vst.msk [vmem:[%s10723_s14 + $0x50] sm:$0xff] %vm425_vm0, %v6659_v33  ;;  %v6660_v24 = vmax.f32 %v6628_v28, 0.0 }
 0x48f   : > { %6689 = vst.msk [vmem:[%s10723_s14 + $0x40] sm:$0xff] %vm425_vm0, %v6657_v46  ;;  %v6658_v39 = vmax.f32 %v6626_v16, 0.0  ;;  %v8159_v15 = vpop.f32.mrb[156].mxu0 }
 0x490   : > { %6692 = vst.msk [vmem:[%s10723_s14 + $0x58] sm:$0xff] %vm425_vm0, %v6660_v24  ;;  %v6515_v62 = vadd.f32 %v8159_v15, %v10712_v57  ;;  %v6506_v8 = vpop.f32.mrb[157].mxu0  ;;  %v8761_v15 = vld [vmem:[%s8905_s26 + $0x68] sm:$0xff]  }
 0x491   : > { %6690 = vst.msk [vmem:[%s10723_s14 + $0x48] sm:$0xff] %vm425_vm0, %v6658_v39  ;;  %v6507_v10 = vadd.f32 %v10712_v57, %v6506_v8  ;;  %v8160_v42 = vpop.f32.mrb[158].mxu0  ;;  %v6611_v54 = vunpack.c.l.bf16 %v8761_v15  ;;  %v8762_v8 = vld [vmem:[%s8905_s26 + $0x60] sm:$0xff]  }
 0x492   : > { %v6631_v40 = vadd.f32 %v6599_v47, %v6515_v62  ;;  %v6518_v44 = vadd.f32 %v8160_v42, %v10712_v57  ;;  %v6509_v9 = vpop.f32.mrb[159].mxu0 }
 0x493   : > { %v6629_v13 = vadd.f32 %v6597_v31, %v6507_v10  ;;  %v6510_v30 = vadd.f32 %v10712_v57, %v6509_v9  ;;  %v6610_v9 = vunpack.c.h.bf16 %v8762_v8 }
 0x494   : > { %v6663_v36 = vmax.f32 %v6631_v40, 0.0  ;;  %v6632_v48 = vadd.f32 %v6600_v25, %v6518_v44  ;;  %v6609_v25 = vunpack.c.l.bf16 %v8762_v8 }
 0x495   : > { %v6661_v38 = vmax.f32 %v6629_v13, 0.0  ;;  %v6630_v56 = vadd.f32 %v6598_v58, %v6510_v30  ;;  %v6612_v58 = vunpack.c.h.bf16 %v8761_v15 }
 0x496   : > { %6695 = vst.msk [vmem:[%s10723_s14 + $0x70] sm:$0xff] %vm425_vm0, %v6663_v36  ;;  %v6664_v37 = vmax.f32 %v6632_v48, 0.0 }
 0x497   : > { %6693 = vst.msk [vmem:[%s10723_s14 + $0x60] sm:$0xff] %vm425_vm0, %v6661_v38  ;;  %v6662_v29 = vmax.f32 %v6630_v56, 0.0 }
 0x498   : > { %v8163_v3 = vpop.f32.mrb[160].mxu0  ;;  %6696 = vst.msk [vmem:[%s10723_s14 + $0x78] sm:$0xff] %vm425_vm0, %v6664_v37 }
 0x499   : > { %v6531_v17 = vadd.f32 %v8163_v3, %v10712_v57  ;;  %v6522_v51 = vpop.f32.mrb[161].mxu0  ;;  %6694 = vst.msk [vmem:[%s10723_s14 + $0x68] sm:$0xff] %vm425_vm0, %v6662_v29 }
 0x49a   : > { %v6523_v14 = vadd.f32 %v10712_v57, %v6522_v51  ;;  %v8164_v20 = vpop.f32.mrb[162].mxu0  ;;  %v8764_v51 = vld [vmem:[%s8905_s26 + $0x70] sm:$0xff]  }
 0x49b   : > { %v6635_v45 = vadd.f32 %v6603_v63, %v6531_v17  ;;  %v6534_v19 = vadd.f32 %v8164_v20, %v10712_v57  ;;  %v6525_v60 = vpop.f32.mrb[163].mxu0 }
 0x49c   : > { %v6633_v32 = vadd.f32 %v6601_v0, %v6523_v14  ;;  %v6526_v34 = vadd.f32 %v10712_v57, %v6525_v60  ;;  %v8763_v0 = vld [vmem:[%s8905_s26 + $0x78] sm:$0xff]   ;;  %v6614_v60 = vunpack.c.h.bf16 %v8764_v51 }
 0x49d   : > { %v6667_v11 = vmax.f32 %v6635_v45, 0.0  ;;  %v6636_v49 = vadd.f32 %v6604_v53, %v6534_v19  ;;  %v6615_v29 = vunpack.c.l.bf16 %v8763_v0  ;;  %v6613_v53 = vunpack.c.l.bf16 %v8764_v51 }
 0x49e   : > { %v6665_v21 = vmax.f32 %v6633_v32, 0.0  ;;  %v6634_v2 = vadd.f32 %v6602_v22, %v6526_v34  ;;  %v6616_v20 = vunpack.c.h.bf16 %v8763_v0 }
 0x49f   : > { %6699 = vst.msk [vmem:[%s10723_s14 + $0x90] sm:$0xff] %vm425_vm0, %v6667_v11  ;;  %v6668_v4 = vmax.f32 %v6636_v49, 0.0 }
 0x4a0   : > { %6697 = vst.msk [vmem:[%s10723_s14 + $0x80] sm:$0xff] %vm425_vm0, %v6665_v21  ;;  %v6666_v12 = vmax.f32 %v6634_v2, 0.0  ;;  %v8167_v26 = vpop.f32.mrb[164].mxu0 }
 0x4a1   : > { %6700 = vst.msk [vmem:[%s10723_s14 + $0x98] sm:$0xff] %vm425_vm0, %v6668_v4  ;;  %v6547_v50 = vadd.f32 %v8167_v26, %v10712_v57  ;;  %v6538_v55 = vpop.f32.mrb[165].mxu0 }
 0x4a2   : > { %6698 = vst.msk [vmem:[%s10723_s14 + $0x88] sm:$0xff] %vm425_vm0, %v6666_v12  ;;  %v6539_v52 = vadd.f32 %v10712_v57, %v6538_v55  ;;  %v8168_v7 = vpop.f32.mrb[166].mxu0 }
 0x4a3   : > { %v6639_v6 = vadd.f32 %v6607_v35, %v6547_v50  ;;  %v6550_v5 = vadd.f32 %v8168_v7, %v10712_v57  ;;  %v6541_v33 = vpop.f32.mrb[167].mxu0 }
 0x4a4   : > { %v6637_v28 = vadd.f32 %v6605_v27, %v6539_v52  ;;  %v6542_v46 = vadd.f32 %v10712_v57, %v6541_v33 }
 0x4a5   : > { %v6671_v16 = vmax.f32 %v6639_v6, 0.0  ;;  %v6640_v24 = vadd.f32 %v6608_v43, %v6550_v5 }
 0x4a6   : > { %v6669_v59 = vmax.f32 %v6637_v28, 0.0  ;;  %v6638_v47 = vadd.f32 %v6606_v23, %v6542_v46 }
 0x4a7   : > { %6703 = vst.msk [vmem:[%s10723_s14 + $0xb0] sm:$0xff] %vm425_vm0, %v6671_v16  ;;  %v6672_v39 = vmax.f32 %v6640_v24, 0.0 }
 0x4a8   : > { %6701 = vst.msk [vmem:[%s10723_s14 + $0xa0] sm:$0xff] %vm425_vm0, %v6669_v59  ;;  %v6670_v31 = vmax.f32 %v6638_v47, 0.0  ;;  %v8171_v62 = vpop.f32.mrb[168].mxu0 }
 0x4a9   : > { %6704 = vst.msk [vmem:[%s10723_s14 + $0xb8] sm:$0xff] %vm425_vm0, %v6672_v39  ;;  %v6563_v10 = vadd.f32 %v8171_v62, %v10712_v57  ;;  %v6554_v42 = vpop.f32.mrb[169].mxu0 }
 0x4aa   : > { %6702 = vst.msk [vmem:[%s10723_s14 + $0xa8] sm:$0xff] %vm425_vm0, %v6670_v31  ;;  %v6555_v40 = vadd.f32 %v10712_v57, %v6554_v42  ;;  %v8172_v44 = vpop.f32.mrb[170].mxu0 }
 0x4ab   : > { %v6643_v13 = vadd.f32 %v6611_v54, %v6563_v10  ;;  %v6566_v30 = vadd.f32 %v8172_v44, %v10712_v57  ;;  %v6557_v36 = vpop.f32.mrb[171].mxu0 }
 0x4ac   : > { %v6641_v48 = vadd.f32 %v6609_v25, %v6555_v40  ;;  %v6558_v38 = vadd.f32 %v10712_v57, %v6557_v36 }
 0x4ad   : > { %v6675_v56 = vmax.f32 %v6643_v13, 0.0  ;;  %v6644_v37 = vadd.f32 %v6612_v58, %v6566_v30 }
 0x4ae   : > { %v6673_v18 = vmax.f32 %v6641_v48, 0.0  ;;  %v6642_v63 = vadd.f32 %v6610_v9, %v6558_v38 }
 0x4af   : > { %6707 = vst.msk [vmem:[%s10723_s14 + $0xd0] sm:$0xff] %vm425_vm0, %v6675_v56  ;;  %v6676_v1 = vmax.f32 %v6644_v37, 0.0 }
 0x4b0   : > { %6705 = vst.msk [vmem:[%s10723_s14 + $0xc0] sm:$0xff] %vm425_vm0, %v6673_v18  ;;  %v6674_v3 = vmax.f32 %v6642_v63, 0.0  ;;  %v8175_v17 = vpop.f32.mrb[172].mxu0 }
 0x4b1   : > { %6708 = vst.msk [vmem:[%s10723_s14 + $0xd8] sm:$0xff] %vm425_vm0, %v6676_v1  ;;  %v6579_v22 = vadd.f32 %v8175_v17, %v10712_v57  ;;  %v6570_v14 = vpop.f32.mrb[173].mxu0 }
 0x4b2   : > { %6706 = vst.msk [vmem:[%s10723_s14 + $0xc8] sm:$0xff] %vm425_vm0, %v6674_v3  ;;  %v6571_v45 = vadd.f32 %v10712_v57, %v6570_v14  ;;  %v8176_v19 = vpop.f32.mrb[174].mxu0 }
 0x4b3   : > { %v6647_v32 = vadd.f32 %v6615_v29, %v6579_v22  ;;  %v6582_v34 = vadd.f32 %v8176_v19, %v10712_v57  ;;  %v6573_v11 = vpop.f32.mrb[175].mxu0 }
 0x4b4   : > { %v6645_v49 = vadd.f32 %v6613_v53, %v6571_v45  ;;  %v6574_v21 = vadd.f32 %v10712_v57, %v6573_v11 }
 0x4b5   : > { %v6679_v2 = vmax.f32 %v6647_v32, 0.0  ;;  %v6648_v4 = vadd.f32 %v6616_v20, %v6582_v34 }
 0x4b6   : > { %v6677_v41 = vmax.f32 %v6645_v49, 0.0  ;;  %v6646_v35 = vadd.f32 %v6614_v60, %v6574_v21 }
 0x4b7   : > { %6711 = vst.msk [vmem:[%s10723_s14 + $0xf0] sm:$0xff] %vm425_vm0, %v6679_v2  ;;  %v6680_v12 = vmax.f32 %v6648_v4, 0.0 }
 0x4b8   : > { %6709 = vst.msk [vmem:[%s10723_s14 + $0xe0] sm:$0xff] %vm425_vm0, %v6677_v41  ;;  %v6678_v26 = vmax.f32 %v6646_v35, 0.0 }
 0x4b9   : > { %6712 = vst.msk [vmem:[%s10723_s14 + $0xf8] sm:$0xff] %vm425_vm0, %v6680_v12 }
 0x4ba   : > { %6710 = vst.msk [vmem:[%s10723_s14 + $0xe8] sm:$0xff] %vm425_vm0, %v6678_v26 }
 0x4bb PF: > { %s18_s24 = sadd.s32 1, %s8803_s24  }
 0x4bc   : > { %p15_p3 = scmp.ge.s32.totalorder %s18_s24, 4  }
 0x4be   :  { %17 = sbr.rel (!%p15_p3) target bundleno = 1 (0x1), region = 86 }
 0x4c5   :  { %6735 = vsyncpa [#allocation4], 1 }
 0x4c6   :  { %6737 = vsyncpa [#allocation4 + $0x1], 1 }

</bundles_post_ra>
